<compile_context>
chip_gen: v5e
topology: v5e:2x2
jax: 0.10.0
libtpu: 0.0.40
codegen_flags: <defaults>
</compile_context>

<pallas_src>
import functools

import jax
import jax.numpy as jnp
from jax import lax
from jax.experimental import pallas as pl
from jax.experimental.pallas import tpu as pltpu


def bottleneck_kernel(x_ref, w1_ref, b1_ref, w2_ref, b2_ref, w3_ref, b3_ref,
                      o_ref, pad_ref, *, H, W):
    """Processes one image per grid step. Activations are (H*W, C), lanes = C."""
    HW = H * W
    PW = (H + 2) * W                     # rows of the H-halo-padded activation
    P = w1_ref.shape[1]

    x = x_ref[0]                         # (HW, Cin) f32 (kept f32 for residual)

    # ---- conv1 (1x1; BN1 scale folded into weights) + bias + ReLU ----
    h1 = jnp.dot(x.astype(jnp.bfloat16), w1_ref[...],
                 preferred_element_type=jnp.float32)
    h1 = jnp.maximum(h1 + b1_ref[...], 0.0)              # (HW, P) f32

    # ---- conv2 (3x3, stride 1, pad 1) ----
    # Flattened row-major (H, W) activation with one zero halo row above and
    # below.  The dy (H) shift becomes an 8-aligned row offset dy*W; the dx (W)
    # shift is a sublane roll + border-column mask (the roll's cross-row wrap
    # lands exactly on the masked border columns).  Only the 2*W halo rows are
    # re-zeroed each step -- the interior is fully overwritten.
    pad_ref[0:W, :] = jnp.zeros((W, P), jnp.float32)
    pad_ref[W:W + HW, :] = h1
    pad_ref[W + HW:PW, :] = jnp.zeros((W, P), jnp.float32)

    padv = pad_ref[...]                                   # (PW, P) f32
    col = lax.broadcasted_iota(jnp.int32, (PW, P), 0) % W

    acc = None
    for dx in range(3):
        shift = (1 - dx) % PW
        rolled = padv if shift == 0 else pltpu.roll(padv, shift=shift, axis=0)
        if dx == 0:          # left tap: column 0 has no left neighbor
            rolled = jnp.where(col == 0, 0.0, rolled)
        elif dx == 2:        # right tap: column W-1 has no right neighbor
            rolled = jnp.where(col == W - 1, 0.0, rolled)
        rolled16 = rolled.astype(jnp.bfloat16)
        for dy in range(3):
            patch = rolled16[dy * W:dy * W + HW, :]       # aligned row-offset slice
            part = jnp.dot(patch, w2_ref[dy * 3 + dx],
                           preferred_element_type=jnp.float32)
            acc = part if acc is None else acc + part
    h2 = jnp.maximum(acc + b2_ref[...], 0.0)              # (HW, P) f32

    # ---- conv3 (1x1; BN3 scale folded) + bias + identity residual + ReLU ----
    h3 = jnp.dot(h2.astype(jnp.bfloat16), w3_ref[...],
                 preferred_element_type=jnp.float32)
    o_ref[0] = jnp.maximum(h3 + b3_ref[...] + x, 0.0)


def fold_bn_into_conv(w, gamma, beta, mean, var, eps=1e-5):
    """Fold inference BatchNorm into a conv: bf16 scaled weight + f32 (1,C) bias."""
    scale = gamma / jnp.sqrt(var + eps)
    bias = (beta - mean * scale).reshape(1, -1).astype(jnp.float32)
    w_folded = (w.astype(jnp.float32) * scale).astype(jnp.bfloat16)
    return w_folded, bias


def bottleneck_pallas(x, w1, w2, w3, bn1, bn2, bn3, *, eps=1e-5):
    """x: (N,H,W,Cin) f32; w1:(1,1,Cin,P), w2:(3,3,P,P), w3:(1,1,P,4P) in HWIO;
    bn*: (gamma, beta, running_mean, running_var)."""
    N, H, W, Cin = x.shape
    P = w1.shape[-1]
    Cout = w3.shape[-1]
    assert Cin == Cout, "identity residual requires inplanes == planes * 4"
    # TODO(synk): stride > 1 and the downsample residual branch are not
    #             implemented (module defaults: stride=1, downsample=None).

    w1k, b1 = fold_bn_into_conv(w1.reshape(Cin, P), *bn1, eps=eps)
    w2k, b2 = fold_bn_into_conv(w2.reshape(9, P, P), *bn2, eps=eps)
    w3k, b3 = fold_bn_into_conv(w3.reshape(P, Cout), *bn3, eps=eps)

    HW = H * W
    xf = x.reshape(N, HW, Cin)           # lane-dense channels-last layout

    # Per-step VMEM footprint: double-buffered image blocks + weights + scratch.
    block_bytes = (2 * HW * (Cin + Cout) * 4                 # x + out, double-buffered
                   + (H + 2) * W * P * 4                     # halo-padded scratch
                   + (Cin * P + 9 * P * P + P * Cout) * 2    # bf16 weights
                   + (2 * P + Cout) * 4)                     # biases
    vmem_limit = int(min(48 * 1024 * 1024, max(32 * 1024 * 1024, 2 * block_bytes)))

    kern = pl.pallas_call(
        functools.partial(bottleneck_kernel, H=H, W=W),
        out_shape=jax.ShapeDtypeStruct((N, HW, Cout), jnp.float32),
        grid_spec=pltpu.PrefetchScalarGridSpec(
            num_scalar_prefetch=0,
            grid=(N,),
            in_specs=[
                pl.BlockSpec((1, HW, Cin), lambda n: (n, 0, 0)),
                pl.BlockSpec((Cin, P), lambda n: (0, 0)),
                pl.BlockSpec((1, P), lambda n: (0, 0)),
                pl.BlockSpec((9, P, P), lambda n: (0, 0, 0)),
                pl.BlockSpec((1, P), lambda n: (0, 0)),
                pl.BlockSpec((P, Cout), lambda n: (0, 0)),
                pl.BlockSpec((1, Cout), lambda n: (0, 0)),
            ],
            out_specs=pl.BlockSpec((1, HW, Cout), lambda n: (n, 0, 0)),
            scratch_shapes=[pltpu.VMEM(((H + 2) * W, P), jnp.float32)],
        ),
        compiler_params=pltpu.CompilerParams(
            dimension_semantics=("parallel",),   # batch is independent -> both TCs on v7x
            vmem_limit_bytes=vmem_limit),
    )
    out = kern(xf, w1k, b1, w2k, b2, w3k, b3)
    # TODO(synk): for large feature maps (e.g. 56x56x256 on v7x's 64 MiB VMEM),
    #             add a second "parallel" grid axis over H row-bands with a halo.
    return out.reshape(N, H, W, Cout)


# ---------------- pure-JAX references (for verification) ----------------
def _conv_nhwc(x, w, pad, preferred=None):
    return lax.conv_general_dilated(
        x, w, window_strides=(1, 1), padding=[(pad, pad), (pad, pad)],
        dimension_numbers=('NHWC', 'HWIO', 'NHWC'),
        preferred_element_type=preferred)


def _bn(h, gamma, beta, mean, var, eps=1e-5):
    return (h - mean) / jnp.sqrt(var + eps) * gamma + beta


def bottleneck_reference_f32(x, w1, bn1, w2, bn2, w3, bn3):
    """Exact f32 semantics of the PyTorch module (inference-mode BN)."""
    h = jax.nn.relu(_bn(_conv_nhwc(x, w1, 0), *bn1))
    h = jax.nn.relu(_bn(_conv_nhwc(h, w2, 1), *bn2))
    h = _bn(_conv_nhwc(h, w3, 0), *bn3)
    return jax.nn.relu(h + x)


def bottleneck_reference_mixed(x, w1k, b1, w2k, b2, w3k, b3):
    """Mirror of the kernel's mixed precision: bf16 conv inputs with folded BN
    weights, f32 accumulation, f32 bias / ReLU / residual."""
    Cin = x.shape[-1]
    P = w1k.shape[-1]
    Cout = w3k.shape[-1]

    def conv(a, w_hwio, pad):
        return _conv_nhwc(a.astype(jnp.bfloat16), w_hwio, pad,
                          preferred=jnp.float32)

    h = jax.nn.relu(conv(x, w1k.reshape(1, 1, Cin, P), 0) + b1.reshape(1, 1, 1, P))
    h = jax.nn.relu(conv(h, w2k.reshape(3, 3, P, P), 1) + b2.reshape(1, 1, 1, P))
    h = conv(h, w3k.reshape(1, 1, P, Cout), 0) + b3.reshape(1, 1, 1, Cout)
    return jax.nn.relu(h + x)


if __name__ == "__main__":
    # Small shapes consistent with the module: planes=4 => inplanes = 4*planes = 16
    N, H, W = 2, 16, 16
    planes = 4
    inplanes = planes * 4      # identity residual (downsample=None)
    Cout = planes * 4

    key = jax.random.PRNGKey(0)
    ks = jax.random.split(key, 8)

    x = jax.random.normal(ks[0], (N, H, W, inplanes), jnp.float32)
    w1 = jax.random.normal(ks[1], (1, 1, inplanes, planes), jnp.float32) * 0.1
    w2 = jax.random.normal(ks[2], (3, 3, planes, planes), jnp.float32) * 0.1
    w3 = jax.random.normal(ks[3], (1, 1, planes, Cout), jnp.float32) * 0.1

    def bn_params(k, c):
        k1, k2, k3, k4 = jax.random.split(k, 4)
        gamma = 1.0 + 0.1 * jax.random.normal(k1, (c,), jnp.float32)
        beta = 0.1 * jax.random.normal(k2, (c,), jnp.float32)
        mean = 0.1 * jax.random.normal(k3, (c,), jnp.float32)
        var = 0.5 + jnp.abs(jax.random.normal(k4, (c,), jnp.float32))
        return gamma, beta, mean, var

    bn1 = bn_params(ks[4], planes)
    bn2 = bn_params(ks[5], planes)
    bn3 = bn_params(ks[6], Cout)

    out = jax.block_until_ready(bottleneck_pallas(x, w1, w2, w3, bn1, bn2, bn3))
    assert out.shape == (N, H, W, Cout), out.shape

    # Tight check against a reference that mirrors the kernel's mixed precision
    # (same folded bf16 weights / f32 biases, f32 accumulation).
    w1k, b1 = fold_bn_into_conv(w1.reshape(inplanes, planes), *bn1)
    w2k, b2 = fold_bn_into_conv(w2.reshape(9, planes, planes), *bn2)
    w3k, b3 = fold_bn_into_conv(w3.reshape(planes, Cout), *bn3)
    ref_mixed = jax.block_until_ready(
        bottleneck_reference_mixed(x, w1k, b1, w2k, b2, w3k, b3))
    assert jnp.allclose(out, ref_mixed, rtol=2e-3, atol=2e-3), float(
        jnp.max(jnp.abs(out - ref_mixed)))

    # Loose sanity check against exact f32 module semantics (bounds bf16 error
    # and validates the BN fold itself).
    ref_f32 = jax.block_until_ready(
        bottleneck_reference_f32(x, w1, bn1, w2, bn2, w3, bn3))
    assert jnp.allclose(out, ref_f32, rtol=1e-1, atol=1e-1), float(
        jnp.max(jnp.abs(out - ref_f32)))

    print("KERNEL_OK")
</pallas_src>

<mosaic_0001>
module attributes {stable_mosaic.version = 11 : i64} {
  func.func @bottleneck_kernel(%arg0: i32, %arg1: memref<1x256x16xf32, #tpu.memory_space<vmem>>, %arg2: memref<16x4xbf16, #tpu.memory_space<vmem>>, %arg3: memref<1x4xf32, #tpu.memory_space<vmem>>, %arg4: memref<9x4x4xbf16, #tpu.memory_space<vmem>>, %arg5: memref<1x4xf32, #tpu.memory_space<vmem>>, %arg6: memref<4x16xbf16, #tpu.memory_space<vmem>>, %arg7: memref<1x16xf32, #tpu.memory_space<vmem>>, %arg8: memref<1x256x16xf32, #tpu.memory_space<vmem>>, %arg9: memref<288x4xf32, #tpu.memory_space<vmem>>) attributes {dimension_semantics = [#tpu.dimension_semantics<parallel>], iteration_bounds = array<i64: 2>, scalar_prefetch = 0 : i64, scratch_operands = 1 : i64, tpu.core_type = #tpu.core_type<tc>, window_params = [{transform_indices = @transform_0, window_bounds = array<i64: 1, 256, 16>}, {pipeline_mode = #tpu.pipeline_mode<synchronous>, transform_indices = @transform_1, window_bounds = array<i64: 16, 4>}, {pipeline_mode = #tpu.pipeline_mode<synchronous>, transform_indices = @transform_2, window_bounds = array<i64: 1, 4>}, {pipeline_mode = #tpu.pipeline_mode<synchronous>, transform_indices = @transform_3, window_bounds = array<i64: 9, 4, 4>}, {pipeline_mode = #tpu.pipeline_mode<synchronous>, transform_indices = @transform_4, window_bounds = array<i64: 1, 4>}, {pipeline_mode = #tpu.pipeline_mode<synchronous>, transform_indices = @transform_5, window_bounds = array<i64: 4, 16>}, {pipeline_mode = #tpu.pipeline_mode<synchronous>, transform_indices = @transform_6, window_bounds = array<i64: 1, 16>}, {transform_indices = @transform_7, window_bounds = array<i64: 1, 256, 16>}]} {
    %c0 = arith.constant 0 : index
    %c0_0 = arith.constant 0 : index
    %c0_1 = arith.constant 0 : index
    %0 = vector.load %arg1[%c0, %c0_0, %c0_1] : memref<1x256x16xf32, #tpu.memory_space<vmem>>, vector<1x256x16xf32>
    %1 = vector.shape_cast %0 : vector<1x256x16xf32> to vector<256x16xf32>
    %2 = arith.truncf %1 : vector<256x16xf32> to vector<256x16xbf16>
    %c0_2 = arith.constant 0 : index
    %c0_3 = arith.constant 0 : index
    %3 = vector.load %arg2[%c0_2, %c0_3] : memref<16x4xbf16, #tpu.memory_space<vmem>>, vector<16x4xbf16>
    %cst = arith.constant dense<0.000000e+00> : vector<256x4xf32>
    %4 = tpu.matmul %2, %3, %cst {dimension_numbers = #tpu.dot_dimension_numbers<[1], [0], [0], [1], [0, 0, 1, 1], [], []>} : vector<256x16xbf16>, vector<16x4xbf16>, vector<256x4xf32> -> vector<256x4xf32>
    %c0_4 = arith.constant 0 : index
    %c0_5 = arith.constant 0 : index
    %5 = vector.load %arg3[%c0_4, %c0_5] : memref<1x4xf32, #tpu.memory_space<vmem>>, vector<1x4xf32>
    %6 = vector.broadcast %5 : vector<1x4xf32> to vector<256x4xf32>
    %7 = arith.addf %4, %6 : vector<256x4xf32>
    %cst_6 = arith.constant 0.000000e+00 : f32
    %8 = vector.broadcast %cst_6 : f32 to vector<256x4xf32>
    %9 = arith.maximumf %7, %8 : vector<256x4xf32>
    %cst_7 = arith.constant 0.000000e+00 : f32
    %10 = vector.broadcast %cst_7 : f32 to vector<16x4xf32>
    %c0_8 = arith.constant 0 : index
    %c0_9 = arith.constant 0 : index
    %11 = vector.load %arg9[%c0_8, %c0_9] : memref<288x4xf32, #tpu.memory_space<vmem>>, vector<16x4xf32>
    tpu.vector_store %arg9[%c0_8, %c0_9], %10 {strides = array<i32>} : memref<288x4xf32, #tpu.memory_space<vmem>>, vector<16x4xf32>,
    %c16 = arith.constant 16 : index
    %c0_10 = arith.constant 0 : index
    %12 = vector.load %arg9[%c16, %c0_10] : memref<288x4xf32, #tpu.memory_space<vmem>>, vector<256x4xf32>
    tpu.vector_store %arg9[%c16, %c0_10], %9 {strides = array<i32>} : memref<288x4xf32, #tpu.memory_space<vmem>>, vector<256x4xf32>,
    %cst_11 = arith.constant 0.000000e+00 : f32
    %13 = vector.broadcast %cst_11 : f32 to vector<16x4xf32>
    %c272 = arith.constant 272 : index
    %c0_12 = arith.constant 0 : index
    %14 = vector.load %arg9[%c272, %c0_12] : memref<288x4xf32, #tpu.memory_space<vmem>>, vector<16x4xf32>
    tpu.vector_store %arg9[%c272, %c0_12], %13 {strides = array<i32>} : memref<288x4xf32, #tpu.memory_space<vmem>>, vector<16x4xf32>,
    %c0_13 = arith.constant 0 : index
    %c0_14 = arith.constant 0 : index
    %15 = vector.load %arg9[%c0_13, %c0_14] : memref<288x4xf32, #tpu.memory_space<vmem>>, vector<288x4xf32>
    %16 = tpu.iota {dimensions = array<i32: 0>} : vector<288x4xi32>
    %c16_i32 = arith.constant 16 : i32
    %c0_i32 = arith.constant 0 : i32
    %17 = arith.cmpi eq, %c16_i32, %c0_i32 : i32
    %c1_i32 = arith.constant 1 : i32
    %18 = arith.select %17, %c1_i32, %c16_i32 : i32
    %19 = vector.broadcast %18 : i32 to vector<288x4xi32>
    %20 = arith.remsi %16, %19 : vector<288x4xi32>
    %c0_i32_15 = arith.constant 0 : i32
    %21 = vector.broadcast %c0_i32_15 : i32 to vector<288x4xi32>
    %22 = arith.cmpi ne, %20, %21 : vector<288x4xi32>
    %c0_i32_16 = arith.constant 0 : i32
    %23 = vector.broadcast %c0_i32_16 : i32 to vector<288x4xi32>
    %24 = arith.cmpi slt, %20, %23 : vector<288x4xi32>
    %c0_i32_17 = arith.constant 0 : i32
    %25 = arith.cmpi slt, %18, %c0_i32_17 : i32
    %26 = vector.broadcast %25 : i1 to vector<288x4xi1>
    %27 = vector.broadcast %26 : vector<288x4xi1> to vector<288x4xi1>
    %28 = arith.xori %24, %27 : vector<288x4xi1>
    %29 = arith.andi %28, %22 : vector<288x4xi1>
    %30 = vector.broadcast %18 : i32 to vector<288x4xi32>
    %31 = arith.addi %20, %30 : vector<288x4xi32>
    %32 = arith.select %29, %31, %20 : vector<288x4xi1>, vector<288x4xi32>
    %c1_i32_18 = arith.constant 1 : i32
    %33 = tpu.dynamic_rotate %15 by %c1_i32_18 dim 0 : vector<288x4xf32>, i32 -> vector<288x4xf32>
    %c0_i32_19 = arith.constant 0 : i32
    %34 = vector.broadcast %c0_i32_19 : i32 to vector<288x4xi32>
    %35 = arith.cmpi eq, %32, %34 : vector<288x4xi32>
    %cst_20 = arith.constant 0.000000e+00 : f32
    %36 = vector.broadcast %cst_20 : f32 to vector<288x4xf32>
    %37 = arith.select %35, %36, %33 : vector<288x4xi1>, vector<288x4xf32>
    %38 = arith.truncf %37 : vector<288x4xf32> to vector<288x4xbf16>
    %39 = vector.extract_strided_slice %38 {offsets = [0, 0], sizes = [256, 4], strides = [1, 1]} : vector<288x4xbf16> to vector<256x4xbf16>
    %c0_21 = arith.constant 0 : index
    %c0_22 = arith.constant 0 : index
    %c0_23 = arith.constant 0 : index
    %40 = vector.load %arg4[%c0_21, %c0_22, %c0_23] : memref<9x4x4xbf16, #tpu.memory_space<vmem>>, vector<1x4x4xbf16>
    %41 = vector.shape_cast %40 : vector<1x4x4xbf16> to vector<4x4xbf16>
    %cst_24 = arith.constant dense<0.000000e+00> : vector<256x4xf32>
    %42 = tpu.matmul %39, %41, %cst_24 {dimension_numbers = #tpu.dot_dimension_numbers<[1], [0], [0], [1], [0, 0, 1, 1], [], []>} : vector<256x4xbf16>, vector<4x4xbf16>, vector<256x4xf32> -> vector<256x4xf32>
    %43 = vector.extract_strided_slice %38 {offsets = [16, 0], sizes = [256, 4], strides = [1, 1]} : vector<288x4xbf16> to vector<256x4xbf16>
    %c3 = arith.constant 3 : index
    %c0_25 = arith.constant 0 : index
    %c0_26 = arith.constant 0 : index
    %44 = vector.load %arg4[%c3, %c0_25, %c0_26] : memref<9x4x4xbf16, #tpu.memory_space<vmem>>, vector<1x4x4xbf16>
    %45 = vector.shape_cast %44 : vector<1x4x4xbf16> to vector<4x4xbf16>
    %cst_27 = arith.constant dense<0.000000e+00> : vector<256x4xf32>
    %46 = tpu.matmul %43, %45, %cst_27 {dimension_numbers = #tpu.dot_dimension_numbers<[1], [0], [0], [1], [0, 0, 1, 1], [], []>} : vector<256x4xbf16>, vector<4x4xbf16>, vector<256x4xf32> -> vector<256x4xf32>
    %47 = arith.addf %42, %46 : vector<256x4xf32>
    %48 = vector.extract_strided_slice %38 {offsets = [32, 0], sizes = [256, 4], strides = [1, 1]} : vector<288x4xbf16> to vector<256x4xbf16>
    %c6 = arith.constant 6 : index
    %c0_28 = arith.constant 0 : index
    %c0_29 = arith.constant 0 : index
    %49 = vector.load %arg4[%c6, %c0_28, %c0_29] : memref<9x4x4xbf16, #tpu.memory_space<vmem>>, vector<1x4x4xbf16>
    %50 = vector.shape_cast %49 : vector<1x4x4xbf16> to vector<4x4xbf16>
    %cst_30 = arith.constant dense<0.000000e+00> : vector<256x4xf32>
    %51 = tpu.matmul %48, %50, %cst_30 {dimension_numbers = #tpu.dot_dimension_numbers<[1], [0], [0], [1], [0, 0, 1, 1], [], []>} : vector<256x4xbf16>, vector<4x4xbf16>, vector<256x4xf32> -> vector<256x4xf32>
    %52 = arith.addf %47, %51 : vector<256x4xf32>
    %53 = arith.truncf %15 : vector<288x4xf32> to vector<288x4xbf16>
    %54 = vector.extract_strided_slice %53 {offsets = [0, 0], sizes = [256, 4], strides = [1, 1]} : vector<288x4xbf16> to vector<256x4xbf16>
    %c1 = arith.constant 1 : index
    %c0_31 = arith.constant 0 : index
    %c0_32 = arith.constant 0 : index
    %55 = vector.load %arg4[%c1, %c0_31, %c0_32] : memref<9x4x4xbf16, #tpu.memory_space<vmem>>, vector<1x4x4xbf16>
    %56 = vector.shape_cast %55 : vector<1x4x4xbf16> to vector<4x4xbf16>
    %cst_33 = arith.constant dense<0.000000e+00> : vector<256x4xf32>
    %57 = tpu.matmul %54, %56, %cst_33 {dimension_numbers = #tpu.dot_dimension_numbers<[1], [0], [0], [1], [0, 0, 1, 1], [], []>} : vector<256x4xbf16>, vector<4x4xbf16>, vector<256x4xf32> -> vector<256x4xf32>
    %58 = arith.addf %52, %57 : vector<256x4xf32>
    %59 = vector.extract_strided_slice %53 {offsets = [16, 0], sizes = [256, 4], strides = [1, 1]} : vector<288x4xbf16> to vector<256x4xbf16>
    %c4 = arith.constant 4 : index
    %c0_34 = arith.constant 0 : index
    %c0_35 = arith.constant 0 : index
    %60 = vector.load %arg4[%c4, %c0_34, %c0_35] : memref<9x4x4xbf16, #tpu.memory_space<vmem>>, vector<1x4x4xbf16>
    %61 = vector.shape_cast %60 : vector<1x4x4xbf16> to vector<4x4xbf16>
    %cst_36 = arith.constant dense<0.000000e+00> : vector<256x4xf32>
    %62 = tpu.matmul %59, %61, %cst_36 {dimension_numbers = #tpu.dot_dimension_numbers<[1], [0], [0], [1], [0, 0, 1, 1], [], []>} : vector<256x4xbf16>, vector<4x4xbf16>, vector<256x4xf32> -> vector<256x4xf32>
    %63 = arith.addf %58, %62 : vector<256x4xf32>
    %64 = vector.extract_strided_slice %53 {offsets = [32, 0], sizes = [256, 4], strides = [1, 1]} : vector<288x4xbf16> to vector<256x4xbf16>
    %c7 = arith.constant 7 : index
    %c0_37 = arith.constant 0 : index
    %c0_38 = arith.constant 0 : index
    %65 = vector.load %arg4[%c7, %c0_37, %c0_38] : memref<9x4x4xbf16, #tpu.memory_space<vmem>>, vector<1x4x4xbf16>
    %66 = vector.shape_cast %65 : vector<1x4x4xbf16> to vector<4x4xbf16>
    %cst_39 = arith.constant dense<0.000000e+00> : vector<256x4xf32>
    %67 = tpu.matmul %64, %66, %cst_39 {dimension_numbers = #tpu.dot_dimension_numbers<[1], [0], [0], [1], [0, 0, 1, 1], [], []>} : vector<256x4xbf16>, vector<4x4xbf16>, vector<256x4xf32> -> vector<256x4xf32>
    %68 = arith.addf %63, %67 : vector<256x4xf32>
    %c287_i32 = arith.constant 287 : i32
    %69 = tpu.dynamic_rotate %15 by %c287_i32 dim 0 : vector<288x4xf32>, i32 -> vector<288x4xf32>
    %c15_i32 = arith.constant 15 : i32
    %70 = vector.broadcast %c15_i32 : i32 to vector<288x4xi32>
    %71 = arith.cmpi eq, %32, %70 : vector<288x4xi32>
    %cst_40 = arith.constant 0.000000e+00 : f32
    %72 = vector.broadcast %cst_40 : f32 to vector<288x4xf32>
    %73 = arith.select %71, %72, %69 : vector<288x4xi1>, vector<288x4xf32>
    %74 = arith.truncf %73 : vector<288x4xf32> to vector<288x4xbf16>
    %75 = vector.extract_strided_slice %74 {offsets = [0, 0], sizes = [256, 4], strides = [1, 1]} : vector<288x4xbf16> to vector<256x4xbf16>
    %c2 = arith.constant 2 : index
    %c0_41 = arith.constant 0 : index
    %c0_42 = arith.constant 0 : index
    %76 = vector.load %arg4[%c2, %c0_41, %c0_42] : memref<9x4x4xbf16, #tpu.memory_space<vmem>>, vector<1x4x4xbf16>
    %77 = vector.shape_cast %76 : vector<1x4x4xbf16> to vector<4x4xbf16>
    %cst_43 = arith.constant dense<0.000000e+00> : vector<256x4xf32>
    %78 = tpu.matmul %75, %77, %cst_43 {dimension_numbers = #tpu.dot_dimension_numbers<[1], [0], [0], [1], [0, 0, 1, 1], [], []>} : vector<256x4xbf16>, vector<4x4xbf16>, vector<256x4xf32> -> vector<256x4xf32>
    %79 = arith.addf %68, %78 : vector<256x4xf32>
    %80 = vector.extract_strided_slice %74 {offsets = [16, 0], sizes = [256, 4], strides = [1, 1]} : vector<288x4xbf16> to vector<256x4xbf16>
    %c5 = arith.constant 5 : index
    %c0_44 = arith.constant 0 : index
    %c0_45 = arith.constant 0 : index
    %81 = vector.load %arg4[%c5, %c0_44, %c0_45] : memref<9x4x4xbf16, #tpu.memory_space<vmem>>, vector<1x4x4xbf16>
    %82 = vector.shape_cast %81 : vector<1x4x4xbf16> to vector<4x4xbf16>
    %cst_46 = arith.constant dense<0.000000e+00> : vector<256x4xf32>
    %83 = tpu.matmul %80, %82, %cst_46 {dimension_numbers = #tpu.dot_dimension_numbers<[1], [0], [0], [1], [0, 0, 1, 1], [], []>} : vector<256x4xbf16>, vector<4x4xbf16>, vector<256x4xf32> -> vector<256x4xf32>
    %84 = arith.addf %79, %83 : vector<256x4xf32>
    %85 = vector.extract_strided_slice %74 {offsets = [32, 0], sizes = [256, 4], strides = [1, 1]} : vector<288x4xbf16> to vector<256x4xbf16>
    %c8 = arith.constant 8 : index
    %c0_47 = arith.constant 0 : index
    %c0_48 = arith.constant 0 : index
    %86 = vector.load %arg4[%c8, %c0_47, %c0_48] : memref<9x4x4xbf16, #tpu.memory_space<vmem>>, vector<1x4x4xbf16>
    %87 = vector.shape_cast %86 : vector<1x4x4xbf16> to vector<4x4xbf16>
    %cst_49 = arith.constant dense<0.000000e+00> : vector<256x4xf32>
    %88 = tpu.matmul %85, %87, %cst_49 {dimension_numbers = #tpu.dot_dimension_numbers<[1], [0], [0], [1], [0, 0, 1, 1], [], []>} : vector<256x4xbf16>, vector<4x4xbf16>, vector<256x4xf32> -> vector<256x4xf32>
    %89 = arith.addf %84, %88 : vector<256x4xf32>
    %c0_50 = arith.constant 0 : index
    %c0_51 = arith.constant 0 : index
    %90 = vector.load %arg5[%c0_50, %c0_51] : memref<1x4xf32, #tpu.memory_space<vmem>>, vector<1x4xf32>
    %91 = vector.broadcast %90 : vector<1x4xf32> to vector<256x4xf32>
    %92 = arith.addf %89, %91 : vector<256x4xf32>
    %cst_52 = arith.constant 0.000000e+00 : f32
    %93 = vector.broadcast %cst_52 : f32 to vector<256x4xf32>
    %94 = arith.maximumf %92, %93 : vector<256x4xf32>
    %95 = arith.truncf %94 : vector<256x4xf32> to vector<256x4xbf16>
    %c0_53 = arith.constant 0 : index
    %c0_54 = arith.constant 0 : index
    %96 = vector.load %arg6[%c0_53, %c0_54] : memref<4x16xbf16, #tpu.memory_space<vmem>>, vector<4x16xbf16>
    %cst_55 = arith.constant dense<0.000000e+00> : vector<256x16xf32>
    %97 = tpu.matmul %95, %96, %cst_55 {dimension_numbers = #tpu.dot_dimension_numbers<[1], [0], [0], [1], [0, 0, 1, 1], [], []>} : vector<256x4xbf16>, vector<4x16xbf16>, vector<256x16xf32> -> vector<256x16xf32>
    %c0_56 = arith.constant 0 : index
    %c0_57 = arith.constant 0 : index
    %98 = vector.load %arg7[%c0_56, %c0_57] : memref<1x16xf32, #tpu.memory_space<vmem>>, vector<1x16xf32>
    %99 = vector.broadcast %98 : vector<1x16xf32> to vector<256x16xf32>
    %100 = arith.addf %97, %99 : vector<256x16xf32>
    %101 = arith.addf %100, %1 : vector<256x16xf32>
    %cst_58 = arith.constant 0.000000e+00 : f32
    %102 = vector.broadcast %cst_58 : f32 to vector<256x16xf32>
    %103 = arith.maximumf %101, %102 : vector<256x16xf32>
    %c0_59 = arith.constant 0 : index
    %c0_60 = arith.constant 0 : index
    %c0_61 = arith.constant 0 : index
    %104 = vector.load %arg8[%c0_59, %c0_60, %c0_61] : memref<1x256x16xf32, #tpu.memory_space<vmem>>, vector<1x256x16xf32>
    %105 = vector.shape_cast %104 : vector<1x256x16xf32> to vector<256x16xf32>
    %106 = vector.shape_cast %103 : vector<256x16xf32> to vector<1x256x16xf32>
    tpu.vector_store %arg8[%c0_59, %c0_60, %c0_61], %106 {strides = array<i32>} : memref<1x256x16xf32, #tpu.memory_space<vmem>>, vector<1x256x16xf32>,
    return
  }
  func.func @transform_0(%arg0: i32) -> (i32, i32, i32) {
    %c0_i32 = arith.constant 0 : i32
    %c0_i32_0 = arith.constant 0 : i32
    %c0_i32_1 = arith.constant 0 : i32
    return %arg0, %c0_i32, %c0_i32_0 : i32, i32, i32
  }
  func.func @transform_1(%arg0: i32) -> (i32, i32) {
    %c0_i32 = arith.constant 0 : i32
    %c0_i32_0 = arith.constant 0 : i32
    %c0_i32_1 = arith.constant 0 : i32
    return %c0_i32, %c0_i32_0 : i32, i32
  }
  func.func @transform_2(%arg0: i32) -> (i32, i32) {
    %c0_i32 = arith.constant 0 : i32
    %c0_i32_0 = arith.constant 0 : i32
    %c0_i32_1 = arith.constant 0 : i32
    return %c0_i32, %c0_i32_0 : i32, i32
  }
  func.func @transform_3(%arg0: i32) -> (i32, i32, i32) {
    %c0_i32 = arith.constant 0 : i32
    %c0_i32_0 = arith.constant 0 : i32
    %c0_i32_1 = arith.constant 0 : i32
    %c0_i32_2 = arith.constant 0 : i32
    return %c0_i32, %c0_i32_0, %c0_i32_1 : i32, i32, i32
  }
  func.func @transform_4(%arg0: i32) -> (i32, i32) {
    %c0_i32 = arith.constant 0 : i32
    %c0_i32_0 = arith.constant 0 : i32
    %c0_i32_1 = arith.constant 0 : i32
    return %c0_i32, %c0_i32_0 : i32, i32
  }
  func.func @transform_5(%arg0: i32) -> (i32, i32) {
    %c0_i32 = arith.constant 0 : i32
    %c0_i32_0 = arith.constant 0 : i32
    %c0_i32_1 = arith.constant 0 : i32
    return %c0_i32, %c0_i32_0 : i32, i32
  }
  func.func @transform_6(%arg0: i32) -> (i32, i32) {
    %c0_i32 = arith.constant 0 : i32
    %c0_i32_0 = arith.constant 0 : i32
    %c0_i32_1 = arith.constant 0 : i32
    return %c0_i32, %c0_i32_0 : i32, i32
  }
  func.func @transform_7(%arg0: i32) -> (i32, i32, i32) {
    %c0_i32 = arith.constant 0 : i32
    %c0_i32_0 = arith.constant 0 : i32
    %c0_i32_1 = arith.constant 0 : i32
    return %arg0, %c0_i32, %c0_i32_0 : i32, i32, i32
  }
}

</mosaic_0001>

<bundles_post_ra>
// kernel: tpu_custom_call.1
= control target key start
LH: loop header
LB: loop body
LE: loop exit
PB: predicated region body
PF: predicated region fallthrough
CT: control target
= control target key end

     0   :  { %s3632_s24 = smov 0   ;;  %s5467_s0 = inlined_call_operand.vmem [shape: f32[2,256,16], index: 0, kind: input, shape index: {}]   ;;  %s5468_s1 = inlined_call_operand.vmem [shape: bf16[16,4], index: 1, kind: input, shape index: {}]   ;;  %s5469_s2 = inlined_call_operand.vmem [shape: f32[1,4], index: 2, kind: input, shape index: {}]   ;;  %s5470_s3 = inlined_call_operand.vmem [shape: bf16[9,4,4], index: 3, kind: input, shape index: {}]   ;;  %s5471_s4 = inlined_call_operand.vmem [shape: f32[1,4], index: 4, kind: input, shape index: {}]   ;;  %s5472_s5 = inlined_call_operand.vmem [shape: bf16[4,16], index: 5, kind: input, shape index: {}]   ;;  %s5473_s6 = inlined_call_operand.vmem [shape: f32[1,16], index: 6, kind: input, shape index: {}]   ;;  %s5474_s7 = inlined_call_operand.vmem [shape: f32[2,256,16], index: 7, kind: output, shape index: {}]  }
   0x1 LB: > { %s3332_s25 = sadd.s32 4294967295, %s3589_s24   ;;  %p3336_p0 = scmp.ge.s32.totalorder %s3589_s24, 1  ;;  %s3589_s24 = sphi %s3632_s24, %s17_s24  }
   0x2   : > { %p237_p1 = scmp.lt.s32.totalorder %s3589_s24, 3 }
   0x4   : > { %p238_p2 = pnand %p3336_p0, %p237_p1 }
   0x6   : > { %241 = sbr.rel (%p238_p2) target bundleno = 1274 (0x4fa), region = 48 }
   0xb   : > { %v3533_v0 = vld [vmem:[%s5468_s1] sm:$0xff]  ;;  %p269_p3 = scmp.lt.s32.totalorder %s3332_s25, 1  ;;  %vm340_vm0 = vcmask 130048   ;;  %vm510_vm1 = vcmask 31744   ;;  %v3591_v21 = vmov 0.0   ;;  %v583_v23 = vlaneseq }
   0xc   : > { %396 = vmatpush.bf16.msra.mxu0 %v3533_v0  ;;  %3534 = vmatpush.bf16.msra.mxu3 %v3533_v0  ;;  %511 = vst.msk [vmem:[#allocation2] sm:$0xff] %vm510_vm1, %v3591_v21  ;;  %v1233_v35 = vld [vmem:[%s5470_s3] sm:$0x3]  ;;  %vm1364_vm4 = vcmask 1041408   ;;  %v3361_v48 = vld [vmem:[%s5470_s3 + $0x6] sm:$0x3] }
   0xd   : > { %s5768_s25 = smov (!%p269_p3, %s3332_s25), 1  ;;  %512 = vst.msk [vmem:[#allocation2 + $0x8] sm:$0xff] %vm510_vm1, %v3591_v21  ;;  %v3677_v24 = vshrl.u32 %v583_v23, 7  ;;  %v1466_v37 = vsel %vm1364_vm4, %v1233_v35, 0  ;;  %v1366_v49 = vsel %vm1364_vm4, %v3361_v48, 0 }
   0xe   : > { %s3531_s28 = sshll.u32 %s5768_s25, 8  ;;  %546 = vst.msk [vmem:[#allocation2 + $0x118] sm:$0xff] %vm510_vm1, %v3591_v21  ;;  %1475 = vmatpush.bf16.msra.mxu2 %v1466_v37  ;;  %1375 = vmatpush.bf16.msra.mxu1 %v1366_v49  ;;  %v3719_v52 = vld [vmem:[%s5469_s2] ss:$0 sm:$0xff] }
   0xf   : > { %s3651_s8 = scalar_lea.vmem %s5467_s0, %s3531_s28  ;;  %545 = vst.msk [vmem:[#allocation2 + $0x110] sm:$0xff] %vm510_vm1, %v3591_v21  ;;  %v624_v27 = vand.u32 15, %v3677_v24  ;;  %vm1088_vm2 = vcmp.lt.s32.totalorder %v3677_v24, 1  ;;  %v585_v60 = vadd.s32 8, %v3677_v24  ;;  %v586_v0 = vadd.s32 16, %v3677_v24  ;;  %s5273_s20 = scalar_lea.vmem %s5474_s7, %s3531_s28 }
  0x10   : > { %v280_v1 = vld [vmem:[%s3651_s8] sm:$0xff]  ;;  %v281_v2 = vld [vmem:[%s3651_s8 + $0x8] sm:$0xff]  ;;  %v282_v4 = vld [vmem:[%s3651_s8 + $0x10] sm:$0xff]  ;;  %3535 = vmatpush.bf16.msrb.mxu3 %v1366_v49  ;;  %vm2285_vm5 = vcmp.lt.s32.totalorder %v3677_v24, 7  ;;  %v587_v35 = vadd.s32 24, %v3677_v24 }
  0x11   : > { %v312_v3 = vpack.c.bf16 %v281_v2, %v280_v1  ;;  %v283_v5 = vld [vmem:[%s3651_s8 + $0x18] sm:$0xff]  ;;  %v284_v7 = vld [vmem:[%s3651_s8 + $0x20] sm:$0xff]  ;;  %v285_v8 = vld [vmem:[%s3651_s8 + $0x28] sm:$0xff]  ;;  %vm1125_vm3 = vcmp.eq.s32.totalorder %v624_v27, 0  ;;  %v631_v2 = vand.u32 15, %v585_v60 }
  0x12   : > { %v313_v6 = vpack.c.bf16 %v283_v5, %v282_v4  ;;  %v314_v9 = vpack.c.bf16 %v285_v8, %v284_v7  ;;  %v286_v10 = vld [vmem:[%s3651_s8 + $0x30] sm:$0xff]  ;;  %v287_v11 = vld [vmem:[%s3651_s8 + $0x38] sm:$0xff]  ;;  %v288_v13 = vld [vmem:[%s3651_s8 + $0x40] sm:$0xff]  ;;  %v638_v8 = vand.u32 15, %v586_v0 }
  0x13   : > { %3345 = vmatmul.msk.bf16.vlgmr.msra.gmra.mxu0 %vm340_vm0, %v312_v3  ;;  %v315_v12 = vpack.c.bf16 %v287_v11, %v286_v10  ;;  %v289_v14 = vld [vmem:[%s3651_s8 + $0x48] sm:$0xff]  ;;  %v290_v16 = vld [vmem:[%s3651_s8 + $0x50] sm:$0xff]  ;;  %v291_v17 = vld [vmem:[%s3651_s8 + $0x58] sm:$0xff]  ;;  %vm2323_vm6 = vcmp.eq.s32.totalorder %v631_v2, 15 }
  0x14   : > { %v316_v15 = vpack.c.bf16 %v289_v14, %v288_v13  ;;  %v317_v18 = vpack.c.bf16 %v291_v17, %v290_v16  ;;  %v292_v19 = vld [vmem:[%s3651_s8 + $0x60] sm:$0xff]  ;;  %v293_v20 = vld [vmem:[%s3651_s8 + $0x68] sm:$0xff]  ;;  %v294_v40 = vld [vmem:[%s3651_s8 + $0x70] sm:$0xff]  ;;  %vm1127_vm7 = vcmp.eq.s32.totalorder %v638_v8, 0 }
  0x15   : > { %v318_v22 = vpack.c.bf16 %v293_v20, %v292_v19  ;;  %v3680_v25 = vld [vmem:[#allocation2] sm:$0xff]  ;;  %v3682_v26 = vld [vmem:[#allocation2 + $0x8] sm:$0xff]  ;;  %v3686_v29 = vld [vmem:[#allocation2 + $0x118] sm:$0xff] }
  0x16   : > { %5499 = vst [vmem:[#allocation3_spill] sm:$0xff] %v3680_v25  ;;  %v1052_v28 = vrot.slane %v3680_v25, 7  ;;  %v1053_v30 = vrot.slane %v3682_v26, 7  ;;  %v5476_v31 = vrot.slane %v3686_v29, 7  ;;  %v295_v41 = vld [vmem:[%s3651_s8 + $0x78] sm:$0xff]  ;;  %v304_v45 = vld [vmem:[%s3651_s8 + $0xc0] sm:$0xff] }
  0x17   : > { %5500 = vst [vmem:[#allocation4_spill] sm:$0xff] %v3686_v29  ;;  %v319_v44 = vpack.c.bf16 %v295_v41, %v294_v40  ;;  %v305_v46 = vld [vmem:[%s3651_s8 + $0xc8] sm:$0xff]  ;;  %v296_v50 = vld [vmem:[%s3651_s8 + $0x80] sm:$0xff]  ;;  %v306_v57 = vld [vmem:[%s3651_s8 + $0xd0] sm:$0xff]  ;;  %v5475_v61 = vrot.slane %v3680_v25, 1  ;;  %v2250_v62 = vrot.slane %v3682_v26, 1 }
  0x18   : > { %v1123_v32 = vsel %vm1088_vm2, %v1052_v28, %v1053_v30  ;;  %v1124_v33 = vsel %vm1088_vm2, %v5476_v31, %v1052_v28  ;;  %v324_v47 = vpack.c.bf16 %v305_v46, %v304_v45  ;;  %v297_v51 = vld [vmem:[%s3651_s8 + $0x88] sm:$0xff]  ;;  %v307_v58 = vld [vmem:[%s3651_s8 + $0xd8] sm:$0xff]  ;;  %v298_v5 = vld [vmem:[%s3651_s8 + $0x90] sm:$0xff]  ;;  %v588_v41 = vadd.s32 32, %v3677_v24 }
  0x19   : > { %v1198_v34 = vpack.c.bf16 %v1123_v32, %v1123_v32  ;;  %v1161_v36 = vsel %vm1125_vm3, 0.0, %v1124_v33  ;;  %v320_v53 = vpack.c.bf16 %v297_v51, %v296_v50  ;;  %v325_v59 = vpack.c.bf16 %v307_v58, %v306_v57  ;;  %v308_v27 = vld [vmem:[%s3651_s8 + $0xe0] sm:$0xff]  ;;  %v309_v28 = vld [vmem:[%s3651_s8 + $0xe8] sm:$0xff] }
  0x1a   : > { %v1197_v38 = vpack.c.bf16 %v1161_v36, %v1161_v36  ;;  %3357 = vmatmul.msk.bf16.vlgmr.msra.gmra.mxu3 %vm340_vm0, %v324_v47  ;;  %v2320_v4 = vsel %vm2285_vm5, %v5475_v61, %v2250_v62  ;;  %v326_v33 = vpack.c.bf16 %v309_v28, %v308_v27  ;;  %v645_v45 = vand.u32 15, %v587_v35  ;;  %v300_v48 = vld [vmem:[%s3651_s8 + $0xa0] sm:$0xff]  ;;  %v301_v49 = vld [vmem:[%s3651_s8 + $0xa8] sm:$0xff] }
  0x1b   : > { %v1460_v39 = vunpack.c.l.b16 %v1198_v34  ;;  %3536 = vmatpush.bf16.msra.mxu3 %v1466_v37  ;;  %v2394_v11 = vpack.c.bf16 %v2320_v4, %v2320_v4  ;;  %v652_v51 = vand.u32 15, %v588_v41  ;;  %v3411_v57 = vld [vmem:[%s5470_s3 + $0x2] sm:$0x3]  ;;  %v322_v58 = vpack.c.bf16 %v301_v49, %v300_v48  ;;  %v303_v41 = vld [vmem:[%s3651_s8 + $0xb8] sm:$0xff] }
  0x1c   : > { %v1459_v42 = vunpack.c.l.b16 %v1197_v38  ;;  %vm2325_vm8 = vcmp.eq.s32.totalorder %v645_v45, 15  ;;  %v1858_v60 = vsel %vm1364_vm4, %v3411_v57, 0 }
  0x1d   : > { %v3751_v19 = vunpack.c.l.b16 %v2394_v11  ;;  %vm1129_vm9 = vcmp.eq.s32.totalorder %v652_v51, 0  ;;  %1867 = vmatpush.bf16.msrb.mxu0 %v1858_v60  ;;  %v311_v11 = vld [vmem:[%s3651_s8 + $0xf8] sm:$0xff] }
  0x1e   : > { %v1461_v43 = vpack.c.b16 %v1460_v39, %v1459_v42 }
  0x1f   : > { %5501 = vst [vmem:[#allocation5_spill] sm:$0xff] %v3751_v19 }
  0x20   : > { %3378 = vmatmul.msk.bf16.vlgmr.msra.gmra.mxu2 %vm510_vm1, %v1461_v43 }
  0x23   : > { %3346 = vmatmul.msk.bf16.gmra.mxu0 %vm340_vm0, %v313_v6  ;;  %v299_v6 = vld [vmem:[%s3651_s8 + $0x98] sm:$0xff] }
  0x2a   : > { %3358 = vmatmul.msk.bf16.gmra.mxu3 %vm340_vm0, %v325_v59 }
  0x33   : > { %3347 = vmatmul.msk.bf16.gmra.mxu0 %vm340_vm0, %v314_v9 }
  0x3a   : > { %3359 = vmatmul.msk.bf16.gmra.mxu3 %vm340_vm0, %v326_v33 }
  0x43   : > { %3348 = vmatmul.msk.bf16.gmra.mxu0 %vm340_vm0, %v315_v12  ;;  %v321_v12 = vpack.c.bf16 %v299_v6, %v298_v5 }
  0x53   : > { %3349 = vmatmul.msk.bf16.gmra.mxu0 %vm340_vm0, %v316_v15 }
  0x63   : > { %3350 = vmatmul.msk.bf16.gmra.mxu0 %vm340_vm0, %v317_v18 }
  0x73   : > { %3351 = vmatmul.msk.bf16.gmra.mxu0 %vm340_vm0, %v318_v22 }
  0x83   : > { %3352 = vmatmul.msk.bf16.gmra.mxu0 %vm340_vm0, %v319_v44 }
  0x90   : > { %v398_v54 = vpop.f32.mrf.mxu0 }
  0x91   : > { %v399_v55 = vadd.f32 %v3719_v52, %v398_v54 }
  0x93   : > { %v478_v56 = vmax.f32 %v399_v55, 0.0  ;;  %3353 = vmatmul.msk.bf16.gmra.mxu0 %vm340_vm0, %v320_v53  ;;  %v1691_v55 = vpack.c.bf16 %v3680_v25, %v3680_v25 }
  0x95   : > { %513 = vst.msk [vmem:[#allocation2 + $0x10] sm:$0xff] %vm510_vm1, %v478_v56  ;;  %v1692_v56 = vpack.c.bf16 %v3682_v26, %v3682_v26 }
  0x97   : > { %v3796_v0 = vunpack.c.l.b16 %v1692_v56 }
  0x98   : > { %v400_v63 = vpop.f32.mrf.mxu0 }
  0x99   : > { %v401_v1 = vadd.f32 %v3719_v52, %v400_v63 }
  0x9b   : > { %v479_v3 = vmax.f32 %v401_v1, 0.0 }
  0x9c   : > { %v3739_v7 = vld [vmem:[#allocation2 + $0x10] sm:$0xff] }
  0x9d   : > { %514 = vst.msk [vmem:[#allocation2 + $0x18] sm:$0xff] %vm510_vm1, %v479_v3  ;;  %v1054_v9 = vrot.slane %v3739_v7, 7  ;;  %v2251_v10 = vrot.slane %v3739_v7, 1 }
  0x9f   : > { %v2319_v13 = vsel %vm2285_vm5, %v2250_v62, %v2251_v10  ;;  %v1122_v15 = vsel %vm1088_vm2, %v1053_v30, %v1054_v9  ;;  %v3792_v62 = vunpack.c.l.b16 %v1691_v55 }
  0xa0   : > { %v403_v14 = vpop.f32.mrf.mxu0  ;;  %v2359_v16 = vsel %vm2323_vm6, 0.0, %v2319_v13  ;;  %v1163_v21 = vsel %vm1127_vm7, 0.0, %v1122_v15 }
  0xa1   : > { %v404_v17 = vadd.f32 %v3719_v52, %v403_v14  ;;  %v2395_v18 = vpack.c.bf16 %v2359_v16, %v2359_v16  ;;  %v1199_v34 = vpack.c.bf16 %v1163_v21, %v1163_v21  ;;  %v1793_v4 = vpack.c.b16 %v3796_v0, %v3792_v62 }
  0xa2   : > { %v589_v16 = vadd.s32 40, %v3677_v24 }
  0xa3   : > { %v480_v20 = vmax.f32 %v404_v17, 0.0  ;;  %3354 = vmatmul.msk.bf16.gmra.mxu0 %vm340_vm0, %v321_v12  ;;  %v3754_v22 = vunpack.c.l.b16 %v2395_v18  ;;  %v1268_v43 = vunpack.c.l.b16 %v1199_v34 }
  0xa4   : > { %v3756_v23 = vld [vmem:[#allocation2 + $0x18] sm:$0xff]  ;;  %v659_v34 = vand.u32 15, %v589_v16 }
  0xa5   : > { %5502 = vst [vmem:[#allocation6_spill] sm:$0xff] %v3754_v22  ;;  %v1055_v30 = vrot.slane %v3756_v23, 7  ;;  %v2252_v32 = vrot.slane %v3756_v23, 1 }
  0xa6   : > { %515 = vst.msk [vmem:[#allocation2 + $0x20] sm:$0xff] %vm510_vm1, %v480_v20  ;;  %vm2327_vm10 = vcmp.eq.s32.totalorder %v659_v34, 15 }
  0xa7   : > { %v1121_v37 = vsel %vm1088_vm2, %v1054_v9, %v1055_v30  ;;  %v2318_v38 = vsel %vm2285_vm5, %v2251_v10, %v2252_v32  ;;  %v310_v10 = vld [vmem:[%s3651_s8 + $0xf0] sm:$0xff] }
  0xa8   : > { %v405_v39 = vpop.f32.mrf.mxu0  ;;  %v1200_v40 = vpack.c.bf16 %v1121_v37, %v1121_v37  ;;  %v2396_v1 = vpack.c.bf16 %v2318_v38, %v2318_v38  ;;  %v327_v15 = vpack.c.bf16 %v311_v11, %v310_v10  ;;  %v592_v11 = vadd.s32 64, %v3677_v24 }
  0xa9   : > { %v406_v42 = vadd.f32 %v3719_v52, %v405_v39 }
  0xaa   : > { %v1269_v44 = vunpack.c.l.b16 %v1200_v40  ;;  %v2466_v12 = vunpack.c.l.b16 %v2396_v1  ;;  %3360 = vmatmul.msk.bf16.gmra.mxu3 %vm340_vm0, %v327_v15  ;;  %v302_v40 = vld [vmem:[%s3651_s8 + $0xb0] sm:$0xff]  ;;  %v591_v1 = vadd.s32 56, %v3677_v24 }
  0xab   : > { %v481_v46 = vmax.f32 %v406_v42, 0.0 }
  0xac   : > { %v1300_v47 = vpack.c.b16 %v1269_v44, %v1268_v43 }
  0xad   : > { %v3775_v50 = vld [vmem:[#allocation2 + $0x20] sm:$0xff]  ;;  %516 = vst.msk [vmem:[#allocation2 + $0x28] sm:$0xff] %vm510_vm1, %v481_v46  ;;  %v323_v46 = vpack.c.bf16 %v303_v41, %v302_v40 }
  0xae   : > { %v1056_v53 = vrot.slane %v3775_v50, 7  ;;  %v2253_v54 = vrot.slane %v3775_v50, 1  ;;  %3362 = vmatmul.msk.bf16.vlgmr.msra.gmra.mxu1 %vm510_vm1, %v1300_v47  ;;  %3379 = vmatmul.msk.bf16.gmra.mxu2 %vm510_vm1, %v1300_v47 }
  0xb0   : > { %v2317_v59 = vsel %vm2285_vm5, %v2252_v32, %v2253_v54  ;;  %v408_v26 = vpop.f32.mrf.mxu0  ;;  %v1120_v63 = vsel %vm1088_vm2, %v1055_v30, %v1056_v53  ;;  %v590_v32 = vadd.s32 48, %v3677_v24 }
  0xb1   : > { %v409_v2 = vadd.f32 %v3719_v52, %v408_v26  ;;  %v2361_v3 = vsel %vm2325_vm8, 0.0, %v2317_v59  ;;  %v1165_v8 = vsel %vm1129_vm9, 0.0, %v1120_v63 }
  0xb2   : > { %v2397_v5 = vpack.c.bf16 %v2361_v3, %v2361_v3  ;;  %v1201_v18 = vpack.c.bf16 %v1165_v8, %v1165_v8  ;;  %v666_v43 = vand.u32 15, %v590_v32 }
  0xb3   : > { %v482_v6 = vmax.f32 %v409_v2, 0.0  ;;  %3355 = vmatmul.msk.bf16.gmra.mxu0 %vm340_vm0, %v322_v58 }
  0xb4   : > { %v3802_v9 = vld [vmem:[#allocation2 + $0x28] sm:$0xff]  ;;  %v2467_v13 = vunpack.c.l.b16 %v2397_v5  ;;  %v1270_v35 = vunpack.c.l.b16 %v1201_v18  ;;  %vm1131_vm11 = vcmp.eq.s32.totalorder %v666_v43, 0 }
  0xb5   : > { %517 = vst.msk [vmem:[#allocation2 + $0x30] sm:$0xff] %vm510_vm1, %v482_v6  ;;  %v1057_v14 = vrot.slane %v3802_v9, 7  ;;  %v2254_v17 = vrot.slane %v3802_v9, 1 }
  0xb6   : > { %v3810_v20 = vpack.c.b16 %v2467_v13, %v2466_v12  ;;  %v673_v13 = vand.u32 15, %v591_v1  ;;  %v1693_v1 = vpack.c.bf16 %v3739_v7, %v3739_v7 }
  0xb7   : > { %v1119_v21 = vsel %vm1088_vm2, %v1056_v53, %v1057_v14  ;;  %v2316_v27 = vsel %vm2285_vm5, %v2253_v54, %v2254_v17 }
  0xb8   : > { %v410_v28 = vpop.f32.mrf.mxu0  ;;  %v1202_v30 = vpack.c.bf16 %v1119_v21, %v1119_v21  ;;  %v2398_v48 = vpack.c.bf16 %v2316_v27, %v2316_v27  ;;  %v680_v21 = vand.u32 15, %v592_v11  ;;  %vm2329_vm12 = vcmp.eq.s32.totalorder %v673_v13, 15 }
  0xb9   : > { %v411_v33 = vadd.f32 %v3719_v52, %v410_v28  ;;  %v1763_v7 = vunpack.c.l.b16 %v1693_v1 }
  0xba   : > { %v1271_v37 = vunpack.c.l.b16 %v1202_v30  ;;  %v2468_v58 = vunpack.c.l.b16 %v2398_v48  ;;  %vm1133_vm13 = vcmp.eq.s32.totalorder %v680_v21, 0  ;;  %v593_v48 = vadd.s32 72, %v3677_v24 }
  0xbb   : > { %v483_v38 = vmax.f32 %v411_v33, 0.0 }
  0xbc   : > { %v3819_v39 = vpack.c.b16 %v1271_v37, %v1270_v35  ;;  %v3823_v42 = vld [vmem:[#allocation2 + $0x30] sm:$0xff] }
  0xbd   : > { %518 = vst.msk [vmem:[#allocation2 + $0x38] sm:$0xff] %vm510_vm1, %v483_v38  ;;  %v1058_v44 = vrot.slane %v3823_v42, 7  ;;  %v2255_v45 = vrot.slane %v3823_v42, 1 }
  0xbe   : > { %3363 = vmatmul.msk.bf16.gmra.mxu1 %vm510_vm1, %v3819_v39  ;;  %3380 = vmatmul.msk.bf16.gmra.mxu2 %vm510_vm1, %v3819_v39 }
  0xbf   : > { %v2315_v47 = vsel %vm2285_vm5, %v2254_v17, %v2255_v45  ;;  %v1118_v51 = vsel %vm1088_vm2, %v1057_v14, %v1058_v44 }
  0xc0   : > { %v413_v49 = vpop.f32.mrf.mxu0  ;;  %v2363_v53 = vsel %vm2327_vm10, 0.0, %v2315_v47  ;;  %v1167_v57 = vsel %vm1131_vm11, 0.0, %v1118_v51 }
  0xc1   : > { %v414_v54 = vadd.f32 %v3719_v52, %v413_v49  ;;  %v2399_v55 = vpack.c.bf16 %v2363_v53, %v2363_v53  ;;  %v1203_v3 = vpack.c.bf16 %v1167_v57, %v1167_v57  ;;  %v687_v57 = vand.u32 15, %v593_v48 }
  0xc2   : > { %v596_v48 = vadd.s32 96, %v3677_v24 }
  0xc3   : > { %v484_v56 = vmax.f32 %v414_v54, 0.0  ;;  %3356 = vmatmul.msk.bf16.gmra.mxu0 %vm340_vm0, %v323_v46  ;;  %v2469_v59 = vunpack.c.l.b16 %v2399_v55  ;;  %v1272_v14 = vunpack.c.l.b16 %v1203_v3  ;;  %v594_v54 = vadd.s32 80, %v3677_v24 }
  0xc4   : > { %v3838_v60 = vld [vmem:[#allocation2 + $0x38] sm:$0xff]  ;;  %vm2331_vm14 = vcmp.eq.s32.totalorder %v687_v57, 15  ;;  %v708_v57 = vand.u32 15, %v596_v48 }
  0xc5   : > { %519 = vst.msk [vmem:[#allocation2 + $0x40] sm:$0xff] %vm510_vm1, %v484_v56  ;;  %v1059_v26 = vrot.slane %v3838_v60, 7  ;;  %v3842_v63 = vpack.c.b16 %v2469_v59, %v2468_v58  ;;  %v2256_v2 = vrot.slane %v3838_v60, 1  ;;  %v1694_v56 = vpack.c.bf16 %v3756_v23, %v3756_v23 }
  0xc6   : > { %vm1137_vm6 = vcmp.eq.s32.totalorder %v708_v57, 0 }
  0xc7   : > { %v1117_v5 = vsel %vm1088_vm2, %v1058_v44, %v1059_v26  ;;  %v2314_v6 = vsel %vm2285_vm5, %v2255_v45, %v2256_v2 }
  0xc8   : > { %v415_v8 = vpop.f32.mrf.mxu0  ;;  %v1204_v10 = vpack.c.bf16 %v1117_v5, %v1117_v5  ;;  %v2400_v32 = vpack.c.bf16 %v2314_v6, %v2314_v6  ;;  %v694_v5 = vand.u32 15, %v594_v54  ;;  %v1764_v6 = vunpack.c.l.b16 %v1694_v56 }
  0xc9   : > { %v416_v12 = vadd.f32 %v3719_v52, %v415_v8  ;;  %v1695_v54 = vpack.c.bf16 %v3775_v50, %v3775_v50 }
  0xca   : > { %v1273_v15 = vunpack.c.l.b16 %v1204_v10  ;;  %v2470_v43 = vunpack.c.l.b16 %v2400_v32  ;;  %vm1135_vm15 = vcmp.eq.s32.totalorder %v694_v5, 0 }
  0xcb   : > { %v485_v16 = vmax.f32 %v416_v12, 0.0  ;;  %v1765_v50 = vunpack.c.l.b16 %v1695_v54 }
  0xcc   : > { %v3852_v17 = vpack.c.b16 %v1273_v15, %v1272_v14  ;;  %v3854_v18 = vld [vmem:[#allocation2 + $0x40] sm:$0xff] }
  0xcd   : > { %520 = vst.msk [vmem:[#allocation2 + $0x48] sm:$0xff] %vm510_vm1, %v485_v16  ;;  %v1060_v27 = vrot.slane %v3854_v18, 7  ;;  %v2257_v28 = vrot.slane %v3854_v18, 1  ;;  %v3906_v16 = vpack.c.b16 %v1764_v6, %v1763_v7 }
  0xce   : > { %3364 = vmatmul.msk.bf16.gmra.mxu1 %vm510_vm1, %v3852_v17  ;;  %3381 = vmatmul.msk.bf16.gmra.mxu2 %vm510_vm1, %v3852_v17 }
  0xcf   : > { %v2313_v30 = vsel %vm2285_vm5, %v2256_v2, %v2257_v28  ;;  %v1116_v34 = vsel %vm1088_vm2, %v1059_v26, %v1060_v27 }
  0xd0   : > { %v418_v33 = vpop.f32.mrf.mxu0  ;;  %v2365_v35 = vsel %vm2329_vm12, 0.0, %v2313_v30  ;;  %v1169_v41 = vsel %vm1133_vm13, 0.0, %v1116_v34 }
  0xd1   : > { %v419_v37 = vadd.f32 %v3719_v52, %v418_v33  ;;  %v2401_v38 = vpack.c.bf16 %v2365_v35, %v2365_v35  ;;  %v1205_v51 = vpack.c.bf16 %v1169_v41, %v1169_v41 }
  0xd3   : > { %v486_v40 = vmax.f32 %v419_v37, 0.0  ;;  %3412 = vmatmul.msk.bf16.vlgmr.msrb.gmra.mxu0 %vm510_vm1, %v1793_v4  ;;  %v2471_v44 = vunpack.c.l.b16 %v2401_v38  ;;  %v1274_v58 = vunpack.c.l.b16 %v1205_v51  ;;  %v595_v37 = vadd.s32 88, %v3677_v24 }
  0xd4   : > { %v3872_v45 = vld [vmem:[#allocation2 + $0x48] sm:$0xff]  ;;  %v1696_v51 = vpack.c.bf16 %v3802_v9, %v3802_v9 }
  0xd5   : > { %521 = vst.msk [vmem:[#allocation2 + $0x50] sm:$0xff] %vm510_vm1, %v486_v40  ;;  %v1061_v46 = vrot.slane %v3872_v45, 7  ;;  %v3876_v47 = vpack.c.b16 %v2471_v44, %v2470_v43  ;;  %v2258_v49 = vrot.slane %v3872_v45, 1 }
  0xd7   : > { %v1115_v62 = vsel %vm1088_vm2, %v1060_v27, %v1061_v46  ;;  %v2312_v0 = vsel %vm2285_vm5, %v2257_v28, %v2258_v49 }
  0xd8   : > { %v420_v4 = vpop.f32.mrf.mxu0  ;;  %v1206_v53 = vpack.c.bf16 %v1115_v62, %v1115_v62  ;;  %v2402_v11 = vpack.c.bf16 %v2312_v0, %v2312_v0  ;;  %v701_v62 = vand.u32 15, %v595_v37 }
  0xd9   : > { %v421_v55 = vadd.f32 %v3719_v52, %v420_v4 }
  0xda   : > { %v1275_v59 = vunpack.c.l.b16 %v1206_v53  ;;  %v2472_v30 = vunpack.c.l.b16 %v2402_v11  ;;  %vm2333_vm3 = vcmp.eq.s32.totalorder %v701_v62, 15  ;;  %v1697_v62 = vpack.c.bf16 %v3823_v42, %v3823_v42 }
  0xdb   : > { %v487_v26 = vmax.f32 %v421_v55, 0.0 }
  0xdc   : > { %v3890_v2 = vpack.c.b16 %v1275_v59, %v1274_v58  ;;  %v3892_v3 = vld [vmem:[#allocation2 + $0x50] sm:$0xff]  ;;  %v1766_v58 = vunpack.c.l.b16 %v1696_v51  ;;  %v1767_v42 = vunpack.c.l.b16 %v1697_v62  ;;  %v458_v62 = vpop.f32.mrf.mxu3 }
  0xdd   : > { %522 = vst.msk [vmem:[#allocation2 + $0x58] sm:$0xff] %vm510_vm1, %v487_v26  ;;  %v1062_v8 = vrot.slane %v3892_v3, 7  ;;  %v2259_v10 = vrot.slane %v3892_v3, 1 }
  0xde   : > { %3365 = vmatmul.msk.bf16.gmra.mxu1 %vm510_vm1, %v3890_v2  ;;  %3382 = vmatmul.msk.bf16.gmra.mxu2 %vm510_vm1, %v3890_v2  ;;  %v3944_v7 = vpack.c.b16 %v1766_v58, %v1765_v50 }
  0xdf   : > { %v2311_v23 = vsel %vm2285_vm5, %v2258_v49, %v2259_v10  ;;  %v1114_v13 = vsel %vm1088_vm2, %v1061_v46, %v1062_v8 }
  0xe0   : > { %v423_v12 = vpop.f32.mrf.mxu0  ;;  %v2367_v14 = vsel %vm2331_vm14, 0.0, %v2311_v23  ;;  %v1171_v28 = vsel %vm1135_vm15, 0.0, %v1114_v13 }
  0xe1   : > { %v424_v15 = vadd.f32 %v3719_v52, %v423_v12  ;;  %v2403_v21 = vpack.c.bf16 %v2367_v14, %v2367_v14  ;;  %v1207_v40 = vpack.c.bf16 %v1171_v28, %v1171_v28  ;;  %v597_v28 = vadd.s32 104, %v3677_v24 }
  0xe3   : > { %v488_v27 = vmax.f32 %v424_v15, 0.0  ;;  %3413 = vmatmul.msk.bf16.gmra.mxu0 %vm510_vm1, %v3906_v16  ;;  %v2473_v32 = vunpack.c.l.b16 %v2403_v21  ;;  %v1276_v0 = vunpack.c.l.b16 %v1207_v40 }
  0xe4   : > { %v3910_v33 = vld [vmem:[#allocation2 + $0x58] sm:$0xff] }
  0xe5   : > { %523 = vst.msk [vmem:[#allocation2 + $0x60] sm:$0xff] %vm510_vm1, %v488_v27  ;;  %v1063_v34 = vrot.slane %v3910_v33, 7  ;;  %v3914_v35 = vpack.c.b16 %v2473_v32, %v2472_v30  ;;  %v2260_v38 = vrot.slane %v3910_v33, 1 }
  0xe7   : > { %v1113_v41 = vsel %vm1088_vm2, %v1062_v8, %v1063_v34  ;;  %v2310_v43 = vsel %vm2285_vm5, %v2259_v10, %v2260_v38 }
  0xe8   : > { %v425_v44 = vpop.f32.mrf.mxu0  ;;  %v1208_v46 = vpack.c.bf16 %v1113_v41, %v1113_v41  ;;  %v2404_v1 = vpack.c.bf16 %v2310_v43, %v2310_v43  ;;  %v598_v41 = vadd.s32 112, %v3677_v24 }
  0xe9   : > { %v426_v49 = vadd.f32 %v3719_v52, %v425_v44  ;;  %v1698_v44 = vpack.c.bf16 %v3838_v60, %v3838_v60 }
  0xea   : > { %v1277_v4 = vunpack.c.l.b16 %v1208_v46  ;;  %v2474_v13 = vunpack.c.l.b16 %v2404_v1  ;;  %v715_v46 = vand.u32 15, %v597_v28 }
  0xeb   : > { %v489_v53 = vmax.f32 %v426_v49, 0.0  ;;  %v1768_v54 = vunpack.c.l.b16 %v1698_v44 }
  0xec   : > { %v3928_v55 = vpack.c.b16 %v1277_v4, %v1276_v0  ;;  %v3930_v56 = vld [vmem:[#allocation2 + $0x60] sm:$0xff]  ;;  %vm2335_vm7 = vcmp.eq.s32.totalorder %v715_v46, 15 }
  0xed   : > { %524 = vst.msk [vmem:[#allocation2 + $0x68] sm:$0xff] %vm510_vm1, %v489_v53  ;;  %v1064_v59 = vrot.slane %v3930_v56, 7  ;;  %v2261_v26 = vrot.slane %v3930_v56, 1  ;;  %v722_v53 = vand.u32 15, %v598_v41  ;;  %v600_v41 = vadd.s32 128, %v3677_v24 }
  0xee   : > { %3366 = vmatmul.msk.bf16.gmra.mxu1 %vm510_vm1, %v3928_v55  ;;  %3383 = vmatmul.msk.bf16.gmra.mxu2 %vm510_vm1, %v3928_v55 }
  0xef   : > { %v2309_v9 = vsel %vm2285_vm5, %v2260_v38, %v2261_v26  ;;  %v1112_v6 = vsel %vm1088_vm2, %v1063_v34, %v1064_v59  ;;  %vm1139_vm8 = vcmp.eq.s32.totalorder %v722_v53, 0 }
  0xf0   : > { %v428_v5 = vpop.f32.mrf.mxu0  ;;  %v2369_v8 = vsel %vm2333_vm3, 0.0, %v2309_v9  ;;  %v1173_v12 = vsel %vm1137_vm6, 0.0, %v1112_v6 }
  0xf1   : > { %v429_v10 = vadd.f32 %v3719_v52, %v428_v5  ;;  %v2405_v23 = vpack.c.bf16 %v2369_v8, %v2369_v8  ;;  %v1209_v32 = vpack.c.bf16 %v1173_v12, %v1173_v12  ;;  %v3982_v5 = vpack.c.b16 %v1768_v54, %v1767_v42  ;;  %v3428_v42 = vld [vmem:[%s5470_s3 + $0x8] sm:$0x3] }
  0xf3   : > { %v490_v11 = vmax.f32 %v429_v10, 0.0  ;;  %3414 = vmatmul.msk.bf16.gmra.mxu0 %vm510_vm1, %v3944_v7  ;;  %v2475_v14 = vunpack.c.l.b16 %v2405_v23  ;;  %v1278_v48 = vunpack.c.l.b16 %v1209_v32 }
  0xf4   : > { %v3948_v15 = vld [vmem:[#allocation2 + $0x68] sm:$0xff] }
  0xf5   : > { %525 = vst.msk [vmem:[#allocation2 + $0x70] sm:$0xff] %vm510_vm1, %v490_v11  ;;  %v1065_v21 = vrot.slane %v3948_v15, 7  ;;  %v3952_v27 = vpack.c.b16 %v2475_v14, %v2474_v13  ;;  %v2262_v30 = vrot.slane %v3948_v15, 1 }
  0xf7   : > { %v1111_v34 = vsel %vm1088_vm2, %v1064_v59, %v1065_v21  ;;  %v2308_v37 = vsel %vm2285_vm5, %v2261_v26, %v2262_v30 }
  0xf8   : > { %v430_v38 = vpop.f32.mrf.mxu0  ;;  %v1210_v40 = vpack.c.bf16 %v1111_v34, %v1111_v34  ;;  %v2406_v59 = vpack.c.bf16 %v2308_v37, %v2308_v37 }
  0xf9   : > { %v431_v43 = vadd.f32 %v3719_v52, %v430_v38 }
  0xfa   : > { %v1279_v49 = vunpack.c.l.b16 %v1210_v40  ;;  %v2476_v23 = vunpack.c.l.b16 %v2406_v59  ;;  %v1700_v40 = vpack.c.bf16 %v3872_v45, %v3872_v45 }
  0xfb   : > { %v491_v51 = vmax.f32 %v431_v43, 0.0 }
  0xfc   : > { %v3966_v0 = vpack.c.b16 %v1279_v49, %v1278_v48  ;;  %v3968_v4 = vld [vmem:[#allocation2 + $0x70] sm:$0xff]  ;;  %v1770_v54 = vunpack.c.l.b16 %v1700_v40 }
  0xfd   : > { %526 = vst.msk [vmem:[#allocation2 + $0x78] sm:$0xff] %vm510_vm1, %v491_v51  ;;  %v1066_v57 = vrot.slane %v3968_v4, 7  ;;  %v2263_v58 = vrot.slane %v3968_v4, 1  ;;  %v1699_v51 = vpack.c.bf16 %v3854_v18, %v3854_v18  ;;  %v1992_v18 = vsel %vm1364_vm4, %v3428_v42, 0 }
  0xfe   : > { %3367 = vmatmul.msk.bf16.gmra.mxu1 %vm510_vm1, %v3966_v0  ;;  %3384 = vmatmul.msk.bf16.gmra.mxu2 %vm510_vm1, %v3966_v0 }
  0xff   : > { %v2307_v60 = vsel %vm2285_vm5, %v2262_v30, %v2263_v58  ;;  %v1110_v50 = vsel %vm1088_vm2, %v1065_v21, %v1066_v57  ;;  %v599_v21 = vadd.s32 120, %v3677_v24  ;;  %2001 = vmatpush.bf16.msrb.mxu1 %v1992_v18 }
 0x100   : > { %v433_v26 = vpop.f32.mrf.mxu0  ;;  %v2371_v9 = vsel %vm2335_vm7, 0.0, %v2307_v60  ;;  %v1175_v10 = vsel %vm1139_vm8, 0.0, %v1110_v50  ;;  %v459_v60 = vadd.f32 %v3719_v52, %v458_v62 }
 0x101   : > { %v434_v1 = vadd.f32 %v3719_v52, %v433_v26  ;;  %v2407_v6 = vpack.c.bf16 %v2371_v9, %v2371_v9  ;;  %v1211_v30 = vpack.c.bf16 %v1175_v10, %v1175_v10  ;;  %v729_v44 = vand.u32 15, %v599_v21 }
 0x102   : > { %v1769_v26 = vunpack.c.l.b16 %v1699_v51  ;;  %v502_v50 = vmax.f32 %v459_v60, 0.0 }
 0x103   : > { %v492_v8 = vmax.f32 %v434_v1, 0.0  ;;  %3415 = vmatmul.msk.bf16.gmra.mxu0 %vm510_vm1, %v3982_v5  ;;  %v2477_v11 = vunpack.c.l.b16 %v2407_v6  ;;  %v1280_v46 = vunpack.c.l.b16 %v1211_v30  ;;  %vm2337_vm9 = vcmp.eq.s32.totalorder %v729_v44, 15 }
 0x104   : > { %v3986_v12 = vld [vmem:[#allocation2 + $0x78] sm:$0xff]  ;;  %537 = vst.msk [vmem:[#allocation2 + $0xd0] sm:$0xff] %vm510_vm1, %v502_v50 }
 0x105   : > { %527 = vst.msk [vmem:[#allocation2 + $0x80] sm:$0xff] %vm510_vm1, %v492_v8  ;;  %v1067_v13 = vrot.slane %v3986_v12, 7  ;;  %v3990_v14 = vpack.c.b16 %v2477_v11, %v2476_v23  ;;  %v2264_v28 = vrot.slane %v3986_v12, 1  ;;  %v4025_v11 = vpack.c.b16 %v1770_v54, %v1769_v26 }
 0x106   : > { %v1702_v54 = vpack.c.bf16 %v3910_v33, %v3910_v33 }
 0x107   : > { %5503 = vst [vmem:[#allocation7_spill] sm:$0xff] %v3990_v14  ;;  %v1109_v32 = vsel %vm1088_vm2, %v1066_v57, %v1067_v13  ;;  %v2306_v34 = vsel %vm2285_vm5, %v2263_v58, %v2264_v28  ;;  %v736_v58 = vand.u32 15, %v600_v41 }
 0x108   : > { %v435_v37 = vpop.f32.mrf.mxu0  ;;  %v1212_v38 = vpack.c.bf16 %v1109_v32, %v1109_v32  ;;  %v2408_v1 = vpack.c.bf16 %v2306_v34, %v2306_v34  ;;  %v1772_v33 = vunpack.c.l.b16 %v1702_v54 }
 0x109   : > { %v436_v43 = vadd.f32 %v3719_v52, %v435_v37  ;;  %vm1141_vm10 = vcmp.eq.s32.totalorder %v736_v58, 0  ;;  %v602_v58 = vadd.s32 144, %v3677_v24 }
 0x10a   : > { %v1281_v48 = vunpack.c.l.b16 %v1212_v38  ;;  %v2478_v34 = vunpack.c.l.b16 %v2408_v1 }
 0x10b   : > { %v493_v49 = vmax.f32 %v436_v43, 0.0  ;;  %v601_v43 = vadd.s32 136, %v3677_v24 }
 0x10c   : > { %v4004_v53 = vpack.c.b16 %v1281_v48, %v1280_v46  ;;  %v4006_v57 = vld [vmem:[#allocation2 + $0x80] sm:$0xff] }
 0x10d   : > { %528 = vst.msk [vmem:[#allocation2 + $0x88] sm:$0xff] %vm510_vm1, %v493_v49  ;;  %v1068_v45 = vrot.slane %v4006_v57, 7  ;;  %v2265_v59 = vrot.slane %v4006_v57, 1  ;;  %v743_v18 = vand.u32 15, %v601_v43 }
 0x10e   : > { %5504 = vst [vmem:[#allocation8_spill] sm:$0xff] %v4004_v53  ;;  %3368 = vmatmul.msk.bf16.gmra.mxu1 %vm510_vm1, %v4004_v53  ;;  %3385 = vmatmul.msk.bf16.gmra.mxu2 %vm510_vm1, %v4004_v53 }
 0x10f   : > { %v2305_v9 = vsel %vm2285_vm5, %v2264_v28, %v2265_v59  ;;  %v1108_v8 = vsel %vm1088_vm2, %v1067_v13, %v1068_v45  ;;  %v460_v28 = vpop.f32.mrf.mxu3  ;;  %vm2339_vm11 = vcmp.eq.s32.totalorder %v743_v18, 15 }
 0x110   : > { %v438_v6 = vpop.f32.mrf.mxu0  ;;  %v2373_v10 = vsel %vm2337_vm9, 0.0, %v2305_v9  ;;  %v1177_v32 = vsel %vm1141_vm10, 0.0, %v1108_v8  ;;  %v461_v40 = vadd.f32 %v3719_v52, %v460_v28 }
 0x111   : > { %v439_v23 = vadd.f32 %v3719_v52, %v438_v6  ;;  %v2409_v21 = vpack.c.bf16 %v2373_v10, %v2373_v10  ;;  %v1213_v44 = vpack.c.bf16 %v1177_v32, %v1177_v32  ;;  %v750_v10 = vand.u32 15, %v602_v58 }
 0x112   : > { %v503_v49 = vmax.f32 %v461_v40, 0.0 }
 0x113   : > { %v494_v30 = vmax.f32 %v439_v23, 0.0  ;;  %3416 = vmatmul.msk.bf16.gmra.mxu0 %vm510_vm1, %v4025_v11  ;;  %v2479_v37 = vunpack.c.l.b16 %v2409_v21  ;;  %v1282_v26 = vunpack.c.l.b16 %v1213_v44  ;;  %vm1143_vm12 = vcmp.eq.s32.totalorder %v750_v10, 0 }
 0x114   : > { %v4030_v38 = vld [vmem:[#allocation2 + $0x88] sm:$0xff]  ;;  %538 = vst.msk [vmem:[#allocation2 + $0xd8] sm:$0xff] %vm510_vm1, %v503_v49 }
 0x115   : > { %529 = vst.msk [vmem:[#allocation2 + $0x90] sm:$0xff] %vm510_vm1, %v494_v30  ;;  %v1069_v13 = vrot.slane %v4030_v38, 7  ;;  %v4035_v41 = vpack.c.b16 %v2479_v37, %v2478_v34  ;;  %v2266_v46 = vrot.slane %v4030_v38, 1 }
 0x117   : > { %5505 = vst [vmem:[#allocation9_spill] sm:$0xff] %v4035_v41  ;;  %v1107_v48 = vsel %vm1088_vm2, %v1068_v45, %v1069_v13  ;;  %v2304_v42 = vsel %vm2285_vm5, %v2265_v59, %v2266_v46  ;;  %v1701_v45 = vpack.c.bf16 %v3892_v3, %v3892_v3  ;;  %v463_v1 = vpop.f32.mrf.mxu3  ;;  %v1477_v59 = vpop.f32.mrf.mxu2 }
 0x118   : > { %v440_v51 = vpop.f32.mrf.mxu0  ;;  %v1214_v62 = vpack.c.bf16 %v1107_v48, %v1107_v48  ;;  %v464_v21 = vadd.f32 %v3719_v52, %v463_v1  ;;  %v2410_v34 = vpack.c.bf16 %v2304_v42, %v2304_v42 }
 0x119   : > { %v441_v60 = vadd.f32 %v3719_v52, %v440_v51  ;;  %v1771_v3 = vunpack.c.l.b16 %v1701_v45 }
 0x11a   : > { %v1283_v50 = vunpack.c.l.b16 %v1214_v62  ;;  %v504_v32 = vmax.f32 %v464_v21, 0.0  ;;  %v2480_v54 = vunpack.c.l.b16 %v2410_v34 }
 0x11b   : > { %v495_v9 = vmax.f32 %v441_v60, 0.0  ;;  %v4067_v48 = vpack.c.b16 %v1772_v33, %v1771_v3  ;;  %v604_v33 = vadd.s32 160, %v3677_v24 }
 0x11c   : > { %v4050_v6 = vpack.c.b16 %v1283_v50, %v1282_v26  ;;  %v4052_v8 = vld [vmem:[#allocation2 + $0x90] sm:$0xff]  ;;  %539 = vst.msk [vmem:[#allocation2 + $0xe0] sm:$0xff] %vm510_vm1, %v504_v32 }
 0x11d   : > { %530 = vst.msk [vmem:[#allocation2 + $0x98] sm:$0xff] %vm510_vm1, %v495_v9  ;;  %v1070_v23 = vrot.slane %v4052_v8, 7  ;;  %v2267_v30 = vrot.slane %v4052_v8, 1 }
 0x11e   : > { %5506 = vst [vmem:[#allocation10_spill] sm:$0xff] %v4050_v6  ;;  %3369 = vmatmul.msk.bf16.gmra.mxu1 %vm510_vm1, %v4050_v6  ;;  %3386 = vmatmul.msk.bf16.gmra.mxu2 %vm510_vm1, %v4050_v6 }
 0x11f   : > { %v2303_v28 = vsel %vm2285_vm5, %v2266_v46, %v2267_v30  ;;  %v1106_v40 = vsel %vm1088_vm2, %v1069_v13, %v1070_v23  ;;  %v465_v46 = vpop.f32.mrf.mxu3  ;;  %v1479_v45 = vpop.f32.mrf.mxu2 }
 0x120   : > { %v443_v37 = vpop.f32.mrf.mxu0  ;;  %v2375_v43 = vsel %vm2339_vm11, 0.0, %v2303_v28  ;;  %v1179_v62 = vsel %vm1143_vm12, 0.0, %v1106_v40  ;;  %v466_v13 = vadd.f32 %v3719_v52, %v465_v46  ;;  %v1704_v28 = vpack.c.bf16 %v3948_v15, %v3948_v15 }
 0x121   : > { %v444_v44 = vadd.f32 %v3719_v52, %v443_v37  ;;  %v2411_v49 = vpack.c.bf16 %v2375_v43, %v2375_v43  ;;  %v1215_v50 = vpack.c.bf16 %v1179_v62, %v1179_v62 }
 0x122   : > { %v505_v9 = vmax.f32 %v466_v13, 0.0  ;;  %v1774_v46 = vunpack.c.l.b16 %v1704_v28  ;;  %v603_v13 = vadd.s32 152, %v3677_v24 }
 0x123   : > { %v496_v51 = vmax.f32 %v444_v44, 0.0  ;;  %3417 = vmatmul.msk.bf16.gmra.mxu0 %vm510_vm1, %v4067_v48  ;;  %v2481_v58 = vunpack.c.l.b16 %v2411_v49  ;;  %v1284_v34 = vunpack.c.l.b16 %v1215_v50  ;;  %v764_v44 = vand.u32 15, %v604_v33 }
 0x124   : > { %v4072_v42 = vld [vmem:[#allocation2 + $0x98] sm:$0xff]  ;;  %540 = vst.msk [vmem:[#allocation2 + $0xe8] sm:$0xff] %vm510_vm1, %v505_v9 }
 0x125   : > { %531 = vst.msk [vmem:[#allocation2 + $0xa0] sm:$0xff] %vm510_vm1, %v496_v51  ;;  %v1071_v60 = vrot.slane %v4072_v42, 7  ;;  %v4077_v18 = vpack.c.b16 %v2481_v58, %v2480_v54  ;;  %v2268_v26 = vrot.slane %v4072_v42, 1  ;;  %vm1145_vm13 = vcmp.eq.s32.totalorder %v764_v44, 0 }
 0x126   : > { %v606_v44 = vadd.s32 176, %v3677_v24 }
 0x127   : > { %5507 = vst [vmem:[#allocation11_spill] sm:$0xff] %v4077_v18  ;;  %v1105_v1 = vsel %vm1088_vm2, %v1070_v23, %v1071_v60  ;;  %v4087_v10 = vsel %vm2285_vm5, %v2267_v30, %v2268_v26  ;;  %v1703_v23 = vpack.c.bf16 %v3930_v56, %v3930_v56  ;;  %v468_v49 = vpop.f32.mrf.mxu3 }
 0x128   : > { %v445_v21 = vpop.f32.mrf.mxu0  ;;  %v1216_v3 = vpack.c.bf16 %v1105_v1, %v1105_v1  ;;  %v469_v54 = vadd.f32 %v3719_v52, %v468_v49 }
 0x129   : > { %v446_v32 = vadd.f32 %v3719_v52, %v445_v21  ;;  %v1773_v56 = vunpack.c.l.b16 %v1703_v23  ;;  %v757_v23 = vand.u32 15, %v603_v13 }
 0x12a   : > { %v1285_v37 = vunpack.c.l.b16 %v1216_v3  ;;  %v506_v58 = vmax.f32 %v469_v54, 0.0  ;;  %v1706_v3 = vpack.c.bf16 %v3986_v12, %v3986_v12  ;;  %v1705_v54 = vpack.c.bf16 %v3968_v4, %v3968_v4 }
 0x12b   : > { %v497_v40 = vmax.f32 %v446_v32, 0.0  ;;  %v1377_v43 = vpop.f32.mrf.mxu1  ;;  %v4112_v33 = vpack.c.b16 %v1774_v46, %v1773_v56  ;;  %vm4142_vm14 = vcmp.eq.s32.totalorder %v757_v23, 15  ;;  %v605_v4 = vadd.s32 168, %v3677_v24 }
 0x12c   : > { %v4095_v30 = vadd.f32 %v1477_v59, %v1377_v43  ;;  %v4097_v51 = vpack.c.b16 %v1285_v37, %v1284_v34  ;;  %v4099_v62 = vld [vmem:[#allocation2 + $0xa0] sm:$0xff]  ;;  %541 = vst.msk [vmem:[#allocation2 + $0xf0] sm:$0xff] %vm510_vm1, %v506_v58  ;;  %v4119_v34 = vld [vmem:[#allocation2 + $0xd0] sm:$0xff]  ;;  %v4121_v37 = vld [vmem:[#allocation2 + $0xd8] sm:$0xff]  ;;  %v2412_v23 = vpack.c.bf16 %v4087_v10, %v4087_v10 }
 0x12d   : > { %532 = vst.msk [vmem:[#allocation2 + $0xa8] sm:$0xff] %vm510_vm1, %v497_v40  ;;  %v1072_v15 = vrot.slane %v4099_v62, 7  ;;  %v2269_v56 = vrot.slane %v4099_v62, 1  ;;  %v1718_v13 = vpack.c.bf16 %v4121_v37, %v4121_v37  ;;  %v771_v25 = vand.u32 15, %v605_v4 }
 0x12e   : > { %5508 = vst [vmem:[#allocation12_spill] sm:$0xff] %v4095_v30  ;;  %3370 = vmatmul.msk.bf16.gmra.mxu1 %vm510_vm1, %v4097_v51  ;;  %3387 = vmatmul.msk.bf16.gmra.mxu2 %vm510_vm1, %v4097_v51  ;;  %v2482_v4 = vunpack.c.l.b16 %v2412_v23 }
 0x12f   : > { %5509 = vst [vmem:[#allocation13_spill] sm:$0xff] %v4097_v51  ;;  %v1104_v59 = vsel %vm1088_vm2, %v1071_v60, %v1072_v15  ;;  %v470_v60 = vpop.f32.mrf.mxu3  ;;  %vm4198_vm3 = vcmp.eq.s32.totalorder %v771_v25, 15 }
 0x130   : > { %v448_v50 = vpop.f32.mrf.mxu0  ;;  %v1181_v21 = vsel %vm1145_vm13, 0.0, %v1104_v59  ;;  %v471_v49 = vadd.f32 %v3719_v52, %v470_v60  ;;  %v1776_v59 = vunpack.c.l.b16 %v1706_v3 }
 0x131   : > { %v449_v9 = vadd.f32 %v3719_v52, %v448_v50  ;;  %v1482_v1 = vpop.f32.mrf.mxu2  ;;  %v1217_v46 = vpack.c.bf16 %v1181_v21, %v1181_v21  ;;  %v4173_v21 = vld [vmem:[%s5469_s2] ss:$0 sm:$0xff] }
 0x132   : > { %v507_v58 = vmax.f32 %v471_v49, 0.0  ;;  %v1788_v49 = vunpack.c.l.b16 %v1718_v13 }
 0x133   : > { %v498_v32 = vmax.f32 %v449_v9, 0.0  ;;  %v1379_v28 = vpop.f32.mrf.mxu1  ;;  %3418 = vmatmul.msk.bf16.gmra.mxu0 %vm510_vm1, %v4112_v33  ;;  %v1708_v9 = vpack.c.bf16 %v4030_v38, %v4030_v38  ;;  %v2301_v38 = vsel %vm2285_vm5, %v2268_v26, %v2269_v56 }
 0x134   : > { %v4123_v40 = vadd.f32 %v1479_v45, %v1379_v28  ;;  %v4125_v43 = vld [vmem:[#allocation2 + $0xa8] sm:$0xff]  ;;  %v1717_v45 = vpack.c.bf16 %v4119_v34, %v4119_v34  ;;  %v778_v28 = vand.u32 15, %v606_v44  ;;  %542 = vst.msk [vmem:[#allocation2 + $0xf8] sm:$0xff] %vm510_vm1, %v507_v58 }
 0x135   : > { %533 = vst.msk [vmem:[#allocation2 + $0xb0] sm:$0xff] %vm510_vm1, %v498_v32  ;;  %v1073_v12 = vrot.slane %v4125_v43, 7  ;;  %v3445_v44 = vld [vmem:[%s5470_s3 + $0xe] sm:$0x3] }
 0x136   : > { %5510 = vst [vmem:[#allocation14_spill] sm:$0xff] %v4123_v40  ;;  %v1787_v60 = vunpack.c.l.b16 %v1717_v45  ;;  %v2126_v26 = vsel %vm1364_vm4, %v3445_v44, 0  ;;  %v1775_v44 = vunpack.c.l.b16 %v1705_v54  ;;  %vm1147_vm15 = vcmp.eq.s32.totalorder %v778_v28, 0 }
 0x137   : > { %v1103_v50 = vsel %vm1088_vm2, %v1072_v15, %v1073_v12  ;;  %v1286_v15 = vunpack.c.l.b16 %v1217_v46  ;;  %v2270_v46 = vrot.slane %v4125_v43, 1  ;;  %2135 = vmatpush.bf16.msrb.mxu2 %v2126_v26  ;;  %v4207_v26 = vld [vmem:[#allocation2 + $0xe0] sm:$0xff]  ;;  %v607_v54 = vadd.s32 184, %v3677_v24 }
 0x138   : > { %v450_v3 = vpop.f32.mrf.mxu0  ;;  %v1218_v32 = vpack.c.bf16 %v1103_v50, %v1103_v50  ;;  %v4158_v58 = vpack.c.b16 %v1788_v49, %v1787_v60  ;;  %v473_v50 = vpop.f32.mrf.mxu3  ;;  %v1719_v25 = vpack.c.bf16 %v4207_v26, %v4207_v26 }
 0x139   : > { %v451_v61 = vadd.f32 %v3719_v52, %v450_v3  ;;  %v1484_v36 = vpop.f32.mrf.mxu2  ;;  %v2377_v52 = vsel %vm4142_vm14, 0.0, %v2301_v38  ;;  %v474_v60 = vadd.f32 %v4173_v21, %v473_v50  ;;  %v4203_v50 = vpack.c.b16 %v1776_v59, %v1775_v44 }
 0x13a   : > { %v1287_v31 = vunpack.c.l.b16 %v1218_v32  ;;  %v2413_v3 = vpack.c.bf16 %v2377_v52, %v2377_v52  ;;  %v608_v59 = vadd.s32 192, %v3677_v24 }
 0x13b   : > { %v499_v45 = vmax.f32 %v451_v61, 0.0  ;;  %v1382_v13 = vpop.f32.mrf.mxu1  ;;  %v2300_v61 = vsel %vm2285_vm5, %v2269_v56, %v2270_v46  ;;  %v508_v38 = vmax.f32 %v474_v60, 0.0 }
 0x13c   : > { %v4164_v10 = vadd.f32 %v1482_v1, %v1382_v13  ;;  %v4166_v32 = vpack.c.b16 %v1287_v31, %v1286_v15  ;;  %v4168_v19 = vld [vmem:[#allocation2 + $0xb0] sm:$0xff]  ;;  %v2483_v31 = vunpack.c.l.b16 %v2413_v3  ;;  %v1707_v15 = vpack.c.bf16 %v4006_v57, %v4006_v57 }
 0x13d   : > { %534 = vst.msk [vmem:[#allocation2 + $0xb8] sm:$0xff] %vm510_vm1, %v499_v45  ;;  %v1074_v1 = vrot.slane %v4168_v19, 7  ;;  %v5479_v49 = vrot.slane %v4168_v19, 1  ;;  %v1778_v45 = vunpack.c.l.b16 %v1708_v9  ;;  %v1709_v13 = vpack.c.bf16 %v4052_v8, %v4052_v8  ;;  %v4209_v8 = vld [vmem:[#allocation2 + $0xe8] sm:$0xff] }
 0x13e   : > { %5513 = vst [vmem:[#allocation15_spill] sm:$0xff] %v4164_v10  ;;  %3371 = vmatmul.msk.bf16.gmra.mxu1 %vm510_vm1, %v4166_v32  ;;  %3388 = vmatmul.msk.bf16.gmra.mxu2 %vm510_vm1, %v4166_v32  ;;  %v4189_v52 = vpack.c.b16 %v2483_v31, %v2482_v4  ;;  %v1710_v9 = vpack.c.bf16 %v4072_v42, %v4072_v42  ;;  %v1777_v60 = vunpack.c.l.b16 %v1707_v15 }
 0x13f   : > { %5514 = vst [vmem:[#allocation16_spill] sm:$0xff] %v4166_v32  ;;  %v1102_v56 = vsel %vm1088_vm2, %v1073_v12, %v1074_v1  ;;  %v2299_v57 = vsel %vm2285_vm5, %v2270_v46, %v5479_v49  ;;  %v1720_v46 = vpack.c.bf16 %v4209_v8, %v4209_v8  ;;  %v2414_v44 = vpack.c.bf16 %v2300_v61, %v2300_v61 }
 0x140   : > { %5515 = vst [vmem:[#allocation17_spill] sm:$0xff] %v4189_v52  ;;  %v453_v23 = vpop.f32.mrf.mxu0  ;;  %v1183_v3 = vsel %vm1147_vm15, 0.0, %v1102_v56  ;;  %v475_v42 = vpop.f32.mrf.mxu3  ;;  %v1780_v10 = vunpack.c.l.b16 %v1710_v9  ;;  %v1789_v61 = vunpack.c.l.b16 %v1719_v25 }
 0x141   : > { %543 = vst.msk [vmem:[#allocation2 + $0x100] sm:$0xff] %vm510_vm1, %v508_v38  ;;  %v454_v12 = vadd.f32 %v4173_v21, %v453_v23  ;;  %v1487_v28 = vpop.f32.mrf.mxu2  ;;  %v2379_v38 = vsel %vm4198_vm3, 0.0, %v2299_v57  ;;  %v4224_v23 = vpack.c.b16 %v1778_v45, %v1777_v60  ;;  %v476_v49 = vadd.f32 %v4173_v21, %v475_v42 }
 0x142   : > { %v1219_v29 = vpack.c.bf16 %v1183_v3, %v1183_v3  ;;  %v792_v60 = vand.u32 15, %v608_v59  ;;  %v4235_v42 = vadd.s32 224, %v3677_v24  ;;  %v785_v59 = vand.u32 15, %v607_v54 }
 0x143   : > { %v500_v4 = vmax.f32 %v454_v12, 0.0  ;;  %v1384_v31 = vpop.f32.mrf.mxu1  ;;  %3419 = vmatmul.msk.bf16.gmra.mxu0 %vm510_vm1, %v4203_v50  ;;  %v4227_v12 = vunpack.c.l.b16 %v1709_v13  ;;  %v509_v57 = vmax.f32 %v476_v49, 0.0  ;;  %v2484_v13 = vunpack.c.l.b16 %v2414_v44 }
 0x144   : > { %v4220_v56 = vadd.f32 %v1484_v36, %v1384_v31  ;;  %v4222_v15 = vld [vmem:[#allocation2 + $0xb8] sm:$0xff]  ;;  %v1790_v36 = vunpack.c.l.b16 %v1720_v46  ;;  %v2415_v31 = vpack.c.bf16 %v2379_v38, %v2379_v38  ;;  %v1288_v38 = vunpack.c.l.b16 %v1219_v29 }
 0x145   : > { %535 = vst.msk [vmem:[#allocation2 + $0xc0] sm:$0xff] %vm510_vm1, %v500_v4  ;;  %v1075_v22 = vrot.slane %v4222_v15, 7  ;;  %v2272_v49 = vrot.slane %v4222_v15, 1  ;;  %v5520_v44 = vrot.slane %v4168_v19, 1  ;;  %v611_v29 = vadd.s32 216, %v3677_v24 }
 0x146   : > { %5518 = vst [vmem:[#allocation18_spill] sm:$0xff] %v4220_v56  ;;  %v4238_v3 = vpack.c.b16 %v1790_v36, %v1789_v61  ;;  %v2485_v9 = vunpack.c.l.b16 %v2415_v31  ;;  %v5485_v61 = vrot.slane %v4119_v34, 1  ;;  %vm4264_vm6 = vcmp.eq.s32.totalorder %v785_v59, 15 }
 0x147   : > { %v1101_v45 = vsel %vm1088_vm2, %v1074_v1, %v1075_v22  ;;  %544 = vst.msk [vmem:[#allocation2 + $0x108] sm:$0xff] %vm510_vm1, %v509_v57  ;;  %v2298_v57 = vsel %vm2285_vm5, %v5520_v44, %v2272_v49  ;;  %vm4273_vm7 = vcmp.eq.s32.totalorder %v792_v60, 0  ;;  %v820_v60 = vand.u32 15, %v4235_v42  ;;  %v4302_v42 = vld [vmem:[#allocation2 + $0xf8] sm:$0xff] }
 0x148   : > { %v455_v56 = vpop.f32.mrf.mxu0  ;;  %v1220_v4 = vpack.c.bf16 %v1101_v45, %v1101_v45  ;;  %v4243_v30 = vpack.c.b16 %v2485_v9, %v2484_v13  ;;  %v610_v45 = vadd.s32 208, %v3677_v24  ;;  %v5483_v9 = vrot.slane %v4207_v26, 1 }
 0x149   : > { %v456_v25 = vadd.f32 %v4173_v21, %v455_v56  ;;  %v1489_v46 = vpop.f32.mrf.mxu2  ;;  %v1079_v21 = vrot.slane %v4121_v37, 7  ;;  %vm4327_vm9 = vcmp.eq.s32.totalorder %v820_v60, 0 }
 0x14a   : > { %v1289_v40 = vunpack.c.l.b16 %v1220_v4  ;;  %5519 = vst [vmem:[#allocation19_spill] sm:$0xff] %v4243_v30  ;;  %v2276_v4 = vrot.slane %v4121_v37, 1  ;;  %v806_v30 = vand.u32 15, %v610_v45 }
 0x14b   : > { %v501_v36 = vmax.f32 %v456_v25, 0.0  ;;  %v1387_v31 = vpop.f32.mrf.mxu1 }
 0x14c   : > { %v4253_v56 = vadd.f32 %v1487_v28, %v1387_v31  ;;  %v4255_v54 = vpack.c.b16 %v1289_v40, %v1288_v38  ;;  %v4257_v13 = vld [vmem:[#allocation2 + $0xc0] sm:$0xff]  ;;  %v609_v28 = vadd.s32 200, %v3677_v24  ;;  %v813_v40 = vand.u32 15, %v611_v29 }
 0x14d   : > { %536 = vst.msk [vmem:[#allocation2 + $0xc8] sm:$0xff] %vm510_vm1, %v501_v36  ;;  %v1076_v25 = vrot.slane %v4257_v13, 7  ;;  %v2273_v44 = vrot.slane %v4257_v13, 1  ;;  %v2293_v38 = vsel %vm2285_vm5, %v2276_v4, %v5483_v9  ;;  %v2294_v59 = vsel %vm2285_vm5, %v5485_v61, %v2276_v4  ;;  %v4298_v61 = vld [vmem:[#allocation2 + $0xf0] sm:$0xff] }
 0x14e   : > { %5521 = vst [vmem:[#allocation20_spill] sm:$0xff] %v4253_v56  ;;  %3372 = vmatmul.msk.bf16.gmra.mxu1 %vm510_vm1, %v4255_v54  ;;  %3389 = vmatmul.msk.bf16.gmra.mxu2 %vm510_vm1, %v4255_v54  ;;  %v5527_v36 = vrot.slane %v4119_v34, 7  ;;  %v1080_v56 = vrot.slane %v4207_v26, 7  ;;  %v1721_v52 = vpack.c.bf16 %v4298_v61, %v4298_v61  ;;  %v799_v51 = vand.u32 15, %v609_v28 }
 0x14f   : > { %5522 = vst [vmem:[#allocation21_spill] sm:$0xff] %v4255_v54  ;;  %v2297_v29 = vsel %vm2285_vm5, %v2272_v49, %v2273_v44  ;;  %v1100_v9 = vsel %vm1088_vm2, %v1075_v22, %v1076_v25  ;;  %v2416_v49 = vpack.c.bf16 %v2298_v57, %v2298_v57  ;;  %vm2349_vm8 = vcmp.eq.s32.totalorder %v813_v40, 15 }
 0x150   : > { %v1097_v31 = vsel %vm1088_vm2, %v5527_v36, %v1079_v21  ;;  %v4293_v54 = vpop.f32.mrf.mxu0  ;;  %v2381_v36 = vsel %vm4264_vm6, 0.0, %v2297_v29  ;;  %v1722_v22 = vpack.c.bf16 %v4302_v42, %v4302_v42  ;;  %v1185_v1 = vsel %vm4273_vm7, 0.0, %v1100_v9 }
 0x151   : > { %5528 = vst [vmem:[#allocation22_spill] sm:$0xff] %v4293_v54  ;;  %v1492_v32 = vpop.f32.mrf.mxu2  ;;  %v4307_v54 = vpack.c.b16 %v1780_v10, %v4227_v12  ;;  %v2417_v45 = vpack.c.bf16 %v2381_v36, %v2381_v36  ;;  %v1224_v29 = vpack.c.bf16 %v1097_v31, %v1097_v31  ;;  %v1096_v57 = vsel %vm1088_vm2, %v1079_v21, %v1080_v56 }
 0x152   : > { %v1791_v28 = vunpack.c.l.b16 %v1721_v52  ;;  %v5530_v12 = vrot.slane %v4209_v8, 7  ;;  %v1792_v9 = vunpack.c.l.b16 %v1722_v22  ;;  %v2385_v37 = vsel %vm2349_vm8, 0.0, %v2293_v38 }
 0x153   : > { %v1389_v4 = vpop.f32.mrf.mxu1  ;;  %3420 = vmatmul.msk.bf16.gmra.mxu0 %vm510_vm1, %v4224_v23  ;;  %vm1151_vm10 = vcmp.eq.s32.totalorder %v806_v30, 0  ;;  %v2486_v52 = vunpack.c.l.b16 %v2416_v49  ;;  %vm4332_vm11 = vcmp.eq.s32.totalorder %v799_v51, 15  ;;  %v1221_v21 = vpack.c.bf16 %v1185_v1, %v1185_v1 }
 0x154   : > { %v4317_v40 = vadd.f32 %v1489_v46, %v1389_v4  ;;  %v4319_v10 = vld [vmem:[#allocation2 + $0xc8] sm:$0xff]  ;;  %v4325_v36 = vsel %vm1088_vm2, %v1080_v56, %v5530_v12  ;;  %v4336_v4 = vpack.c.b16 %v1792_v9, %v1791_v28  ;;  %v5535_v22 = vrot.slane %v4119_v34, 7 }
 0x155   : > { %v1077_v31 = vrot.slane %v4319_v10, 7  ;;  %v2274_v56 = vrot.slane %v4319_v10, 1  ;;  %v2420_v30 = vpack.c.bf16 %v2294_v59, %v2294_v59  ;;  %v2421_v49 = vpack.c.bf16 %v2385_v37, %v2385_v37 }
 0x156   : > { %5529 = vst [vmem:[#allocation23_spill] sm:$0xff] %v4317_v40  ;;  %v2487_v40 = vunpack.c.l.b16 %v2417_v45  ;;  %v613_v45 = vadd.s32 232, %v3677_v24  ;;  %v1293_v41 = vunpack.c.l.b16 %v1224_v29  ;;  %v1290_v37 = vunpack.c.l.b16 %v1221_v21 }
 0x157   : > { %v1099_v60 = vsel %vm1088_vm2, %v1076_v25, %v1077_v31  ;;  %v1098_v38 = vsel %vm1088_vm2, %v1077_v31, %v5535_v22  ;;  %v5538_v25 = vrot.slane %v4119_v34, 1  ;;  %v2296_v59 = vsel %vm2285_vm5, %v2273_v44, %v2274_v56 }
 0x158   : > { %v4345_v51 = vpop.f32.mrf.mxu0  ;;  %v1222_v12 = vpack.c.bf16 %v1099_v60, %v1099_v60  ;;  %v1187_v6 = vsel %vm1151_vm10, 0.0, %v1098_v38  ;;  %v4347_v1 = vpack.c.b16 %v2487_v40, %v2486_v52  ;;  %v2418_v40 = vpack.c.bf16 %v2296_v59, %v2296_v59  ;;  %v4393_v59 = vld [vmem:[#allocation2 + $0x108] sm:$0xff] }
 0x159   : > { %5536 = vst [vmem:[#allocation24_spill] sm:$0xff] %v4345_v51  ;;  %v1494_v28 = vpop.f32.mrf.mxu2  ;;  %v1223_v9 = vpack.c.bf16 %v1187_v6, %v1187_v6  ;;  %v2295_v53 = vsel %vm2285_vm5, %v2274_v56, %v5538_v25  ;;  %v2490_v51 = vunpack.c.l.b16 %v2420_v30  ;;  %v2491_v6 = vunpack.c.l.b16 %v2421_v49 }
 0x15a   : > { %5537 = vst [vmem:[#allocation25_spill] sm:$0xff] %v4347_v1  ;;  %v1291_v31 = vunpack.c.l.b16 %v1222_v12  ;;  %v2383_v60 = vsel %vm4332_vm11, 0.0, %v2295_v53  ;;  %v4362_v1 = vld [vmem:[#allocation2 + $0x100] sm:$0xff]  ;;  %v2488_v25 = vunpack.c.l.b16 %v2418_v40  ;;  %v827_v14 = vand.u32 15, %v613_v45 }
 0x15b   : > { %v1392_v52 = vpop.f32.mrf.mxu1  ;;  %v1292_v22 = vunpack.c.l.b16 %v1223_v9  ;;  %v2419_v38 = vpack.c.bf16 %v2383_v60, %v2383_v60  ;;  %v4366_v56 = vpack.c.b16 %v2491_v6, %v2490_v51  ;;  %v2278_v53 = vrot.slane %v4209_v8, 1 }
 0x15c   : > { %v4358_v29 = vadd.f32 %v1492_v32, %v1392_v52  ;;  %v4360_v34 = vpack.c.b16 %v1291_v31, %v1290_v37  ;;  %v2279_v32 = vrot.slane %v4298_v61, 1  ;;  %vm4374_vm12 = vcmp.eq.s32.totalorder %v827_v14, 15 }
 0x15d   : > { %v4364_v44 = vpack.c.b16 %v1293_v41, %v1292_v22  ;;  %v2489_v21 = vunpack.c.l.b16 %v2419_v38  ;;  %5539 = vst [vmem:[#allocation26_spill] sm:$0xff] %v4366_v56  ;;  %v615_v41 = vadd.s32 248, %v3677_v24  ;;  %v2280_v30 = vrot.slane %v4302_v42, 1  ;;  %v4418_v56 = vld [vmem:[#allocation2 + $0x110] sm:$0xff] }
 0x15e   : > { %3373 = vmatmul.msk.bf16.gmra.mxu1 %vm510_vm1, %v4360_v34  ;;  %3446 = vmatmul.msk.bf16.vlgmr.msrb.gmra.mxu2 %vm510_vm1, %v3944_v7  ;;  %v1189_v49 = vsel %vm4327_vm9, 0.0, %v1096_v57  ;;  %v5542_v12 = vrot.slane %v4207_v26, 1  ;;  %v2281_v45 = vrot.slane %v4362_v1, 1  ;;  %v2291_v37 = vsel %vm2285_vm5, %v2278_v53, %v2279_v32  ;;  %5544 = vst [vmem:[#allocation28_spill] sm:$0xff] %v4418_v56 }
 0x15f   : > { %3374 = vmatmul.msk.bf16.vlgmr.msrb.gmra.mxu3 %vm510_vm1, %v4364_v44  ;;  %v4384_v51 = vpack.c.b16 %v2489_v21, %v2488_v25  ;;  %v841_v60 = vand.u32 15, %v615_v41  ;;  %v2290_v18 = vsel %vm2285_vm5, %v2279_v32, %v2280_v30  ;;  %v1723_v26 = vpack.c.bf16 %v4362_v1, %v4362_v1 }
 0x160   : > { %v2292_v14 = vsel %vm2285_vm5, %v5542_v12, %v2278_v53  ;;  %v4391_v9 = vpop.f32.mrf.mxu0  ;;  %v1724_v40 = vpack.c.bf16 %v4393_v59, %v4393_v59  ;;  %v2387_v52 = vsel %vm4374_vm12, 0.0, %v2291_v37  ;;  %v2289_v22 = vsel %vm2285_vm5, %v2280_v30, %v2281_v45 }
 0x161   : > { %5543 = vst [vmem:[#allocation27_spill] sm:$0xff] %v4391_v9  ;;  %v2422_v31 = vpack.c.bf16 %v2292_v14, %v2292_v14  ;;  %v1497_v57 = vpop.f32.mrf.mxu2  ;;  %v2423_v38 = vpack.c.bf16 %v2387_v52, %v2387_v52  ;;  %vm2353_vm13 = vcmp.eq.s32.totalorder %v841_v60, 15  ;;  %v2424_v25 = vpack.c.bf16 %v2290_v18, %v2290_v18 }
 0x162   : > { %v1985_v53 = vunpack.c.l.b16 %v1723_v26  ;;  %v1986_v32 = vunpack.c.l.b16 %v1724_v40  ;;  %v2389_v41 = vsel %vm2353_vm13, 0.0, %v2289_v22  ;;  %v1225_v37 = vpack.c.bf16 %v1189_v49, %v1189_v49 }
 0x163   : > { %v2492_v6 = vunpack.c.l.b16 %v2422_v31  ;;  %v1394_v21 = vpop.f32.mrf.mxu1  ;;  %3421 = vmatmul.msk.bf16.gmra.mxu0 %vm510_vm1, %v4307_v54  ;;  %v2493_v14 = vunpack.c.l.b16 %v2423_v38  ;;  %v2425_v9 = vpack.c.bf16 %v2389_v41, %v2389_v41  ;;  %v2494_v46 = vunpack.c.l.b16 %v2424_v25 }
 0x164   : > { %v4409_v12 = vadd.f32 %v1494_v28, %v1394_v21  ;;  %v1226_v30 = vpack.c.bf16 %v4325_v36, %v4325_v36  ;;  %v4413_v52 = vpack.c.b16 %v1986_v32, %v1985_v53  ;;  %v617_v31 = vadd.s32 264, %v3677_v24 }
 0x165   : > { %v4416_v60 = vpack.c.b16 %v2493_v14, %v2492_v6  ;;  %v2495_v18 = vunpack.c.l.b16 %v2425_v9  ;;  %v614_v26 = vadd.s32 240, %v3677_v24  ;;  %v2282_v40 = vrot.slane %v4393_v59, 1 }
 0x166   : > { %v855_v28 = vand.u32 15, %v617_v31  ;;  %v5496_v22 = vrot.slane %v4418_v56, 1  ;;  %v1712_v36 = vpack.c.bf16 %v4125_v43, %v4125_v43  ;;  %v1294_v6 = vunpack.c.l.b16 %v1225_v37 }
 0x167   : > { %v4427_v38 = vpack.c.b16 %v2495_v18, %v2494_v46  ;;  %v1295_v21 = vunpack.c.l.b16 %v1226_v30  ;;  %v1711_v53 = vpack.c.bf16 %v4099_v62, %v4099_v62  ;;  %v2288_v32 = vsel %vm2285_vm5, %v2281_v45, %v2282_v40 }
 0x168   : > { %v4423_v49 = vpop.f32.mrf.mxu0  ;;  %v2287_v9 = vsel %vm2285_vm5, %v2282_v40, %v5496_v22  ;;  %vm2355_vm14 = vcmp.eq.s32.totalorder %v855_v28, 15  ;;  %v834_v43 = vand.u32 15, %v614_v26  ;;  %v1082_v46 = vrot.slane %v4298_v61, 7 }
 0x169   : > { %5545 = vst [vmem:[#allocation29_spill] sm:$0xff] %v4423_v49  ;;  %v1499_v25 = vpop.f32.mrf.mxu2  ;;  %v2391_v41 = vsel %vm2355_vm14, 0.0, %v2287_v9  ;;  %v2426_v31 = vpack.c.bf16 %v2288_v32, %v2288_v32  ;;  %v4440_v18 = vpack.c.b16 %v1295_v21, %v1294_v6  ;;  %v1782_v49 = vunpack.c.l.b16 %v1712_v36 }
 0x16a   : > { %v2427_v37 = vpack.c.bf16 %v2391_v41, %v2391_v41  ;;  %v1083_v62 = vrot.slane %v4302_v42, 7  ;;  %v1781_v61 = vunpack.c.l.b16 %v1711_v53  ;;  %v5546_v45 = vrot.slane %v4209_v8, 7 }
 0x16b   : > { %v1397_v14 = vpop.f32.mrf.mxu1  ;;  %v2688_v22 = vunpack.c.l.b16 %v2426_v31  ;;  %vm1155_vm15 = vcmp.eq.s32.totalorder %v834_v43, 0  ;;  %v1714_v43 = vpack.c.bf16 %v4222_v15, %v4222_v15  ;;  %v1713_v31 = vpack.c.bf16 %v4168_v19, %v4168_v19 }
 0x16c   : > { %v4438_v30 = vadd.f32 %v1497_v57, %v1397_v14  ;;  %v2689_v28 = vunpack.c.l.b16 %v2427_v37  ;;  %v1094_v57 = vsel %vm1088_vm2, %v5546_v45, %v1082_v46  ;;  %v4457_v36 = vpack.c.b16 %v1782_v49, %v1781_v61 }
 0x16d   : > { %v1093_v42 = vsel %vm1088_vm2, %v1082_v46, %v1083_v62  ;;  %v1191_v6 = vsel %vm1155_vm15, 0.0, %v1094_v57  ;;  %v1784_v45 = vunpack.c.l.b16 %v1714_v43  ;;  %v5497_v15 = vrot.slane %v4393_v59, 7  ;;  %v3394_v57 = vld [vmem:[%s5470_s3 + $0xc] sm:$0x3] }
 0x16e   : > { %3429 = vmatmul.msk.bf16.vlgmr.msrb.gmra.mxu1 %vm510_vm1, %v3906_v16  ;;  %3447 = vmatmul.msk.bf16.gmra.mxu2 %vm510_vm1, %v3982_v5  ;;  %v4453_v26 = vpack.c.b16 %v2689_v28, %v2688_v22  ;;  %v1227_v9 = vpack.c.bf16 %v1191_v6, %v1191_v6  ;;  %v1228_v53 = vpack.c.bf16 %v1093_v42, %v1093_v42  ;;  %v616_v22 = vadd.s32 256, %v3677_v24 }
 0x16f   : > { %3375 = vmatmul.msk.bf16.gmra.mxu3 %vm510_vm1, %v4440_v18  ;;  %v1783_v19 = vunpack.c.l.b16 %v1713_v31 }
 0x170   : > { %v4455_v40 = vpop.f32.mrf.mxu0  ;;  %v1296_v14 = vunpack.c.l.b16 %v1227_v9  ;;  %v1297_v49 = vunpack.c.l.b16 %v1228_v53  ;;  %v848_v37 = vand.u32 15, %v616_v22 }
 0x171   : > { %5547 = vst [vmem:[#allocation30_spill] sm:$0xff] %v4455_v40  ;;  %v1502_v16 = vpop.f32.mrf.mxu2  ;;  %v4492_v6 = vpack.c.b16 %v1784_v45, %v1783_v19 }
 0x172   : > { %v4475_v61 = vpack.c.b16 %v1297_v49, %v1296_v14  ;;  %vm1157_vm3 = vcmp.eq.s32.totalorder %v848_v37, 0  ;;  %v1716_v37 = vpack.c.bf16 %v4319_v10, %v4319_v10 }
 0x173   : > { %v1399_v21 = vpop.f32.mrf.mxu1  ;;  %3422 = vmatmul.msk.bf16.gmra.mxu0 %vm510_vm1, %v4457_v36 }
 0x174   : > { %v4463_v8 = vadd.f32 %v1499_v25, %v1399_v21  ;;  %v1084_v25 = vrot.slane %v4362_v1, 7 }
 0x176   : > { %v1092_v1 = vsel %vm1088_vm2, %v1083_v62, %v1084_v25  ;;  %v1091_v21 = vsel %vm1088_vm2, %v1084_v25, %v5497_v15  ;;  %v1715_v25 = vpack.c.bf16 %v4257_v13, %v4257_v13 }
 0x177   : > { %v1193_v9 = vsel %vm1157_vm3, 0.0, %v1092_v1  ;;  %v1230_v14 = vpack.c.bf16 %v1091_v21, %v1091_v21 }
 0x178   : > { %v4466_v32 = vpop.f32.mrf.mxu0  ;;  %v1229_v22 = vpack.c.bf16 %v1193_v9, %v1193_v9 }
 0x179   : > { %5548 = vst [vmem:[#allocation31_spill] sm:$0xff] %v4466_v32  ;;  %v1504_v41 = vpop.f32.mrf.mxu2  ;;  %v1299_v31 = vunpack.c.l.b16 %v1230_v14  ;;  %v5577_v32 = vld [vmem:[#allocation7_spill] sm:$0xff] }
 0x17b   : > { %v1402_v46 = vpop.f32.mrf.mxu1 }
 0x17c   : > { %v4473_v28 = vadd.f32 %v1502_v16, %v1402_v46  ;;  %v1298_v46 = vunpack.c.l.b16 %v1229_v22 }
 0x17e   : > { %3430 = vmatmul.msk.bf16.gmra.mxu1 %vm510_vm1, %v3944_v7  ;;  %3448 = vmatmul.msk.bf16.gmra.mxu2 %vm510_vm1, %v4025_v11  ;;  %v1568_v7 = vsel %vm1364_vm4, %v3394_v57, 0  ;;  %v4510_v1 = vpack.c.b16 %v1299_v31, %v1298_v46  ;;  %v1785_v57 = vunpack.c.l.b16 %v1715_v25 }
 0x17f   : > { %3376 = vmatmul.msk.bf16.gmra.mxu3 %vm510_vm1, %v4475_v61 }
 0x180   : > { %v4489_v16 = vpop.f32.mrf.mxu0  ;;  %1577 = vmatpush.bf16.msrb.mxu3 %v1568_v7 }
 0x181   : > { %5549 = vst [vmem:[#allocation32_spill] sm:$0xff] %v4489_v16  ;;  %v1507_v42 = vpop.f32.mrf.mxu2 }
 0x183   : > { %v1404_v62 = vpop.f32.mrf.mxu1  ;;  %3423 = vmatmul.msk.bf16.gmra.mxu0 %vm510_vm1, %v4492_v6 }
 0x184   : > { %v4500_v53 = vadd.f32 %v1504_v41, %v1404_v62  ;;  %v1786_v41 = vunpack.c.l.b16 %v1716_v37 }
 0x186   : > { %v4520_v21 = vpack.c.b16 %v1786_v41, %v1785_v57  ;;  %v3479_v41 = vld [vmem:[%s5470_s3 + $0xa] sm:$0x3] }
 0x188   : > { %v4502_v49 = vpop.f32.mrf.mxu0 }
 0x189   : > { %5550 = vst [vmem:[#allocation33_spill] sm:$0xff] %v4502_v49  ;;  %v1509_v43 = vpop.f32.mrf.mxu2 }
 0x18b   : > { %v1407_v45 = vpop.f32.mrf.mxu1 }
 0x18c   : > { %v4508_v19 = vadd.f32 %v1507_v42, %v1407_v45 }
 0x18e   : > { %3431 = vmatmul.msk.bf16.gmra.mxu1 %vm510_vm1, %v3982_v5  ;;  %3449 = vmatmul.msk.bf16.gmra.mxu2 %vm510_vm1, %v4067_v48 }
 0x18f   : > { %3377 = vmatmul.msk.bf16.gmra.mxu3 %vm510_vm1, %v4510_v1 }
 0x190   : > { %v4518_v10 = vpop.f32.mrf.mxu0 }
 0x191   : > { %5551 = vst [vmem:[#allocation34_spill] sm:$0xff] %v4518_v10  ;;  %v1512_v7 = vpop.f32.mrf.mxu2 }
 0x193   : > { %v1409_v13 = vpop.f32.mrf.mxu1  ;;  %3424 = vmatmul.msk.bf16.gmra.mxu0 %vm510_vm1, %v4520_v21 }
 0x194   : > { %v4524_v42 = vadd.f32 %v1509_v43, %v1409_v13 }
 0x198   : > { %v4526_v9 = vpop.f32.mrf.mxu0 }
 0x199   : > { %5552 = vst [vmem:[#allocation35_spill] sm:$0xff] %v4526_v9  ;;  %v1514_v5 = vpop.f32.mrf.mxu2 }
 0x19b   : > { %v1412_v62 = vpop.f32.mrf.mxu1 }
 0x19c   : > { %v4528_v22 = vadd.f32 %v1512_v7, %v1412_v62  ;;  %v2695_v7 = vsel %vm1364_vm4, %v3479_v41, 0 }
 0x19d   : > { %2704 = vmatpush.bf16.msra.mxu0 %v2695_v7 }
 0x19e   : > { %3432 = vmatmul.msk.bf16.gmra.mxu1 %vm510_vm1, %v4025_v11  ;;  %3450 = vmatmul.msk.bf16.gmra.mxu2 %vm510_vm1, %v4112_v33 }
 0x19f   : > { %3390 = vmatmul.msk.bf16.vlgmr.msra.gmra.mxu3 %vm510_vm1, %v4360_v34 }
 0x1a0   : > { %v4536_v14 = vpop.f32.mrf.mxu0 }
 0x1a1   : > { %5553 = vst [vmem:[#allocation36_spill] sm:$0xff] %v4536_v14  ;;  %v1517_v46 = vpop.f32.mrf.mxu2 }
 0x1a3   : > { %v1414_v43 = vpop.f32.mrf.mxu1  ;;  %3425 = vmatmul.msk.bf16.gmra.mxu0 %vm510_vm1, %v4158_v58 }
 0x1a4   : > { %v4540_v31 = vadd.f32 %v1514_v5, %v1414_v43 }
 0x1a8   : > { %v4542_v45 = vpop.f32.mrf.mxu0 }
 0x1a9   : > { %v1519_v37 = vpop.f32.mrf.mxu2  ;;  %5554 = vst [vmem:[#allocation37_spill] sm:$0xff] %v4542_v45 }
 0x1ab   : > { %v1417_v25 = vpop.f32.mrf.mxu1 }
 0x1ac   : > { %v4544_v11 = vadd.f32 %v1517_v46, %v1417_v25 }
 0x1ae   : > { %3433 = vmatmul.msk.bf16.gmra.mxu1 %vm510_vm1, %v4067_v48  ;;  %3451 = vmatmul.msk.bf16.gmra.mxu2 %vm510_vm1, %v4203_v50 }
 0x1af   : > { %3391 = vmatmul.msk.bf16.gmra.mxu3 %vm510_vm1, %v4364_v44 }
 0x1b0   : > { %v4560_v48 = vpop.f32.mrf.mxu0 }
 0x1b1   : > { %v1522_v57 = vpop.f32.mrf.mxu2  ;;  %5555 = vst [vmem:[#allocation38_spill] sm:$0xff] %v4560_v48 }
 0x1b3   : > { %v1419_v13 = vpop.f32.mrf.mxu1  ;;  %3426 = vmatmul.msk.bf16.gmra.mxu0 %vm510_vm1, %v4238_v3 }
 0x1b4   : > { %v4558_v5 = vadd.f32 %v1519_v37, %v1419_v13  ;;  %v3462_v37 = vld [vmem:[%s5470_s3 + $0x4] sm:$0x3] }
 0x1b5   : > { %v2561_v41 = vsel %vm1364_vm4, %v3462_v37, 0 }
 0x1b6   : > { %2570 = vmatpush.bf16.msra.mxu3 %v2561_v41 }
 0x1b8   : > { %v4568_v25 = vpop.f32.mrf.mxu0 }
 0x1b9   : > { %v1524_v62 = vpop.f32.mrf.mxu2  ;;  %5556 = vst [vmem:[#allocation39_spill] sm:$0xff] %v4568_v25 }
 0x1bb   : > { %v1422_v46 = vpop.f32.mrf.mxu1 }
 0x1bc   : > { %v4562_v43 = vadd.f32 %v1522_v57, %v1422_v46  ;;  %v3496_v46 = vld [vmem:[%s5470_s3 + $0x10] sm:$0x3] }
 0x1bd   : > { %v2829_v15 = vsel %vm1364_vm4, %v3496_v46, 0 }
 0x1be   : > { %3434 = vmatmul.msk.bf16.gmra.mxu1 %vm510_vm1, %v4112_v33  ;;  %3452 = vmatmul.msk.bf16.gmra.mxu2 %vm510_vm1, %v4224_v23 }
 0x1bf   : > { %3392 = vmatmul.msk.bf16.gmra.mxu3 %vm510_vm1, %v4440_v18  ;;  %2838 = vmatpush.bf16.msra.mxu1 %v2829_v15 }
 0x1c0   : > { %v4580_v13 = vpop.f32.mrf.mxu0 }
 0x1c1   : > { %v1527_v7 = vpop.f32.mrf.mxu2  ;;  %5557 = vst [vmem:[#allocation40_spill] sm:$0xff] %v4580_v13 }
 0x1c3   : > { %v1424_v57 = vpop.f32.mrf.mxu1  ;;  %3427 = vmatmul.msk.bf16.gmra.mxu0 %vm510_vm1, %v4336_v4 }
 0x1c4   : > { %v4578_v33 = vadd.f32 %v1524_v62, %v1424_v57 }
 0x1c8   : > { %v4594_v37 = vpop.f32.mrf.mxu0 }
 0x1c9   : > { %v1529_v62 = vpop.f32.mrf.mxu2  ;;  %5558 = vst [vmem:[#allocation41_spill] sm:$0xff] %v4594_v37 }
 0x1cb   : > { %v1427_v25 = vpop.f32.mrf.mxu1 }
 0x1cc   : > { %v4586_v48 = vadd.f32 %v1527_v7, %v1427_v25 }
 0x1ce   : > { %3435 = vmatmul.msk.bf16.gmra.mxu1 %vm510_vm1, %v4203_v50  ;;  %3453 = vmatmul.msk.bf16.gmra.mxu2 %vm510_vm1, %v4307_v54 }
 0x1cf   : > { %3393 = vmatmul.msk.bf16.gmra.mxu3 %vm510_vm1, %v4475_v61 }
 0x1d0   : > { %v4602_v50 = vpop.f32.mrf.mxu0 }
 0x1d1   : > { %v1532_v15 = vpop.f32.mrf.mxu2  ;;  %5559 = vst [vmem:[#allocation42_spill] sm:$0xff] %v4602_v50 }
 0x1d3   : > { %v1429_v41 = vpop.f32.mrf.mxu1  ;;  %3480 = vmatmul.msk.bf16.vlgmr.msra.gmra.mxu0 %vm510_vm1, %v3810_v20 }
 0x1d4   : > { %v4598_v57 = vadd.f32 %v1529_v62, %v1429_v41 }
 0x1d8   : > { %v4614_v41 = vpop.f32.mrf.mxu0 }
 0x1d9   : > { %v1534_v37 = vpop.f32.mrf.mxu2  ;;  %5560 = vst [vmem:[#allocation43_spill] sm:$0xff] %v4614_v41 }
 0x1db   : > { %v1432_v25 = vpop.f32.mrf.mxu1 }
 0x1dc   : > { %v4600_v7 = vadd.f32 %v1532_v15, %v1432_v25 }
 0x1de   : > { %3436 = vmatmul.msk.bf16.gmra.mxu1 %vm510_vm1, %v4224_v23  ;;  %3454 = vmatmul.msk.bf16.gmra.mxu2 %vm510_vm1, %v4457_v36 }
 0x1df   : > { %3395 = vmatmul.msk.bf16.vlgmr.msrb.gmra.mxu3 %vm510_vm1, %v3819_v39 }
 0x1e0   : > { %v4624_v39 = vpop.f32.mrf.mxu0 }
 0x1e1   : > { %5561 = vst [vmem:[#allocation44_spill] sm:$0xff] %v4624_v39  ;;  %v4648_v14 = vpop.f32.mrf.mxu2 }
 0x1e2   : > { %v1437_v46 = vpop.f32.mrf.mxu3  ;;  %5568 = vst [vmem:[#allocation51_spill] sm:$0xff] %v4648_v14 }
 0x1e3   : > { %v1434_v13 = vpop.f32.mrf.mxu1  ;;  %3481 = vmatmul.msk.bf16.gmra.mxu0 %vm510_vm1, %v3842_v63 }
 0x1e4   : > { %v4612_v62 = vadd.f32 %v1534_v37, %v1434_v13 }
 0x1e8   : > { %v4630_v37 = vpop.f32.mrf.mxu0 }
 0x1e9   : > { %5563 = vst [vmem:[#allocation46_spill] sm:$0xff] %v4630_v37 }
 0x1ea   : > { %v1439_v15 = vpop.f32.mrf.mxu3 }
 0x1eb   : > { %v4616_v25 = vpop.f32.mrf.mxu1 }
 0x1ee   : > { %3437 = vmatmul.msk.bf16.gmra.mxu1 %vm510_vm1, %v4307_v54  ;;  %3455 = vmatmul.msk.bf16.gmra.mxu2 %vm510_vm1, %v4492_v6 }
 0x1ef   : > { %3396 = vmatmul.msk.bf16.gmra.mxu3 %vm510_vm1, %v3852_v17 }
 0x1f0   : > { %v4644_v39 = vpop.f32.mrf.mxu0 }
 0x1f1   : > { %5566 = vst [vmem:[#allocation49_spill] sm:$0xff] %v4644_v39  ;;  %v4662_v39 = vpop.f32.mrf.mxu2 }
 0x1f2   : > { %v1442_v23 = vpop.f32.mrf.mxu3  ;;  %5571 = vst [vmem:[#allocation54_spill] sm:$0xff] %v4662_v39  ;;  %v5610_v39 = vld [vmem:[#allocation25_spill] sm:$0xff] }
 0x1f3   : > { %v4626_v50 = vpop.f32.mrf.mxu1  ;;  %3482 = vmatmul.msk.bf16.gmra.mxu0 %vm510_vm1, %v3876_v47 }
 0x1f4   : > { %5562 = vst [vmem:[#allocation45_spill] sm:$0xff] %v4626_v50  ;;  %v5612_v50 = vld [vmem:[#allocation18_spill] sm:$0xff] }
 0x1fa   : > { %v1444_v13 = vpop.f32.mrf.mxu3 }
 0x1fb   : > { %v4632_v41 = vpop.f32.mrf.mxu1 }
 0x1fc   : > { %5564 = vst [vmem:[#allocation47_spill] sm:$0xff] %v4632_v41 }
 0x1fe   : > { %3438 = vmatmul.msk.bf16.gmra.mxu1 %vm510_vm1, %v4457_v36  ;;  %3456 = vmatmul.msk.bf16.gmra.mxu2 %vm510_vm1, %v4520_v21 }
 0x1ff   : > { %3397 = vmatmul.msk.bf16.gmra.mxu3 %vm510_vm1, %v3890_v2  ;;  %v4654_v2 = vpop.f32.mrf.mxu0 }
 0x200   : > { %5569 = vst [vmem:[#allocation52_spill] sm:$0xff] %v4654_v2 }
 0x202   : > { %v1447_v17 = vpop.f32.mrf.mxu3 }
 0x203   : > { %v4640_v54 = vpop.f32.mrf.mxu1  ;;  %3483 = vmatmul.msk.bf16.gmra.mxu0 %vm510_vm1, %v3914_v35 }
 0x204   : > { %5565 = vst [vmem:[#allocation48_spill] sm:$0xff] %v4640_v54 }
 0x207   : > { %v4664_v10 = vpop.f32.mrf.mxu0 }
 0x208   : > { %5572 = vst [vmem:[#allocation55_spill] sm:$0xff] %v4664_v10 }
 0x20a   : > { %v1449_v37 = vpop.f32.mrf.mxu3 }
 0x20b   : > { %v4646_v45 = vpop.f32.mrf.mxu1 }
 0x20c   : > { %5567 = vst [vmem:[#allocation50_spill] sm:$0xff] %v4646_v45 }
 0x20e   : > { %3439 = vmatmul.msk.bf16.gmra.mxu1 %vm510_vm1, %v4492_v6  ;;  %3457 = vmatmul.msk.bf16.gmra.mxu2 %vm510_vm1, %v4158_v58 }
 0x20f   : > { %3398 = vmatmul.msk.bf16.gmra.mxu3 %vm510_vm1, %v3928_v55  ;;  %v4674_v55 = vpop.f32.mrf.mxu2  ;;  %v4676_v16 = vpop.f32.mrf.mxu0 }
 0x210   : > { %5574 = vst [vmem:[#allocation57_spill] sm:$0xff] %v4674_v55  ;;  %v5601_v55 = vld [vmem:[#allocation19_spill] sm:$0xff] }
 0x211   : > { %5575 = vst [vmem:[#allocation58_spill] sm:$0xff] %v4676_v16 }
 0x212   : > { %v1452_v36 = vpop.f32.mrf.mxu3 }
 0x213   : > { %v4658_v9 = vpop.f32.mrf.mxu1  ;;  %3484 = vmatmul.msk.bf16.gmra.mxu0 %vm510_vm1, %v3952_v27 }
 0x214   : > { %5570 = vst [vmem:[#allocation53_spill] sm:$0xff] %v4658_v9 }
 0x21a   : > { %v1454_v49 = vpop.f32.mrf.mxu3 }
 0x21b   : > { %v4666_v6 = vpop.f32.mrf.mxu1 }
 0x21c   : > { %5573 = vst [vmem:[#allocation56_spill] sm:$0xff] %v4666_v6  ;;  %v4684_v6 = vpop.f32.mrf.mxu2 }
 0x21d   : > { %5578 = vst [vmem:[#allocation7_spill] sm:$0xff] %v4684_v6 }
 0x21e   : > { %3440 = vmatmul.msk.bf16.gmra.mxu1 %vm510_vm1, %v4520_v21  ;;  %3458 = vmatmul.msk.bf16.gmra.mxu2 %vm510_vm1, %v4238_v3 }
 0x21f   : > { %3399 = vmatmul.msk.bf16.gmra.mxu3 %vm510_vm1, %v3966_v0  ;;  %v4690_v0 = vpop.f32.mrf.mxu0 }
 0x220   : > { %5580 = vst [vmem:[#allocation61_spill] sm:$0xff] %v4690_v0 }
 0x222   : > { %v1537_v2 = vpop.f32.mrf.mxu3 }
 0x223   : > { %v4678_v9 = vadd.f32 %v1537_v2, %v1437_v46  ;;  %v4680_v10 = vpop.f32.mrf.mxu1  ;;  %3485 = vmatmul.msk.bf16.gmra.mxu0 %vm510_vm1, %v5577_v32  ;;  %v5581_v46 = vld [vmem:[#allocation8_spill] sm:$0xff] }
 0x224   : > { %5576 = vst [vmem:[#allocation59_spill] sm:$0xff] %v4680_v10  ;;  %v5582_v10 = vld [vmem:[#allocation9_spill] sm:$0xff] }
 0x227   : > { %v4706_v0 = vpop.f32.mrf.mxu0 }
 0x228   : > { %5585 = vst [vmem:[#allocation62_spill] sm:$0xff] %v4706_v0 }
 0x22a   : > { %v1539_v21 = vpop.f32.mrf.mxu3 }
 0x22b   : > { %v4686_v45 = vadd.f32 %v1539_v21, %v1439_v15  ;;  %v4688_v40 = vpop.f32.mrf.mxu1  ;;  %v4702_v15 = vpop.f32.mrf.mxu2 }
 0x22c   : > { %5579 = vst [vmem:[#allocation60_spill] sm:$0xff] %v4688_v40 }
 0x22d   : > { %5583 = vst [vmem:[#allocation8_spill] sm:$0xff] %v4702_v15 }
 0x22e   : > { %3441 = vmatmul.msk.bf16.gmra.mxu1 %vm510_vm1, %v4158_v58  ;;  %3459 = vmatmul.msk.bf16.gmra.mxu2 %vm510_vm1, %v4336_v4 }
 0x22f   : > { %3400 = vmatmul.msk.bf16.gmra.mxu3 %vm510_vm1, %v5581_v46 }
 0x232   : > { %v1542_v2 = vpop.f32.mrf.mxu3 }
 0x233   : > { %v4698_v16 = vadd.f32 %v1542_v2, %v1442_v23  ;;  %3486 = vmatmul.msk.bf16.gmra.mxu0 %vm510_vm1, %v5582_v10  ;;  %v4704_v21 = vpop.f32.mrf.mxu1  ;;  %v4710_v6 = vpop.f32.mrf.mxu2  ;;  %v5587_v23 = vld [vmem:[#allocation10_spill] sm:$0xff] }
 0x234   : > { %5584 = vst [vmem:[#allocation9_spill] sm:$0xff] %v4704_v21  ;;  %v4720_v2 = vpop.f32.mrf.mxu0 }
 0x235   : > { %5586 = vst [vmem:[#allocation63_spill] sm:$0xff] %v4710_v6 }
 0x236   : > { %5589 = vst [vmem:[#allocation64_spill] sm:$0xff] %v4720_v2 }
 0x23a   : > { %v1544_v40 = vpop.f32.mrf.mxu3 }
 0x23b   : > { %v4708_v58 = vadd.f32 %v1544_v40, %v1444_v13  ;;  %v4718_v46 = vpop.f32.mrf.mxu1  ;;  %v5590_v40 = vld [vmem:[#allocation11_spill] sm:$0xff] }
 0x23c   : > { %5588 = vst [vmem:[#allocation10_spill] sm:$0xff] %v4718_v46 }
 0x23e   : > { %3442 = vmatmul.msk.bf16.gmra.mxu1 %vm510_vm1, %v4238_v3  ;;  %3460 = vmatmul.msk.bf16.gmra.mxu2 %vm510_vm1, %v4413_v52  ;;  %v4728_v3 = vpop.f32.mrf.mxu0 }
 0x23f   : > { %3401 = vmatmul.msk.bf16.gmra.mxu3 %vm510_vm1, %v5587_v23  ;;  %5592 = vst [vmem:[#allocation65_spill] sm:$0xff] %v4728_v3  ;;  %v5593_v23 = vld [vmem:[#allocation13_spill] sm:$0xff] }
 0x242   : > { %v1547_v21 = vpop.f32.mrf.mxu3 }
 0x243   : > { %v4722_v0 = vadd.f32 %v1547_v21, %v1447_v17  ;;  %3487 = vmatmul.msk.bf16.gmra.mxu0 %vm510_vm1, %v5590_v40  ;;  %v4726_v13 = vpop.f32.mrf.mxu1  ;;  %v5594_v17 = vld [vmem:[#allocation17_spill] sm:$0xff] }
 0x244   : > { %5591 = vst [vmem:[#allocation11_spill] sm:$0xff] %v4726_v13 }
 0x246   : > { %v4742_v13 = vpop.f32.mrf.mxu0 }
 0x247   : > { %5596 = vst [vmem:[#allocation17_spill] sm:$0xff] %v4742_v13 }
 0x24a   : > { %v1549_v6 = vpop.f32.mrf.mxu3 }
 0x24b   : > { %v4730_v15 = vadd.f32 %v1549_v6, %v1449_v37  ;;  %v4740_v21 = vpop.f32.mrf.mxu1  ;;  %v3036_v37 = vld [vmem:[%s5472_s5] sm:$0x3] }
 0x24c   : > { %5595 = vst [vmem:[#allocation13_spill] sm:$0xff] %v4740_v21  ;;  %v3090_v6 = vsel %vm1364_vm4, %v3036_v37, 0  ;;  %v5600_v21 = vld [vmem:[#allocation12_spill] sm:$0xff]  ;;  %v4763_v37 = vpop.f32.mrf.mxu2 }
 0x24d   : > { %3099 = vmatpush.bf16.msra.mxu2 %v3090_v6 }
 0x24e   : > { %3443 = vmatmul.msk.bf16.gmra.mxu1 %vm510_vm1, %v4336_v4 }
 0x24f   : > { %3402 = vmatmul.msk.bf16.gmra.mxu3 %vm510_vm1, %v5593_v23 }
 0x252   : > { %v1552_v2 = vpop.f32.mrf.mxu3 }
 0x253   : > { %v4736_v46 = vadd.f32 %v1552_v2, %v1452_v36  ;;  %3488 = vmatmul.msk.bf16.gmra.mxu0 %vm510_vm1, %v5594_v17  ;;  %v4750_v23 = vpop.f32.mrf.mxu1  ;;  %v4754_v36 = vpop.f32.mrf.mxu0  ;;  %v5599_v2 = vld [vmem:[#allocation16_spill] sm:$0xff] }
 0x254   : > { %5597 = vst [vmem:[#allocation66_spill] sm:$0xff] %v4750_v23 }
 0x255   : > { %5598 = vst [vmem:[#allocation67_spill] sm:$0xff] %v4754_v36 }
 0x256   : > { %5602 = vst [vmem:[#allocation16_spill] sm:$0xff] %v4763_v37 }
 0x25a   : > { %v1554_v4 = vpop.f32.mrf.mxu3 }
 0x25b   : > { %v4748_v3 = vadd.f32 %v1554_v4, %v1454_v49  ;;  %v4765_v49 = vpop.f32.mrf.mxu1  ;;  %v4767_v6 = vpop.f32.mrf.mxu0 }
 0x25c   : > { %5603 = vst [vmem:[#allocation12_spill] sm:$0xff] %v4765_v49  ;;  %v5609_v49 = vld [vmem:[#allocation15_spill] sm:$0xff] }
 0x25e   : > { %3444 = vmatmul.msk.bf16.gmra.mxu1 %vm510_vm1, %v4413_v52  ;;  %v5604_v52 = vld [vmem:[#allocation14_spill] sm:$0xff] }
 0x25f   : > { %3403 = vmatmul.msk.bf16.gmra.mxu3 %vm510_vm1, %v5599_v2  ;;  %v5605_v2 = vld [vmem:[#allocation21_spill] sm:$0xff] }
 0x262   : > { %v1579_v13 = vpop.f32.mrf.mxu3 }
 0x263   : > { %v4759_v54 = vadd.f32 %v1579_v13, %v5600_v21  ;;  %3489 = vmatmul.msk.bf16.gmra.mxu0 %vm510_vm1, %v5601_v55  ;;  %v4776_v13 = vpop.f32.mrf.mxu2  ;;  %v4778_v21 = vpop.f32.mrf.mxu1 }
 0x264   : > { %5606 = vst [vmem:[#allocation19_spill] sm:$0xff] %v4776_v13  ;;  %v4780_v37 = vpop.f32.mrf.mxu0 }
 0x265   : > { %5607 = vst [vmem:[#allocation14_spill] sm:$0xff] %v4778_v21 }
 0x266   : > { %5608 = vst [vmem:[#allocation21_spill] sm:$0xff] %v4780_v37 }
 0x26a   : > { %v1581_v4 = vpop.f32.mrf.mxu3 }
 0x26b   : > { %v4770_v23 = vadd.f32 %v1581_v4, %v5604_v52  ;;  %v4787_v52 = vpop.f32.mrf.mxu2 }
 0x26c   : > { %5611 = vst [vmem:[#allocation15_spill] sm:$0xff] %v4787_v52  ;;  %v4794_v13 = vpop.f32.mrf.mxu0  ;;  %v5619_v52 = vld [vmem:[#allocation23_spill] sm:$0xff] }
 0x26e   : > { %3497 = vmatmul.msk.bf16.vlgmr.msra.gmra.mxu1 %vm510_vm1, %v3842_v63 }
 0x26f   : > { %3404 = vmatmul.msk.bf16.gmra.mxu3 %vm510_vm1, %v5605_v2  ;;  %v4792_v2 = vpop.f32.mrf.mxu1 }
 0x270   : > { %5614 = vst [vmem:[#allocation18_spill] sm:$0xff] %v4792_v2 }
 0x272   : > { %v1584_v36 = vpop.f32.mrf.mxu3 }
 0x273   : > { %v4783_v41 = vadd.f32 %v1584_v36, %v5609_v49  ;;  %3490 = vmatmul.msk.bf16.gmra.mxu0 %vm510_vm1, %v5610_v39  ;;  %v5615_v49 = vld [vmem:[#allocation20_spill] sm:$0xff]  ;;  %v4805_v21 = vpop.f32.mrf.mxu2 }
 0x274   : > { %5617 = vst [vmem:[#allocation68_spill] sm:$0xff] %v4805_v21 }
 0x27a   : > { %v1586_v4 = vpop.f32.mrf.mxu3 }
 0x27b   : > { %v4790_v14 = vadd.f32 %v1586_v4, %v5612_v50  ;;  %v4807_v50 = vpop.f32.mrf.mxu1  ;;  %v4809_v4 = vpop.f32.mrf.mxu0 }
 0x27c   : > { %5618 = vst [vmem:[#allocation69_spill] sm:$0xff] %v4807_v50 }
 0x27d   : > { %5613 = vst [vmem:[#allocation25_spill] sm:$0xff] %v4790_v14 }
 0x27e   : > { %3498 = vmatmul.msk.bf16.gmra.mxu1 %vm510_vm1, %v3876_v47 }
 0x27f   : > { %3405 = vmatmul.msk.bf16.gmra.mxu3 %vm510_vm1, %v4360_v34  ;;  %v4816_v34 = vpop.f32.mrf.mxu2 }
 0x280   : > { %5621 = vst [vmem:[#allocation70_spill] sm:$0xff] %v4816_v34 }
 0x282   : > { %v1589_v36 = vpop.f32.mrf.mxu3 }
 0x283   : > { %v4801_v37 = vadd.f32 %v1589_v36, %v5615_v49  ;;  %3491 = vmatmul.msk.bf16.gmra.mxu0 %vm510_vm1, %v4384_v51  ;;  %v4820_v36 = vpop.f32.mrf.mxu1  ;;  %v4822_v49 = vpop.f32.mrf.mxu0 }
 0x284   : > { %5622 = vst [vmem:[#allocation71_spill] sm:$0xff] %v4820_v36 }
 0x285   : > { %5616 = vst [vmem:[#allocation20_spill] sm:$0xff] %v4801_v37  ;;  %v5624_v37 = vld [vmem:[#allocation26_spill] sm:$0xff] }
 0x28a   : > { %v1591_v2 = vpop.f32.mrf.mxu3 }
 0x28b   : > { %v4812_v14 = vadd.f32 %v1591_v2, %v5619_v52  ;;  %v4829_v52 = vpop.f32.mrf.mxu2  ;;  %v4831_v2 = vpop.f32.mrf.mxu1 }
 0x28c   : > { %5625 = vst [vmem:[#allocation26_spill] sm:$0xff] %v4829_v52  ;;  %v4833_v34 = vpop.f32.mrf.mxu0 }
 0x28d   : > { %5620 = vst [vmem:[#allocation23_spill] sm:$0xff] %v4812_v14 }
 0x28e   : > { %3499 = vmatmul.msk.bf16.gmra.mxu1 %vm510_vm1, %v3914_v35  ;;  %5626 = vst [vmem:[#allocation73_spill] sm:$0xff] %v4831_v2 }
 0x28f   : > { %3406 = vmatmul.msk.bf16.gmra.mxu3 %vm510_vm1, %v4364_v44 }
 0x292   : > { %v1594_v21 = vpop.f32.mrf.mxu3 }
 0x293   : > { %v4825_v50 = vadd.f32 %v1594_v21, %v4358_v29  ;;  %3492 = vmatmul.msk.bf16.gmra.mxu0 %vm510_vm1, %v5624_v37  ;;  %v4842_v21 = vpop.f32.mrf.mxu2  ;;  %v4849_v2 = vpop.f32.mrf.mxu1 }
 0x294   : > { %5628 = vst [vmem:[#allocation75_spill] sm:$0xff] %v4842_v21  ;;  %v4851_v52 = vpop.f32.mrf.mxu0  ;;  %v618_v21 = vadd.s32 272, %v3677_v24 }
 0x295   : > { %5623 = vst [vmem:[#allocation72_spill] sm:$0xff] %v4825_v50 }
 0x296   : > { %5630 = vst [vmem:[#allocation77_spill] sm:$0xff] %v4849_v2  ;;  %v862_v50 = vand.u32 15, %v618_v21  ;;  %v5642_v21 = vld [vmem:[#allocation4_spill] sm:$0xff] }
 0x297   : > { %5631 = vst [vmem:[#allocation78_spill] sm:$0xff] %v4851_v52  ;;  %v1086_v52 = vrot.slane %v4418_v56, 7 }
 0x298   : > { %vm1159_vm4 = vcmp.eq.s32.totalorder %v862_v50, 0 }
 0x29a   : > { %v1596_v14 = vpop.f32.mrf.mxu3 }
 0x29b   : > { %v4836_v44 = vadd.f32 %v1596_v14, %v4409_v12 }
 0x29d   : > { %5627 = vst [vmem:[#allocation74_spill] sm:$0xff] %v4836_v44  ;;  %v4856_v44 = vpop.f32.mrf.mxu2 }
 0x29e   : > { %3500 = vmatmul.msk.bf16.gmra.mxu1 %vm510_vm1, %v3952_v27  ;;  %5633 = vst [vmem:[#allocation80_spill] sm:$0xff] %v4856_v44 }
 0x29f   : > { %3407 = vmatmul.msk.bf16.gmra.mxu3 %vm510_vm1, %v4440_v18  ;;  %v4858_v18 = vpop.f32.mrf.mxu1 }
 0x2a0   : > { %5634 = vst [vmem:[#allocation81_spill] sm:$0xff] %v4858_v18 }
 0x2a2   : > { %v1599_v29 = vpop.f32.mrf.mxu3 }
 0x2a3   : > { %v4845_v36 = vadd.f32 %v1599_v29, %v4438_v30  ;;  %3493 = vmatmul.msk.bf16.gmra.mxu0 %vm510_vm1, %v4416_v60  ;;  %v4862_v30 = vpop.f32.mrf.mxu0 }
 0x2a4   : > { %5635 = vst [vmem:[#allocation82_spill] sm:$0xff] %v4862_v30 }
 0x2a5   : > { %5629 = vst [vmem:[#allocation76_spill] sm:$0xff] %v4845_v36  ;;  %v4877_v44 = vpop.f32.mrf.mxu2 }
 0x2a6   : > { %5637 = vst [vmem:[#allocation84_spill] sm:$0xff] %v4877_v44 }
 0x2a7   : > { %v4880_v36 = vpop.f32.mrf.mxu1 }
 0x2a8   : > { %5638 = vst [vmem:[#allocation85_spill] sm:$0xff] %v4880_v36 }
 0x2aa   : > { %v1601_v12 = vpop.f32.mrf.mxu3 }
 0x2ab   : > { %v4854_v14 = vadd.f32 %v1601_v12, %v4463_v8  ;;  %v1725_v8 = vpack.c.bf16 %v4418_v56, %v4418_v56  ;;  %v4873_v12 = vld [vmem:[#allocation2 + $0x118] sm:$0xff] }
 0x2ac   : > { %v1726_v18 = vpack.c.bf16 %v4873_v12, %v4873_v12 }
 0x2ad   : > { %5632 = vst [vmem:[#allocation79_spill] sm:$0xff] %v4854_v14 }
 0x2ae   : > { %3501 = vmatmul.msk.bf16.gmra.mxu1 %vm510_vm1, %v5577_v32  ;;  %v2120_v14 = vunpack.c.l.b16 %v1726_v18  ;;  %v5639_v18 = vrot.slane %v4393_v59, 7 }
 0x2af   : > { %3408 = vmatmul.msk.bf16.gmra.mxu3 %vm510_vm1, %v4475_v61  ;;  %v2119_v61 = vunpack.c.l.b16 %v1725_v8  ;;  %v4897_v8 = vpop.f32.mrf.mxu2 }
 0x2b0   : > { %5640 = vst [vmem:[#allocation86_spill] sm:$0xff] %v4897_v8 }
 0x2b2   : > { %v1604_v29 = vpop.f32.mrf.mxu3 }
 0x2b3   : > { %v4867_v2 = vadd.f32 %v1604_v29, %v4473_v28  ;;  %3494 = vmatmul.msk.bf16.gmra.mxu0 %vm510_vm1, %v4427_v38  ;;  %v4882_v28 = vpop.f32.mrf.mxu0  ;;  %v2121_v29 = vpack.c.b16 %v2120_v14, %v2119_v61  ;;  %v1090_v14 = vsel %vm1088_vm2, %v5639_v18, %v1086_v52  ;;  %v5643_v61 = vrot.slane %v5642_v21, 7 }
 0x2b4   : > { %v1195_v36 = vsel %vm1159_vm4, 0.0, %v1090_v14 }
 0x2b5   : > { %5636 = vst [vmem:[#allocation83_spill] sm:$0xff] %v4867_v2  ;;  %3461 = vmatmul.msk.bf16.gmra.mxu2 %vm510_vm1, %v2121_v29  ;;  %v1089_v29 = vsel %vm1088_vm2, %v1086_v52, %v5643_v61  ;;  %v1231_v59 = vpack.c.bf16 %v1195_v36, %v1195_v36 }
 0x2b6   : > { %v1232_v50 = vpack.c.bf16 %v1089_v29, %v1089_v29 }
 0x2b7   : > { %v1561_v18 = vunpack.c.l.b16 %v1231_v59  ;;  %v4912_v56 = vpop.f32.mrf.mxu2  ;;  %v5647_v59 = vld [vmem:[#allocation5_spill] sm:$0xff] }
 0x2b8   : > { %v1562_v8 = vunpack.c.l.b16 %v1232_v50 }
 0x2ba   : > { %v1606_v2 = vpop.f32.mrf.mxu3  ;;  %v1563_v14 = vpack.c.b16 %v1562_v8, %v1561_v18 }
 0x2bb   : > { %v4885_v30 = vadd.f32 %v1606_v2, %v4500_v53  ;;  %v4899_v53 = vpop.f32.mrf.mxu1  ;;  %v4905_v44 = vpop.f32.mrf.mxu0 }
 0x2bc   : > { %5641 = vst [vmem:[#allocation87_spill] sm:$0xff] %v4899_v53 }
 0x2be   : > { %3502 = vmatmul.msk.bf16.gmra.mxu1 %vm510_vm1, %v5582_v10 }
 0x2bf   : > { %3409 = vmatmul.msk.bf16.gmra.mxu3 %vm510_vm1, %v4510_v1 }
 0x2c2   : > { %v1609_v2 = vpop.f32.mrf.mxu3 }
 0x2c3   : > { %v4908_v1 = vadd.f32 %v1609_v2, %v4508_v19  ;;  %3495 = vmatmul.msk.bf16.gmra.mxu0 %vm510_vm1, %v4453_v26  ;;  %v4917_v52 = vpop.f32.mrf.mxu1  ;;  %v4925_v2 = vpop.f32.mrf.mxu2 }
 0x2c4   : > { %5644 = vst [vmem:[#allocation4_spill] sm:$0xff] %v4917_v52 }
 0x2ca   : > { %v1611_v53 = vpop.f32.mrf.mxu3 }
 0x2cb   : > { %v4915_v21 = vadd.f32 %v1611_v53, %v4524_v42  ;;  %v4927_v61 = vpop.f32.mrf.mxu1  ;;  %v4934_v8 = vpop.f32.mrf.mxu2  ;;  %v5646_v53 = vld [vmem:[#allocation6_spill] sm:$0xff] }
 0x2cc   : > { %5645 = vst [vmem:[#allocation88_spill] sm:$0xff] %v4927_v61  ;;  %v5648_v50 = vpack.c.b16 %v5646_v53, %v5647_v59 }
 0x2ce   : > { %3503 = vmatmul.msk.bf16.gmra.mxu1 %vm510_vm1, %v5590_v40 }
 0x2cf   : > { %3410 = vmatmul.msk.bf16.gmra.mxu3 %vm510_vm1, %v1563_v14 }
 0x2d2   : > { %v1614_v19 = vpop.f32.mrf.mxu3 }
 0x2d3   : > { %v4923_v36 = vadd.f32 %v1614_v19, %v4528_v22  ;;  %v4940_v22 = vpop.f32.mrf.mxu1  ;;  %v4945_v19 = vpop.f32.mrf.mxu2 }
 0x2d4   : > { %5649 = vst [vmem:[#allocation6_spill] sm:$0xff] %v4940_v22 }
 0x2da   : > { %v1616_v29 = vpop.f32.mrf.mxu3 }
 0x2db   : > { %v4930_v42 = vadd.f32 %v1616_v29, %v4540_v31  ;;  %v4947_v31 = vpop.f32.mrf.mxu1  ;;  %v4956_v59 = vpop.f32.mrf.mxu2 }
 0x2dc   : > { %5650 = vst [vmem:[#allocation5_spill] sm:$0xff] %v4947_v31 }
 0x2de   : > { %3504 = vmatmul.msk.bf16.gmra.mxu1 %vm510_vm1, %v5594_v17 }
 0x2df   : > { %3463 = vmatmul.msk.bf16.vlgmr.msra.gmra.mxu3 %vm510_vm1, %v5648_v50 }
 0x2e2   : > { %v1619_v18 = vpop.f32.mrf.mxu3 }
 0x2e3   : > { %v4943_v14 = vadd.f32 %v1619_v18, %v4544_v11  ;;  %v4961_v50 = vpop.f32.mrf.mxu1 }
 0x2e4   : > { %5651 = vst [vmem:[#allocation89_spill] sm:$0xff] %v4961_v50 }
 0x2ea   : > { %v1621_v29 = vpop.f32.mrf.mxu3 }
 0x2eb   : > { %v4950_v61 = vadd.f32 %v1621_v29, %v4558_v5  ;;  %v4966_v5 = vpop.f32.mrf.mxu2  ;;  %v4968_v29 = vpop.f32.mrf.mxu1 }
 0x2ec   : > { %5652 = vst [vmem:[#allocation90_spill] sm:$0xff] %v4968_v29 }
 0x2ee   : > { %3505 = vmatmul.msk.bf16.gmra.mxu1 %vm510_vm1, %v5601_v55 }
 0x2ef   : > { %3464 = vmatmul.msk.bf16.gmra.mxu3 %vm510_vm1, %v3810_v20 }
 0x2f2   : > { %v1624_v53 = vpop.f32.mrf.mxu3 }
 0x2f3   : > { %v4959_v11 = vadd.f32 %v1624_v53, %v4562_v43  ;;  %v4977_v53 = vpop.f32.mrf.mxu2  ;;  %v2078_v50 = vpop.f32.mrf.mxu1 }
 0x2fa   : > { %v1626_v18 = vpop.f32.mrf.mxu3 }
 0x2fb   : > { %v4964_v31 = vadd.f32 %v1626_v18, %v4578_v33  ;;  %v4986_v18 = vpop.f32.mrf.mxu2 }
 0x2fc   : > { %5653 = vst [vmem:[#allocation91_spill] sm:$0xff] %v4986_v18 }
 0x2fe   : > { %3506 = vmatmul.msk.bf16.gmra.mxu1 %vm510_vm1, %v5610_v39 }
 0x2ff   : > { %3465 = vmatmul.msk.bf16.gmra.mxu3 %vm510_vm1, %v3842_v63  ;;  %v4988_v63 = vpop.f32.mrf.mxu1 }
 0x300   : > { %5654 = vst [vmem:[#allocation92_spill] sm:$0xff] %v4988_v63 }
 0x302   : > { %v1629_v20 = vpop.f32.mrf.mxu3 }
 0x303   : > { %v4975_v43 = vadd.f32 %v1629_v20, %v4586_v48  ;;  %v4993_v52 = vpop.f32.mrf.mxu2 }
 0x304   : > { %5655 = vst [vmem:[#allocation93_spill] sm:$0xff] %v4993_v52 }
 0x30a   : > { %v1631_v22 = vpop.f32.mrf.mxu3 }
 0x30b   : > { %v4980_v33 = vadd.f32 %v1631_v22, %v4598_v57  ;;  %v2840_v22 = vpop.f32.mrf.mxu1  ;;  %v5005_v18 = vpop.f32.mrf.mxu2 }
 0x30c   : > { %5656 = vst [vmem:[#allocation94_spill] sm:$0xff] %v5005_v18 }
 0x30e   : > { %3507 = vmatmul.msk.bf16.gmra.mxu1 %vm510_vm1, %v4384_v51 }
 0x30f   : > { %3466 = vmatmul.msk.bf16.gmra.mxu3 %vm510_vm1, %v3876_v47 }
 0x312   : > { %v1634_v29 = vpop.f32.mrf.mxu3 }
 0x313   : > { %v4991_v48 = vadd.f32 %v1634_v29, %v4600_v7  ;;  %v2842_v7 = vpop.f32.mrf.mxu1 }
 0x31a   : > { %v1636_v20 = vpop.f32.mrf.mxu3 }
 0x31b   : > { %v4996_v57 = vadd.f32 %v1636_v20, %v4612_v62  ;;  %v5012_v62 = vpop.f32.mrf.mxu2 }
 0x31c   : > { %5657 = vst [vmem:[#allocation95_spill] sm:$0xff] %v5012_v62 }
 0x31e   : > { %3508 = vmatmul.msk.bf16.gmra.mxu1 %vm510_vm1, %v5624_v37 }
 0x31f   : > { %3467 = vmatmul.msk.bf16.gmra.mxu3 %vm510_vm1, %v3914_v35  ;;  %v5016_v35 = vpop.f32.mrf.mxu1 }
 0x322   : > { %v1639_v47 = vpop.f32.mrf.mxu3 }
 0x323   : > { %v5003_v63 = vadd.f32 %v1639_v47, %v4678_v9  ;;  %v5021_v47 = vpop.f32.mrf.mxu2 }
 0x324   : > { %5659 = vst [vmem:[#allocation97_spill] sm:$0xff] %v5021_v47 }
 0x327   : > { %v5023_v18 = vpop.f32.mrf.mxu1 }
 0x32a   : > { %v1641_v29 = vpop.f32.mrf.mxu3 }
 0x32b   : > { %v5008_v52 = vadd.f32 %v1641_v29, %v4686_v45 }
 0x32e   : > { %3509 = vmatmul.msk.bf16.gmra.mxu1 %vm510_vm1, %v4416_v60 }
 0x32f   : > { %3468 = vmatmul.msk.bf16.gmra.mxu3 %vm510_vm1, %v3952_v27 }
 0x332   : > { %v1644_v20 = vpop.f32.mrf.mxu3 }
 0x333   : > { %v5019_v9 = vadd.f32 %v1644_v20, %v4698_v16  ;;  %v5035_v16 = vpop.f32.mrf.mxu2  ;;  %v5037_v20 = vpop.f32.mrf.mxu1 }
 0x334   : > { %5662 = vst [vmem:[#allocation100_spill] sm:$0xff] %v5035_v16 }
 0x335   : > { %5658 = vst [vmem:[#allocation96_spill] sm:$0xff] %v5019_v9 }
 0x33a   : > { %v1646_v45 = vpop.f32.mrf.mxu3 }
 0x33b   : > { %v5026_v29 = vadd.f32 %v1646_v45, %v4708_v58  ;;  %v5042_v58 = vpop.f32.mrf.mxu2  ;;  %v5044_v45 = vpop.f32.mrf.mxu1 }
 0x33c   : > { %5664 = vst [vmem:[#allocation102_spill] sm:$0xff] %v5042_v58 }
 0x33d   : > { %5660 = vst [vmem:[#allocation98_spill] sm:$0xff] %v5026_v29 }
 0x33e   : > { %3510 = vmatmul.msk.bf16.gmra.mxu1 %vm510_vm1, %v4427_v38 }
 0x33f   : > { %3469 = vmatmul.msk.bf16.gmra.mxu3 %vm510_vm1, %v5577_v32 }
 0x342   : > { %v1649_v27 = vpop.f32.mrf.mxu3 }
 0x343   : > { %v5033_v62 = vadd.f32 %v1649_v27, %v4722_v0  ;;  %v2212_v16 = vpop.f32.mrf.mxu2 }
 0x345   : > { %5661 = vst [vmem:[#allocation99_spill] sm:$0xff] %v5033_v62 }
 0x34a   : > { %v1651_v47 = vpop.f32.mrf.mxu3 }
 0x34b   : > { %v5040_v9 = vadd.f32 %v1651_v47, %v4730_v15  ;;  %v5665_v15 = vld [vmem:[#allocation22_spill] sm:$0xff] }
 0x34c   : > { %v1949_v47 = vadd.f32 %v5665_v15, %v4759_v54  ;;  %v5668_v54 = vld [vmem:[#allocation45_spill] sm:$0xff] }
 0x34d   : > { %5663 = vst [vmem:[#allocation101_spill] sm:$0xff] %v5040_v9 }
 0x34e   : > { %3511 = vmatmul.msk.bf16.gmra.mxu1 %vm510_vm1, %v4453_v26  ;;  %v2083_v26 = vadd.f32 %v4616_v25, %v1949_v47  ;;  %v5670_v25 = vld [vmem:[#allocation54_spill] sm:$0xff] }
 0x34f   : > { %3470 = vmatmul.msk.bf16.gmra.mxu3 %vm510_vm1, %v5582_v10  ;;  %v5666_v10 = vld [vmem:[#allocation24_spill] sm:$0xff] }
 0x352   : > { %v1654_v32 = vpop.f32.mrf.mxu3 }
 0x353   : > { %v1689_v0 = vadd.f32 %v1654_v32, %v4736_v46  ;;  %v1950_v46 = vadd.f32 %v5666_v10, %v4770_v23  ;;  %v5075_v23 = vld [vmem:[%s5471_s4] ss:$0 sm:$0xff] }
 0x355   : > { %v1979_v27 = vadd.f32 %v4767_v6, %v1689_v0  ;;  %v5667_v6 = vld [vmem:[#allocation51_spill] sm:$0xff] }
 0x356   : > { %v2217_v32 = vadd.f32 %v5667_v6, %v2083_v26  ;;  %v5671_v6 = vld [vmem:[#allocation47_spill] sm:$0xff] }
 0x357   : > { %v2113_v62 = vadd.f32 %v2078_v50, %v1979_v27  ;;  %v5065_v27 = vpop.f32.mrf.mxu1 }
 0x359   : > { %v5054_v9 = vadd.f32 %v2212_v16, %v2113_v62  ;;  %v2084_v62 = vadd.f32 %v5668_v54, %v1950_v46 }
 0x35a   : > { %v1656_v58 = vpop.f32.mrf.mxu3 }
 0x35b   : > { %v5057_v29 = vadd.f32 %v1656_v58, %v4748_v3  ;;  %v5669_v3 = vld [vmem:[#allocation27_spill] sm:$0xff]  ;;  %v2218_v15 = vadd.f32 %v5670_v25, %v2084_v62  ;;  %v5674_v62 = vld [vmem:[#allocation57_spill] sm:$0xff] }
 0x35c   : > { %v1951_v58 = vadd.f32 %v5669_v3, %v4783_v41  ;;  %v5672_v41 = vld [vmem:[#allocation25_spill] sm:$0xff] }
 0x35f   : > { %3471 = vmatmul.msk.bf16.gmra.mxu3 %vm510_vm1, %v5590_v40  ;;  %v5079_v46 = vpop.f32.mrf.mxu1 }
 0x362   : > { %v2572_v50 = vpop.f32.mrf.mxu3 }
 0x363   : > { %v2652_v0 = vadd.f32 %v2572_v50, %v2217_v32  ;;  %v2085_v32 = vadd.f32 %v5671_v6, %v1951_v58  ;;  %v5088_v58 = vpop.f32.mrf.mxu0 }
 0x365   : > { %v2786_v16 = vadd.f32 %v4794_v13, %v2652_v0 }
 0x367   : > { %v2920_v40 = vadd.f32 %v2840_v22, %v2786_v16  ;;  %v5673_v22 = vld [vmem:[#allocation29_spill] sm:$0xff]  ;;  %v2219_v16 = vadd.f32 %v5674_v62, %v2085_v32 }
 0x368   : > { %v1952_v0 = vadd.f32 %v5673_v22, %v5672_v41  ;;  %v5095_v41 = vpop.f32.mrf.mxu1 }
 0x369   : > { %v2956_v13 = vadd.f32 %v5075_v23, %v2920_v40 }
 0x36a   : > { %v2574_v47 = vpop.f32.mrf.mxu3 }
 0x36b   : > { %v2653_v26 = vadd.f32 %v2574_v47, %v2218_v15  ;;  %v2988_v25 = vmax.f32 %v2956_v13, 0.0 }
 0x36d   : > { %v2787_v10 = vadd.f32 %v4809_v4, %v2653_v26  ;;  %v5675_v26 = vld [vmem:[#allocation48_spill] sm:$0xff] }
 0x36e   : > { %v2086_v40 = vadd.f32 %v5675_v26, %v1952_v0  ;;  %v5101_v0 = vpop.f32.mrf.mxu0 }
 0x36f   : > { %v2921_v50 = vadd.f32 %v2842_v7, %v2787_v10  ;;  %3472 = vmatmul.msk.bf16.gmra.mxu3 %vm510_vm1, %v5594_v17  ;;  %v5676_v17 = vld [vmem:[#allocation20_spill] sm:$0xff]  ;;  %v5677_v10 = vld [vmem:[#allocation30_spill] sm:$0xff] }
 0x370   : > { %v1953_v6 = vadd.f32 %v5677_v10, %v5676_v17 }
 0x371   : > { %v2957_v54 = vadd.f32 %v5075_v23, %v2921_v50  ;;  %v5678_v50 = vld [vmem:[#allocation7_spill] sm:$0xff] }
 0x372   : > { %v2577_v3 = vpop.f32.mrf.mxu3  ;;  %v2220_v32 = vadd.f32 %v5678_v50, %v2086_v40 }
 0x373   : > { %v2989_v4 = vmax.f32 %v2957_v54, 0.0  ;;  %v2654_v15 = vadd.f32 %v2577_v3, %v2219_v16  ;;  %v5679_v16 = vld [vmem:[#allocation50_spill] sm:$0xff] }
 0x374   : > { %v2087_v3 = vadd.f32 %v5679_v16, %v1953_v6 }
 0x375   : > { %v3020_v47 = vpack.c.bf16 %v2989_v4, %v2988_v25  ;;  %v2788_v7 = vadd.f32 %v4822_v49, %v2654_v15  ;;  %v5680_v4 = vld [vmem:[#allocation23_spill] sm:$0xff] }
 0x376   : > { %v5681_v15 = vld [vmem:[#allocation31_spill] sm:$0xff]  ;;  %v5118_v16 = vpop.f32.mrf.mxu0 }
 0x377   : > { %3513 = vmatmul.msk.bf16.vlgmr.msra.gmra.mxu2 %vm510_vm1, %v3020_v47  ;;  %v2922_v13 = vadd.f32 %v5016_v35, %v2788_v7  ;;  %v1954_v47 = vadd.f32 %v5681_v15, %v5680_v4  ;;  %v5682_v35 = vld [vmem:[#allocation8_spill] sm:$0xff] }
 0x378   : > { %v2221_v40 = vadd.f32 %v5682_v35, %v2087_v3  ;;  %v5688_v35 = vld [vmem:[#allocation82_spill] sm:$0xff] }
 0x379   : > { %v2958_v49 = vadd.f32 %v5075_v23, %v2922_v13 }
 0x37a   : > { %v2579_v22 = vpop.f32.mrf.mxu3 }
 0x37b   : > { %v2655_v54 = vadd.f32 %v2579_v22, %v2220_v32  ;;  %v2990_v17 = vmax.f32 %v2958_v49, 0.0  ;;  %v5683_v32 = vld [vmem:[#allocation53_spill] sm:$0xff] }
 0x37c   : > { %v2088_v22 = vadd.f32 %v5683_v32, %v1954_v47  ;;  %v5689_v47 = vld [vmem:[#allocation56_spill] sm:$0xff] }
 0x37d   : > { %v2789_v62 = vadd.f32 %v4833_v34, %v2655_v54  ;;  %v5111_v34 = vpop.f32.mrf.mxu1  ;;  %v5686_v54 = vld [vmem:[#allocation32_spill] sm:$0xff] }
 0x37f   : > { %v2923_v25 = vadd.f32 %v5023_v18, %v2789_v62  ;;  %3473 = vmatmul.msk.bf16.gmra.mxu3 %vm510_vm1, %v5601_v55  ;;  %v5684_v18 = vld [vmem:[#allocation78_spill] sm:$0xff]  ;;  %v5685_v55 = vld [vmem:[#allocation72_spill] sm:$0xff] }
 0x380   : > { %v1955_v62 = vadd.f32 %v5686_v54, %v5685_v55  ;;  %v5134_v55 = vpop.f32.mrf.mxu0 }
 0x381   : > { %v2959_v26 = vadd.f32 %v5075_v23, %v2923_v25  ;;  %v5687_v25 = vld [vmem:[#allocation63_spill] sm:$0xff] }
 0x382   : > { %v2582_v7 = vpop.f32.mrf.mxu3  ;;  %v2222_v3 = vadd.f32 %v5687_v25, %v2088_v22 }
 0x383   : > { %v2991_v10 = vmax.f32 %v2959_v26, 0.0  ;;  %v2656_v6 = vadd.f32 %v2582_v7, %v2221_v40  ;;  %v2089_v7 = vadd.f32 %v5689_v47, %v1955_v62  ;;  %v5696_v47 = vld [vmem:[#allocation19_spill] sm:$0xff] }
 0x385   : > { %v3021_v50 = vpack.c.bf16 %v2991_v10, %v2990_v17  ;;  %v2790_v13 = vadd.f32 %v5684_v18, %v2656_v6  ;;  %v5122_v26 = vpop.f32.mrf.mxu1  ;;  %v5690_v6 = vld [vmem:[#allocation74_spill] sm:$0xff] }
 0x387   : > { %3514 = vmatmul.msk.bf16.gmra.mxu2 %vm510_vm1, %v3021_v50  ;;  %v2924_v15 = vadd.f32 %v5037_v20, %v2790_v13  ;;  %v5691_v50 = vld [vmem:[#allocation33_spill] sm:$0xff]  ;;  %v5692_v20 = vld [vmem:[#allocation16_spill] sm:$0xff] }
 0x388   : > { %v1956_v32 = vadd.f32 %v5691_v50, %v5690_v6  ;;  %v2223_v18 = vadd.f32 %v5692_v20, %v2089_v7  ;;  %v5145_v50 = vpop.f32.mrf.mxu0 }
 0x389   : > { %v2960_v17 = vadd.f32 %v5075_v23, %v2924_v15 }
 0x38a   : > { %v2584_v4 = vpop.f32.mrf.mxu3 }
 0x38b   : > { %v2657_v49 = vadd.f32 %v2584_v4, %v2222_v3  ;;  %v2992_v54 = vmax.f32 %v2960_v17, 0.0  ;;  %v5693_v4 = vld [vmem:[#allocation59_spill] sm:$0xff] }
 0x38c   : > { %v2090_v15 = vadd.f32 %v5693_v4, %v1956_v32  ;;  %v5697_v32 = vld [vmem:[#allocation60_spill] sm:$0xff] }
 0x38d   : > { %v2791_v40 = vadd.f32 %v5688_v35, %v2657_v49  ;;  %v5694_v49 = vld [vmem:[#allocation76_spill] sm:$0xff]  ;;  %v5695_v35 = vld [vmem:[#allocation34_spill] sm:$0xff] }
 0x38e   : > { %v2224_v7 = vadd.f32 %v5696_v47, %v2090_v15 }
 0x38f   : > { %v2925_v10 = vadd.f32 %v5044_v45, %v2791_v40  ;;  %3474 = vmatmul.msk.bf16.gmra.mxu3 %vm510_vm1, %v5610_v39  ;;  %v5137_v45 = vpop.f32.mrf.mxu1  ;;  %v1957_v40 = vadd.f32 %v5695_v35, %v5694_v49 }
 0x391   : > { %v2961_v22 = vadd.f32 %v5075_v23, %v2925_v10  ;;  %v2091_v20 = vadd.f32 %v5697_v32, %v1957_v40  ;;  %v5701_v40 = vld [vmem:[#allocation9_spill] sm:$0xff] }
 0x392   : > { %v2587_v13 = vpop.f32.mrf.mxu3 }
 0x393   : > { %v2993_v25 = vmax.f32 %v2961_v22, 0.0  ;;  %v2658_v62 = vadd.f32 %v2587_v13, %v2223_v18  ;;  %v5698_v13 = vld [vmem:[#allocation79_spill] sm:$0xff] }
 0x395   : > { %v3022_v3 = vpack.c.bf16 %v2993_v25, %v2992_v54  ;;  %v2792_v39 = vadd.f32 %v4882_v28, %v2658_v62  ;;  %v5699_v54 = vld [vmem:[#allocation35_spill] sm:$0xff] }
 0x396   : > { %v1958_v25 = vadd.f32 %v5699_v54, %v5698_v13  ;;  %v5705_v13 = vld [vmem:[#allocation10_spill] sm:$0xff] }
 0x397   : > { %3515 = vmatmul.msk.bf16.gmra.mxu2 %vm510_vm1, %v3022_v3  ;;  %v2926_v6 = vadd.f32 %v5065_v27, %v2792_v39  ;;  %v5155_v62 = vpop.f32.mrf.mxu1  ;;  %v5700_v3 = vld [vmem:[#allocation15_spill] sm:$0xff] }
 0x398   : > { %v2225_v4 = vadd.f32 %v5700_v3, %v2091_v20  ;;  %v2092_v47 = vadd.f32 %v5701_v40, %v1958_v25  ;;  %v619_v3 = vadd.s32 280, %v3677_v24  ;;  %v5714_v24 = vld [vmem:[#allocation26_spill] sm:$0xff] }
 0x399   : > { %v2962_v18 = vadd.f32 %v5075_v23, %v2926_v6 }
 0x39a   : > { %v2589_v10 = vpop.f32.mrf.mxu3 }
 0x39b   : > { %v2659_v17 = vadd.f32 %v2589_v10, %v2224_v7  ;;  %v5161_v7 = vpop.f32.mrf.mxu0  ;;  %v5703_v10 = vld [vmem:[#allocation36_spill] sm:$0xff] }
 0x39d   : > { %v2793_v22 = vadd.f32 %v4905_v44, %v2659_v17  ;;  %v2994_v44 = vmax.f32 %v2962_v18, 0.0  ;;  %v5704_v17 = vld [vmem:[#allocation68_spill] sm:$0xff] }
 0x39f   : > { %v2927_v28 = vadd.f32 %v5079_v46, %v2793_v22  ;;  %3475 = vmatmul.msk.bf16.gmra.mxu3 %vm510_vm1, %v4384_v51  ;;  %v5702_v51 = vld [vmem:[#allocation83_spill] sm:$0xff]  ;;  %v2226_v22 = vadd.f32 %v5704_v17, %v2092_v47  ;;  %v5168_v18 = vpop.f32.mrf.mxu1 }
 0x3a0   : > { %v1959_v6 = vadd.f32 %v5703_v10, %v5702_v51  ;;  %v5708_v51 = vld [vmem:[#allocation28_spill] sm:$0xff] }
 0x3a1   : > { %v2963_v27 = vadd.f32 %v5075_v23, %v2927_v28 }
 0x3a2   : > { %v2592_v15 = vpop.f32.mrf.mxu3  ;;  %v2093_v54 = vadd.f32 %v5705_v13, %v1959_v6  ;;  %v5710_v6 = vld [vmem:[#allocation3_spill] sm:$0xff] }
 0x3a3   : > { %v2995_v39 = vmax.f32 %v2963_v27, 0.0  ;;  %v2660_v49 = vadd.f32 %v2592_v15, %v2225_v4  ;;  %v5706_v4 = vld [vmem:[#allocation70_spill] sm:$0xff]  ;;  %v5711_v17 = vrot.slane %v5710_v6, 1 }
 0x3a4   : > { %v2227_v15 = vadd.f32 %v5706_v4, %v2093_v54 }
 0x3a5   : > { %v3023_v35 = vpack.c.bf16 %v2995_v39, %v2994_v44  ;;  %v2794_v46 = vadd.f32 %v5088_v58, %v2660_v49  ;;  %v5180_v39 = vpop.f32.mrf.mxu0 }
 0x3a7   : > { %3516 = vmatmul.msk.bf16.gmra.mxu2 %vm510_vm1, %v3023_v35  ;;  %v2928_v32 = vadd.f32 %v5095_v41, %v2794_v46  ;;  %v5707_v41 = vld [vmem:[#allocation37_spill] sm:$0xff]  ;;  %v869_v35 = vand.u32 15, %v619_v3  ;;  %v5713_v3 = vld [vmem:[#allocation38_spill] sm:$0xff] }
 0x3a8   : > { %v1960_v44 = vadd.f32 %v5707_v41, %v4885_v30  ;;  %v1961_v4 = vadd.f32 %v5713_v3, %v4908_v1  ;;  %v5716_v1 = vld [vmem:[#allocation39_spill] sm:$0xff] }
 0x3a9   : > { %v2964_v58 = vadd.f32 %v5075_v23, %v2928_v32  ;;  %vm2357_vm2 = vcmp.eq.s32.totalorder %v869_v35, 15  ;;  %v5192_v32 = vpop.f32.mrf.mxu1 }
 0x3aa   : > { %v2594_v20 = vpop.f32.mrf.mxu3 }
 0x3ab   : > { %v2661_v28 = vadd.f32 %v2594_v20, %v2226_v22  ;;  %v2996_v40 = vmax.f32 %v2964_v58, 0.0 }
 0x3ad   : > { %v2795_v25 = vadd.f32 %v5101_v0, %v2661_v28  ;;  %v2284_v0 = vrot.slane %v4873_v12, 1  ;;  %v5712_v12 = vld [vmem:[#allocation11_spill] sm:$0xff]  ;;  %v2743_v35 = vpop.f32.mrf.mxu0 }
 0x3ae   : > { %v2094_v28 = vadd.f32 %v5712_v12, %v1960_v44 }
 0x3af   : > { %v2929_v27 = vadd.f32 %v5111_v34, %v2795_v25  ;;  %3476 = vmatmul.msk.bf16.gmra.mxu3 %vm510_vm1, %v5624_v37  ;;  %v5709_v37 = vrot.slane %v5708_v51, 1  ;;  %v2321_v30 = vsel %vm2285_vm5, %v2284_v0, %v5711_v17 }
 0x3b0   : > { %v2393_v13 = vsel %vm2357_vm2, 0.0, %v2321_v30 }
 0x3b1   : > { %v2965_v49 = vadd.f32 %v5075_v23, %v2929_v27  ;;  %v2286_v10 = vsel %vm2285_vm5, %v5709_v37, %v2284_v0  ;;  %v2429_v54 = vpack.c.bf16 %v2393_v13, %v2393_v13  ;;  %v1962_v37 = vadd.f32 %v5716_v1, %v4915_v21 }
 0x3b2   : > { %v2597_v47 = vpop.f32.mrf.mxu3  ;;  %v2428_v22 = vpack.c.bf16 %v2286_v10, %v2286_v10  ;;  %v5717_v10 = vld [vmem:[#allocation75_spill] sm:$0xff] }
 0x3b3   : > { %v2997_v34 = vmax.f32 %v2965_v49, 0.0  ;;  %v2662_v46 = vadd.f32 %v2597_v47, %v2227_v15  ;;  %v2823_v27 = vunpack.c.l.b16 %v2429_v54  ;;  %v2228_v15 = vadd.f32 %v5714_v24, %v2094_v28  ;;  %v5715_v47 = vld [vmem:[#allocation13_spill] sm:$0xff]  ;;  %v5718_v28 = vld [vmem:[#allocation66_spill] sm:$0xff] }
 0x3b4   : > { %v2822_v25 = vunpack.c.l.b16 %v2428_v22  ;;  %v2096_v13 = vadd.f32 %v5718_v28, %v1962_v37 }
 0x3b5   : > { %v3024_v20 = vpack.c.bf16 %v2997_v34, %v2996_v40  ;;  %v2796_v58 = vadd.f32 %v5118_v16, %v2662_v46  ;;  %v2095_v16 = vadd.f32 %v5715_v47, %v1961_v4  ;;  %v2877_v34 = vpop.f32.mrf.mxu1  ;;  %v5723_v47 = vld [vmem:[#allocation84_spill] sm:$0xff] }
 0x3b6   : > { %v2824_v49 = vpack.c.b16 %v2823_v27, %v2822_v25  ;;  %v5720_v25 = vld [vmem:[#allocation80_spill] sm:$0xff] }
 0x3b7   : > { %3517 = vmatmul.msk.bf16.gmra.mxu2 %vm510_vm1, %v3024_v20  ;;  %v2930_v0 = vadd.f32 %v5122_v26, %v2796_v58  ;;  %v2229_v6 = vadd.f32 %v5717_v10, %v2095_v16  ;;  %v2746_v20 = vpop.f32.mrf.mxu0  ;;  %v2230_v58 = vadd.f32 %v5720_v25, %v2096_v13 }
 0x3b8   : > { %3512 = vmatmul.msk.bf16.gmra.mxu1 %vm510_vm1, %v2824_v49 }
 0x3b9   : > { %v2966_v46 = vadd.f32 %v5075_v23, %v2930_v0 }
 0x3ba   : > { %v2599_v41 = vpop.f32.mrf.mxu3 }
 0x3bb   : > { %v2663_v40 = vadd.f32 %v2599_v41, %v2228_v15  ;;  %v2998_v30 = vmax.f32 %v2966_v46, 0.0  ;;  %v5721_v15 = vld [vmem:[#allocation12_spill] sm:$0xff] }
 0x3bd   : > { %v2797_v44 = vadd.f32 %v5134_v55, %v2663_v40  ;;  %v2880_v21 = vpop.f32.mrf.mxu1 }
 0x3bf   : > { %v2931_v51 = vadd.f32 %v5137_v45, %v2797_v44  ;;  %3477 = vmatmul.msk.bf16.gmra.mxu3 %vm510_vm1, %v4416_v60  ;;  %v5719_v60 = vld [vmem:[#allocation40_spill] sm:$0xff]  ;;  %v2748_v49 = vpop.f32.mrf.mxu0 }
 0x3c0   : > { %v1963_v54 = vadd.f32 %v5719_v60, %v4923_v36  ;;  %v5722_v36 = vld [vmem:[#allocation41_spill] sm:$0xff] }
 0x3c1   : > { %v2967_v26 = vadd.f32 %v5075_v23, %v2931_v51  ;;  %v1964_v40 = vadd.f32 %v5722_v36, %v4930_v42 }
 0x3c2   : > { %v2602_v17 = vpop.f32.mrf.mxu3  ;;  %v2097_v41 = vadd.f32 %v5721_v15, %v1963_v54 }
 0x3c3   : > { %v2999_v55 = vmax.f32 %v2967_v26, 0.0  ;;  %v2664_v22 = vadd.f32 %v2602_v17, %v2229_v6  ;;  %v5724_v26 = vld [vmem:[#allocation14_spill] sm:$0xff] }
 0x3c4   : > { %v2098_v10 = vadd.f32 %v5724_v26, %v1964_v40  ;;  %v5725_v6 = vld [vmem:[#allocation42_spill] sm:$0xff] }
 0x3c5   : > { %v3025_v12 = vpack.c.bf16 %v2999_v55, %v2998_v30  ;;  %v2798_v45 = vadd.f32 %v5145_v50, %v2664_v22  ;;  %v2882_v46 = vpop.f32.mrf.mxu1  ;;  %v1965_v42 = vadd.f32 %v5725_v6, %v4943_v14  ;;  %v5726_v17 = vld [vmem:[#allocation86_spill] sm:$0xff]  ;;  %v5253_v6 = vpop.f32.mrf.mxu2 }
 0x3c6   : > { %v2232_v30 = vadd.f32 %v5726_v17, %v2098_v10  ;;  %v5732_v26 = vld [vmem:[#allocation46_spill] sm:$0xff] }
 0x3c7   : > { %3518 = vmatmul.msk.bf16.gmra.mxu2 %vm510_vm1, %v3025_v12  ;;  %v2932_v3 = vadd.f32 %v5155_v62, %v2798_v45  ;;  %v2231_v62 = vadd.f32 %v5723_v47, %v2097_v41  ;;  %v5727_v45 = vld [vmem:[#allocation18_spill] sm:$0xff] }
 0x3c8   : > { %v2099_v60 = vadd.f32 %v5727_v45, %v1965_v42 }
 0x3c9   : > { %v2968_v0 = vadd.f32 %v5075_v23, %v2932_v3 }
 0x3ca   : > { %v2604_v27 = vpop.f32.mrf.mxu3  ;;  %v2233_v14 = vadd.f32 %v4912_v56, %v2099_v60 }
 0x3cb   : > { %v2665_v4 = vadd.f32 %v2604_v27, %v2230_v58 }
 0x3cd   : > { %v2799_v24 = vadd.f32 %v5161_v7, %v2665_v4  ;;  %v3000_v7 = vmax.f32 %v2968_v0, 0.0  ;;  %v2885_v28 = vpop.f32.mrf.mxu1  ;;  %v5729_v0 = vld [vmem:[#allocation69_spill] sm:$0xff] }
 0x3cf   : > { %v2933_v50 = vadd.f32 %v5168_v18, %v2799_v24  ;;  %3478 = vmatmul.msk.bf16.gmra.mxu3 %vm510_vm1, %v4427_v38  ;;  %v2751_v38 = vpop.f32.mrf.mxu0 }
 0x3d1   : > { %v2969_v44 = vadd.f32 %v5075_v23, %v2933_v50 }
 0x3d2   : > { %v2607_v16 = vpop.f32.mrf.mxu3 }
 0x3d3   : > { %v3001_v51 = vmax.f32 %v2969_v44, 0.0  ;;  %v2666_v1 = vadd.f32 %v2607_v16, %v2231_v62 }
 0x3d5   : > { %v3026_v37 = vpack.c.bf16 %v3001_v51, %v3000_v7  ;;  %v2800_v18 = vadd.f32 %v5180_v39, %v2666_v1  ;;  %v5728_v39 = vld [vmem:[#allocation43_spill] sm:$0xff]  ;;  %v2887_v50 = vpop.f32.mrf.mxu1 }
 0x3d6   : > { %v1966_v58 = vadd.f32 %v5728_v39, %v4950_v61  ;;  %v5731_v7 = vld [vmem:[#allocation71_spill] sm:$0xff] }
 0x3d7   : > { %3519 = vmatmul.msk.bf16.gmra.mxu2 %vm510_vm1, %v3026_v37  ;;  %v2934_v22 = vadd.f32 %v5192_v32, %v2800_v18  ;;  %v2753_v4 = vpop.f32.mrf.mxu0 }
 0x3d9   : > { %v2970_v54 = vadd.f32 %v5075_v23, %v2934_v22 }
 0x3da   : > { %v2609_v55 = vpop.f32.mrf.mxu3 }
 0x3db   : > { %v2667_v12 = vadd.f32 %v2609_v55, %v2232_v30  ;;  %v3002_v24 = vmax.f32 %v2970_v54, 0.0  ;;  %v5733_v30 = vld [vmem:[#allocation73_spill] sm:$0xff] }
 0x3dd   : > { %v2801_v13 = vadd.f32 %v2743_v35, %v2667_v12  ;;  %v2100_v35 = vadd.f32 %v5729_v0, %v1966_v58  ;;  %v2890_v10 = vpop.f32.mrf.mxu1 }
 0x3df   : > { %v2935_v25 = vadd.f32 %v2877_v34, %v2801_v13  ;;  %v5730_v34 = vld [vmem:[#allocation44_spill] sm:$0xff]  ;;  %v2234_v61 = vadd.f32 %v4925_v2, %v2100_v35  ;;  %v2756_v62 = vpop.f32.mrf.mxu0 }
 0x3e0   : > { %v1967_v40 = vadd.f32 %v5730_v34, %v4959_v11 }
 0x3e1   : > { %v2971_v27 = vadd.f32 %v5075_v23, %v2935_v25 }
 0x3e2   : > { %v2612_v3 = vpop.f32.mrf.mxu3  ;;  %v2101_v51 = vadd.f32 %v5731_v7, %v1967_v40 }
 0x3e3   : > { %v3003_v15 = vmax.f32 %v2971_v27, 0.0  ;;  %v2668_v32 = vadd.f32 %v2612_v3, %v2233_v14  ;;  %v3551_v27 = vld [vmem:[%s3651_s8] sm:$0xff]  ;;  %v5735_v3 = vld [vmem:[#allocation77_spill] sm:$0xff] }
 0x3e4   : > { %v2235_v11 = vadd.f32 %v4934_v8, %v2101_v51  ;;  %v5734_v8 = vld [vmem:[#allocation49_spill] sm:$0xff] }
 0x3e5   : > { %v3027_v41 = vpack.c.bf16 %v3003_v15, %v3002_v24  ;;  %v2802_v36 = vadd.f32 %v2746_v20, %v2668_v32  ;;  %v1968_v20 = vadd.f32 %v5732_v26, %v4964_v31  ;;  %v5260_v31 = vld [vmem:[%s5473_s6] ss:$0 sm:$0xff]  ;;  %v1969_v12 = vadd.f32 %v5734_v8, %v4975_v43  ;;  %v2892_v54 = vpop.f32.mrf.mxu1  ;;  %v5736_v32 = vld [vmem:[#allocation52_spill] sm:$0xff] }
 0x3e7   : > { %3520 = vmatmul.msk.bf16.gmra.mxu2 %vm510_vm1, %v3027_v41  ;;  %v2936_v47 = vadd.f32 %v2880_v21, %v2802_v36  ;;  %v2102_v55 = vadd.f32 %v5733_v30, %v1968_v20  ;;  %v2758_v22 = vpop.f32.mrf.mxu0  ;;  %v2103_v24 = vadd.f32 %v5735_v3, %v1969_v12  ;;  %v5739_v30 = vld [vmem:[#allocation85_spill] sm:$0xff] }
 0x3e9   : > { %v2972_v1 = vadd.f32 %v5075_v23, %v2936_v47  ;;  %v2236_v13 = vadd.f32 %v4945_v19, %v2102_v55  ;;  %v2237_v0 = vadd.f32 %v4956_v59, %v2103_v24  ;;  %v3552_v47 = vld [vmem:[%s3651_s8 + $0x8] sm:$0xff]  ;;  %v5738_v59 = vld [vmem:[#allocation55_spill] sm:$0xff] }
 0x3ea   : > { %v2614_v44 = vpop.f32.mrf.mxu3 }
 0x3eb   : > { %v2669_v56 = vadd.f32 %v2614_v44, %v2234_v61  ;;  %v3004_v21 = vmax.f32 %v2972_v1, 0.0 }
 0x3ed   : > { %v2803_v16 = vadd.f32 %v2748_v49, %v2669_v56 }
 0x3ef   : > { %v2937_v37 = vadd.f32 %v2882_v46, %v2803_v16  ;;  %v2761_v15 = vpop.f32.mrf.mxu0 }
 0x3f1   : > { %v2973_v18 = vadd.f32 %v5075_v23, %v2937_v37  ;;  %v1971_v37 = vadd.f32 %v5738_v59, %v4991_v48 }
 0x3f2   : > { %v2617_v2 = vpop.f32.mrf.mxu3 }
 0x3f3   : > { %v3005_v42 = vmax.f32 %v2973_v18, 0.0  ;;  %v2670_v17 = vadd.f32 %v2617_v2, %v2235_v11  ;;  %v2105_v55 = vadd.f32 %v5739_v30, %v1971_v37  ;;  %v5747_v30 = vld [vmem:[#allocation88_spill] sm:$0xff] }
 0x3f5   : > { %v3028_v49 = vpack.c.bf16 %v3005_v42, %v3004_v21  ;;  %v2804_v46 = vadd.f32 %v2751_v38, %v2670_v17 }
 0x3f7   : > { %3521 = vmatmul.msk.bf16.gmra.mxu2 %vm510_vm1, %v3028_v49  ;;  %v2938_v25 = vadd.f32 %v2885_v28, %v2804_v46  ;;  %v2763_v11 = vpop.f32.mrf.mxu0 }
 0x3f9   : > { %v2974_v19 = vadd.f32 %v5075_v23, %v2938_v25 }
 0x3fa   : > { %v2619_v45 = vpop.f32.mrf.mxu3  ;;  %v3101_v60 = vpop.f32.mrf.mxu2 }
 0x3fb   : > { %v2671_v39 = vadd.f32 %v2619_v45, %v2236_v13  ;;  %v3102_v58 = vadd.f32 %v5260_v31, %v3101_v60  ;;  %v3006_v34 = vmax.f32 %v2974_v19, 0.0 }
 0x3fd   : > { %v2805_v38 = vadd.f32 %v2753_v4, %v2671_v39  ;;  %v3181_v14 = vadd.f32 %v3551_v27, %v3102_v58  ;;  %v1970_v4 = vadd.f32 %v5736_v32, %v4980_v33  ;;  %v5737_v33 = vld [vmem:[#allocation81_spill] sm:$0xff] }
 0x3ff   : > { %v2939_v43 = vadd.f32 %v2887_v50, %v2805_v38  ;;  %v3213_v28 = vmax.f32 %v3181_v14, 0.0  ;;  %v2895_v50 = vpop.f32.mrf.mxu1  ;;  %v2104_v7 = vadd.f32 %v5737_v33, %v1970_v4  ;;  %v2766_v27 = vpop.f32.mrf.mxu0  ;;  %v5743_v4 = vld [vmem:[#allocation91_spill] sm:$0xff] }
 0x401   : > { %v2975_v41 = vadd.f32 %v5075_v23, %v2939_v43  ;;  %3245 = vst.msk [vmem:[%s5273_s20] sm:$0xff] %vm340_vm0, %v3213_v28  ;;  %v2238_v26 = vadd.f32 %v4966_v5, %v2104_v7  ;;  %v5740_v5 = vld [vmem:[#allocation58_spill] sm:$0xff] }
 0x402   : > { %v2622_v35 = vpop.f32.mrf.mxu3  ;;  %v3103_v36 = vpop.f32.mrf.mxu2  ;;  %v1972_v13 = vadd.f32 %v5740_v5, %v4996_v57  ;;  %v5741_v57 = vld [vmem:[#allocation87_spill] sm:$0xff] }
 0x403   : > { %v3007_v40 = vmax.f32 %v2975_v41, 0.0  ;;  %v2672_v61 = vadd.f32 %v2622_v35, %v2237_v0  ;;  %v3104_v44 = vadd.f32 %v5260_v31, %v3103_v36 }
 0x404   : > { %v2106_v24 = vadd.f32 %v5741_v57, %v1972_v13  ;;  %v5750_v13 = vld [vmem:[#allocation94_spill] sm:$0xff] }
 0x405   : > { %v3182_v56 = vadd.f32 %v3552_v47, %v3104_v44  ;;  %v3029_v16 = vpack.c.bf16 %v3007_v40, %v3006_v34  ;;  %v2806_v51 = vadd.f32 %v2756_v62, %v2672_v61  ;;  %v3553_v62 = vld [vmem:[%s3651_s8 + $0x10] sm:$0xff]  ;;  %v5744_v47 = vld [vmem:[#allocation4_spill] sm:$0xff] }
 0x406   : > { %v2240_v41 = vadd.f32 %v5743_v4, %v2106_v24 }
 0x407   : > { %v3214_v1 = vmax.f32 %v3182_v56, 0.0  ;;  %3522 = vmatmul.msk.bf16.gmra.mxu2 %vm510_vm1, %v3029_v16  ;;  %v2940_v2 = vadd.f32 %v2890_v10, %v2806_v51  ;;  %v2897_v46 = vpop.f32.mrf.mxu1  ;;  %v2239_v10 = vadd.f32 %v4977_v53, %v2105_v55  ;;  %v5742_v53 = vld [vmem:[#allocation61_spill] sm:$0xff]  ;;  %v2768_v16 = vpop.f32.mrf.mxu0  ;;  %v5745_v51 = vld [vmem:[#allocation62_spill] sm:$0xff] }
 0x408   : > { %v1973_v28 = vadd.f32 %v5742_v53, %v5003_v63  ;;  %v5753_v53 = vld [vmem:[#allocation65_spill] sm:$0xff] }
 0x409   : > { %3246 = vst.msk [vmem:[%s5273_s20 + $0x8] sm:$0xff] %vm340_vm0, %v3214_v1  ;;  %v2976_v48 = vadd.f32 %v5075_v23, %v2940_v2  ;;  %v1974_v1 = vadd.f32 %v5745_v51, %v5008_v52 }
 0x40a   : > { %v2624_v20 = vpop.f32.mrf.mxu3  ;;  %v3106_v18 = vpop.f32.mrf.mxu2  ;;  %v2107_v56 = vadd.f32 %v5744_v47, %v1973_v28 }
 0x40b   : > { %v2673_v21 = vadd.f32 %v2624_v20, %v2238_v26  ;;  %v3107_v42 = vadd.f32 %v5260_v31, %v3106_v18  ;;  %v3008_v25 = vmax.f32 %v2976_v48, 0.0  ;;  %v2108_v52 = vadd.f32 %v5747_v30, %v1974_v1  ;;  %v5756_v1 = vld [vmem:[#allocation99_spill] sm:$0xff]  ;;  %v5759_v30 = vld [vmem:[#allocation89_spill] sm:$0xff] }
 0x40d   : > { %v2807_v17 = vadd.f32 %v2758_v22, %v2673_v21  ;;  %v3183_v49 = vadd.f32 %v3553_v62, %v3107_v42 }
 0x40f   : > { %v2941_v8 = vadd.f32 %v2892_v54, %v2807_v17  ;;  %v3215_v12 = vmax.f32 %v3183_v49, 0.0  ;;  %v3554_v54 = vld [vmem:[%s3651_s8 + $0x18] sm:$0xff]  ;;  %v2900_v32 = vpop.f32.mrf.mxu1  ;;  %v3556_v17 = vld [vmem:[%s3651_s8 + $0x28] sm:$0xff]  ;;  %v2771_v48 = vpop.f32.mrf.mxu0 }
 0x411   : > { %v2977_v45 = vadd.f32 %v5075_v23, %v2941_v8  ;;  %3247 = vst.msk [vmem:[%s5273_s20 + $0x10] sm:$0xff] %vm340_vm0, %v3215_v12  ;;  %v5748_v8 = vld [vmem:[#allocation96_spill] sm:$0xff] }
 0x412   : > { %v2627_v22 = vpop.f32.mrf.mxu3  ;;  %v3108_v60 = vpop.f32.mrf.mxu2  ;;  %v5749_v12 = vld [vmem:[#allocation64_spill] sm:$0xff] }
 0x413   : > { %v3009_v39 = vmax.f32 %v2977_v45, 0.0  ;;  %v2674_v58 = vadd.f32 %v2627_v22, %v2239_v10  ;;  %v3109_v38 = vadd.f32 %v5260_v31, %v3108_v60  ;;  %v1975_v5 = vadd.f32 %v5749_v12, %v5748_v8  ;;  %v5760_v8 = vld [vmem:[#allocation101_spill] sm:$0xff]  ;;  %v5761_v12 = vld [vmem:[#allocation67_spill] sm:$0xff] }
 0x414   : > { %v2242_v45 = vadd.f32 %v5750_v13, %v2108_v52 }
 0x415   : > { %v3184_v14 = vadd.f32 %v3554_v54, %v3109_v38  ;;  %v3030_v3 = vpack.c.bf16 %v3009_v39, %v3008_v25  ;;  %v2808_v19 = vadd.f32 %v2761_v15, %v2674_v58  ;;  %v3555_v15 = vld [vmem:[%s3651_s8 + $0x20] sm:$0xff] }
 0x417   : > { %v3216_v43 = vmax.f32 %v3184_v14, 0.0  ;;  %3523 = vmatmul.msk.bf16.gmra.mxu2 %vm510_vm1, %v3030_v3  ;;  %v2942_v36 = vadd.f32 %v2895_v50, %v2808_v19  ;;  %v5746_v50 = vld [vmem:[#allocation93_spill] sm:$0xff]  ;;  %v2902_v18 = vpop.f32.mrf.mxu1  ;;  %v5751_v14 = vld [vmem:[#allocation6_spill] sm:$0xff] }
 0x418   : > { %v2241_v37 = vadd.f32 %v5746_v50, %v2107_v56  ;;  %v2109_v3 = vadd.f32 %v5751_v14, %v1975_v5  ;;  %v1978_v5 = vadd.f32 %v5761_v12, %v5760_v8  ;;  %v3563_v8 = vld [vmem:[%s3651_s8 + $0x60] sm:$0xff] }
 0x419   : > { %3248 = vst.msk [vmem:[%s5273_s20 + $0x18] sm:$0xff] %vm340_vm0, %v3216_v43  ;;  %v2978_v63 = vadd.f32 %v5075_v23, %v2942_v36  ;;  %v5752_v43 = vld [vmem:[#allocation98_spill] sm:$0xff]  ;;  %v2773_v36 = vpop.f32.mrf.mxu0 }
 0x41a   : > { %v2629_v0 = vpop.f32.mrf.mxu3  ;;  %v3111_v35 = vpop.f32.mrf.mxu2  ;;  %v1976_v28 = vadd.f32 %v5753_v53, %v5752_v43 }
 0x41b   : > { %v2675_v34 = vadd.f32 %v2629_v0, %v2240_v41  ;;  %v3112_v40 = vadd.f32 %v5260_v31, %v3111_v35 }
 0x41d   : > { %v2809_v61 = vadd.f32 %v2763_v11, %v2675_v34  ;;  %v3185_v44 = vadd.f32 %v3555_v15, %v3112_v40  ;;  %v3010_v11 = vmax.f32 %v2978_v63, 0.0 }
 0x41f   : > { %v2943_v33 = vadd.f32 %v2897_v46, %v2809_v61  ;;  %v3217_v7 = vmax.f32 %v3185_v44, 0.0  ;;  %v2905_v58 = vpop.f32.mrf.mxu1  ;;  %v3558_v44 = vld [vmem:[%s3651_s8 + $0x38] sm:$0xff] }
 0x421   : > { %v2979_v59 = vadd.f32 %v5075_v23, %v2943_v33  ;;  %3249 = vst.msk [vmem:[%s5273_s20 + $0x20] sm:$0xff] %vm340_vm0, %v3217_v7 }
 0x422   : > { %v2632_v26 = vpop.f32.mrf.mxu3  ;;  %v3113_v20 = vpop.f32.mrf.mxu2 }
 0x423   : > { %v3011_v2 = vmax.f32 %v2979_v59, 0.0  ;;  %v2676_v21 = vadd.f32 %v2632_v26, %v2241_v37  ;;  %v3114_v42 = vadd.f32 %v5260_v31, %v3113_v20  ;;  %v5757_v59 = vld [vmem:[#allocation17_spill] sm:$0xff] }
 0x424   : > { %v1977_v50 = vadd.f32 %v5757_v59, %v5756_v1  ;;  %v5758_v37 = vld [vmem:[#allocation97_spill] sm:$0xff] }
 0x425   : > { %v3186_v62 = vadd.f32 %v3556_v17, %v3114_v42  ;;  %v3031_v49 = vpack.c.bf16 %v3011_v2, %v3010_v11  ;;  %v2810_v55 = vadd.f32 %v2766_v27, %v2676_v21  ;;  %v3557_v27 = vld [vmem:[%s3651_s8 + $0x30] sm:$0xff]  ;;  %v2776_v42 = vpop.f32.mrf.mxu0 }
 0x426   : > { %v2111_v52 = vadd.f32 %v5759_v30, %v1977_v50 }
 0x427   : > { %v3218_v46 = vmax.f32 %v3186_v62, 0.0  ;;  %3524 = vmatmul.msk.bf16.gmra.mxu2 %vm510_vm1, %v3031_v49  ;;  %v2944_v60 = vadd.f32 %v2900_v32, %v2810_v55  ;;  %v5754_v32 = vld [vmem:[#allocation95_spill] sm:$0xff]  ;;  %v2907_v33 = vpop.f32.mrf.mxu1 }
 0x428   : > { %v2243_v41 = vadd.f32 %v5754_v32, %v2109_v3  ;;  %v3559_v62 = vld [vmem:[%s3651_s8 + $0x40] sm:$0xff] }
 0x429   : > { %3250 = vst.msk [vmem:[%s5273_s20 + $0x28] sm:$0xff] %vm340_vm0, %v3218_v46  ;;  %v2980_v57 = vadd.f32 %v5075_v23, %v2944_v60 }
 0x42a   : > { %v2634_v10 = vpop.f32.mrf.mxu3  ;;  %v3116_v22 = vpop.f32.mrf.mxu2 }
 0x42b   : > { %v2677_v25 = vadd.f32 %v2634_v10, %v2242_v45  ;;  %v3117_v39 = vadd.f32 %v5260_v31, %v3116_v22  ;;  %v3012_v34 = vmax.f32 %v2980_v57, 0.0  ;;  %v5762_v10 = vld [vmem:[#allocation100_spill] sm:$0xff]  ;;  %v5763_v57 = vld [vmem:[#allocation90_spill] sm:$0xff] }
 0x42c   : > { %v2245_v22 = vadd.f32 %v5762_v10, %v2111_v52 }
 0x42d   : > { %v2811_v38 = vadd.f32 %v2768_v16, %v2677_v25  ;;  %v3187_v54 = vadd.f32 %v3557_v27, %v3117_v39  ;;  %v5755_v16 = vld [vmem:[#allocation5_spill] sm:$0xff] }
 0x42e   : > { %v2110_v63 = vadd.f32 %v5755_v16, %v1976_v28  ;;  %v5764_v28 = vld [vmem:[#allocation102_spill] sm:$0xff] }
 0x42f   : > { %v2945_v24 = vadd.f32 %v2902_v18, %v2811_v38  ;;  %v3219_v19 = vmax.f32 %v3187_v54, 0.0  ;;  %v2910_v13 = vpop.f32.mrf.mxu1  ;;  %v3560_v54 = vld [vmem:[%s3651_s8 + $0x48] sm:$0xff] }
 0x430   : > { %v2244_v26 = vadd.f32 %v5758_v37, %v2110_v63  ;;  %v5765_v63 = vld [vmem:[#allocation21_spill] sm:$0xff] }
 0x431   : > { %v2981_v4 = vadd.f32 %v5075_v23, %v2945_v24  ;;  %3251 = vst.msk [vmem:[%s5273_s20 + $0x30] sm:$0xff] %vm340_vm0, %v3219_v19  ;;  %v2112_v24 = vadd.f32 %v5763_v57, %v1978_v5  ;;  %v2778_v19 = vpop.f32.mrf.mxu0 }
 0x432   : > { %v2637_v0 = vpop.f32.mrf.mxu3  ;;  %v3118_v35 = vpop.f32.mrf.mxu2 }
 0x433   : > { %v3013_v40 = vmax.f32 %v2981_v4, 0.0  ;;  %v2678_v61 = vadd.f32 %v2637_v0, %v2243_v41  ;;  %v3119_v15 = vadd.f32 %v5260_v31, %v3118_v35  ;;  %v2246_v4 = vadd.f32 %v5764_v28, %v2112_v24 }
 0x435   : > { %v3188_v47 = vadd.f32 %v3558_v44, %v3119_v15  ;;  %v3032_v56 = vpack.c.bf16 %v3013_v40, %v3012_v34  ;;  %v2812_v7 = vadd.f32 %v2771_v48, %v2678_v61  ;;  %v3561_v61 = vld [vmem:[%s3651_s8 + $0x50] sm:$0xff] }
 0x437   : > { %v3220_v51 = vmax.f32 %v3188_v47, 0.0  ;;  %3525 = vmatmul.msk.bf16.gmra.mxu2 %vm510_vm1, %v3032_v56  ;;  %v2946_v11 = vadd.f32 %v2905_v58, %v2812_v7  ;;  %v2912_v34 = vpop.f32.mrf.mxu1 }
 0x439   : > { %3252 = vst.msk [vmem:[%s5273_s20 + $0x38] sm:$0xff] %vm340_vm0, %v3220_v51  ;;  %v2982_v55 = vadd.f32 %v5075_v23, %v2946_v11  ;;  %v2781_v16 = vpop.f32.mrf.mxu0 }
 0x43a   : > { %v2639_v20 = vpop.f32.mrf.mxu3  ;;  %v3121_v18 = vpop.f32.mrf.mxu2 }
 0x43b   : > { %v2679_v2 = vadd.f32 %v2639_v20, %v2244_v26  ;;  %v3122_v21 = vadd.f32 %v5260_v31, %v3121_v18  ;;  %v3014_v39 = vmax.f32 %v2982_v55, 0.0  ;;  %v5766_v18 = vld [vmem:[#allocation92_spill] sm:$0xff] }
 0x43d   : > { %v2813_v17 = vadd.f32 %v2773_v36, %v2679_v2  ;;  %v3189_v49 = vadd.f32 %v3559_v62, %v3122_v21  ;;  %v3562_v2 = vld [vmem:[%s3651_s8 + $0x58] sm:$0xff] }
 0x43f   : > { %v2947_v46 = vadd.f32 %v2907_v33, %v2813_v17  ;;  %v3221_v48 = vmax.f32 %v3189_v49, 0.0  ;;  %v1980_v33 = vadd.f32 %v5765_v63, %v5057_v29  ;;  %v2915_v20 = vpop.f32.mrf.mxu1 }
 0x441   : > { %v2983_v45 = vadd.f32 %v5075_v23, %v2947_v46  ;;  %3253 = vst.msk [vmem:[%s5273_s20 + $0x40] sm:$0xff] %vm340_vm0, %v3221_v48  ;;  %v2114_v11 = vadd.f32 %v5766_v18, %v1980_v33  ;;  %v2783_v46 = vpop.f32.mrf.mxu0 }
 0x442   : > { %v2642_v60 = vpop.f32.mrf.mxu3  ;;  %v3123_v25 = vpop.f32.mrf.mxu2 }
 0x443   : > { %v3015_v58 = vmax.f32 %v2983_v45, 0.0  ;;  %v2680_v38 = vadd.f32 %v2642_v60, %v2245_v22  ;;  %v3124_v27 = vadd.f32 %v5260_v31, %v3123_v25  ;;  %v2248_v62 = vadd.f32 %v5253_v6, %v2114_v11 }
 0x445   : > { %v3190_v14 = vadd.f32 %v3560_v54, %v3124_v27  ;;  %v3033_v3 = vpack.c.bf16 %v3015_v58, %v3014_v39  ;;  %v2814_v43 = vadd.f32 %v2776_v42, %v2680_v38  ;;  %v3564_v58 = vld [vmem:[%s3651_s8 + $0x68] sm:$0xff] }
 0x447   : > { %v3222_v53 = vmax.f32 %v3190_v14, 0.0  ;;  %3526 = vmatmul.msk.bf16.gmra.mxu2 %vm510_vm1, %v3033_v3  ;;  %v2948_v0 = vadd.f32 %v2910_v13, %v2814_v43  ;;  %v2917_v5 = vpop.f32.mrf.mxu1  ;;  %v3565_v3 = vld [vmem:[%s3651_s8 + $0x70] sm:$0xff] }
 0x449   : > { %3254 = vst.msk [vmem:[%s5273_s20 + $0x48] sm:$0xff] %vm340_vm0, %v3222_v53  ;;  %v2984_v44 = vadd.f32 %v5075_v23, %v2948_v0  ;;  %v3566_v53 = vld [vmem:[%s3651_s8 + $0x78] sm:$0xff]  ;;  %v3567_v0 = vld [vmem:[%s3651_s8 + $0x80] sm:$0xff] }
 0x44a   : > { %v2644_v32 = vpop.f32.mrf.mxu3  ;;  %v3126_v41 = vpop.f32.mrf.mxu2 }
 0x44b   : > { %v2681_v35 = vadd.f32 %v2644_v32, %v2246_v4  ;;  %v3127_v36 = vadd.f32 %v5260_v31, %v3126_v41  ;;  %v3016_v59 = vmax.f32 %v2984_v44, 0.0 }
 0x44d   : > { %v2815_v40 = vadd.f32 %v2778_v19, %v2681_v35  ;;  %v3191_v15 = vadd.f32 %v3561_v61, %v3127_v36  ;;  %v3568_v61 = vld [vmem:[%s3651_s8 + $0x88] sm:$0xff] }
 0x44f   : > { %v2949_v47 = vadd.f32 %v2912_v34, %v2815_v40  ;;  %v3223_v56 = vmax.f32 %v3191_v15, 0.0 }
 0x451   : > { %v2985_v7 = vadd.f32 %v5075_v23, %v2949_v47  ;;  %3255 = vst.msk [vmem:[%s5273_s20 + $0x50] sm:$0xff] %vm340_vm0, %v3223_v56 }
 0x452   : > { %v2647_v51 = vpop.f32.mrf.mxu3  ;;  %v3128_v1 = vpop.f32.mrf.mxu2 }
 0x453   : > { %v3017_v50 = vmax.f32 %v2985_v7, 0.0  ;;  %v2682_v37 = vadd.f32 %v2647_v51, %v5054_v9  ;;  %v3129_v26 = vadd.f32 %v5260_v31, %v3128_v1  ;;  %v3570_v1 = vld [vmem:[%s3651_s8 + $0x98] sm:$0xff] }
 0x455   : > { %v3192_v21 = vadd.f32 %v3562_v2, %v3129_v26  ;;  %v3034_v29 = vpack.c.bf16 %v3017_v50, %v3016_v59  ;;  %v2816_v42 = vadd.f32 %v2781_v16, %v2682_v37  ;;  %v3569_v16 = vld [vmem:[%s3651_s8 + $0x90] sm:$0xff] }
 0x457   : > { %v3224_v17 = vmax.f32 %v3192_v21, 0.0  ;;  %3527 = vmatmul.msk.bf16.gmra.mxu2 %vm510_vm1, %v3034_v29  ;;  %v2950_v30 = vadd.f32 %v2915_v20, %v2816_v42  ;;  %v3571_v20 = vld [vmem:[%s3651_s8 + $0xa0] sm:$0xff]  ;;  %v3572_v29 = vld [vmem:[%s3651_s8 + $0xa8] sm:$0xff] }
 0x459   : > { %3256 = vst.msk [vmem:[%s5273_s20 + $0x58] sm:$0xff] %vm340_vm0, %v3224_v17  ;;  %v2986_v13 = vadd.f32 %v5075_v23, %v2950_v30 }
 0x45a   : > { %v2649_v49 = vpop.f32.mrf.mxu3  ;;  %v3131_v9 = vpop.f32.mrf.mxu2 }
 0x45b   : > { %v2683_v52 = vadd.f32 %v2649_v49, %v2248_v62  ;;  %v3132_v55 = vadd.f32 %v5260_v31, %v3131_v9  ;;  %v3018_v60 = vmax.f32 %v2986_v13, 0.0  ;;  %v3573_v9 = vld [vmem:[%s3651_s8 + $0xb0] sm:$0xff] }
 0x45d   : > { %v2817_v48 = vadd.f32 %v2783_v46, %v2683_v52  ;;  %v3193_v12 = vadd.f32 %v3563_v8, %v3132_v55 }
 0x45f   : > { %v2951_v45 = vadd.f32 %v2917_v5, %v2817_v48  ;;  %v3225_v6 = vmax.f32 %v3193_v12, 0.0  ;;  %v3574_v48 = vld [vmem:[%s3651_s8 + $0xb8] sm:$0xff] }
 0x461   : > { %v2987_v10 = vadd.f32 %v5075_v23, %v2951_v45  ;;  %3257 = vst.msk [vmem:[%s5273_s20 + $0x60] sm:$0xff] %vm340_vm0, %v3225_v6  ;;  %v3575_v45 = vld [vmem:[%s3651_s8 + $0xc0] sm:$0xff] }
 0x462   : > { %v3133_v22 = vpop.f32.mrf.mxu2 }
 0x463   : > { %v3019_v25 = vmax.f32 %v2987_v10, 0.0  ;;  %v3134_v39 = vadd.f32 %v5260_v31, %v3133_v22 }
 0x465   : > { %v3194_v38 = vadd.f32 %v3564_v58, %v3134_v39  ;;  %v3035_v27 = vpack.c.bf16 %v3019_v25, %v3018_v60  ;;  %v3576_v25 = vld [vmem:[%s3651_s8 + $0xc8] sm:$0xff] }
 0x467   : > { %v3226_v54 = vmax.f32 %v3194_v38, 0.0  ;;  %3528 = vmatmul.msk.bf16.gmra.mxu2 %vm510_vm1, %v3035_v27 }
 0x469   : > { %3258 = vst.msk [vmem:[%s5273_s20 + $0x68] sm:$0xff] %vm340_vm0, %v3226_v54  ;;  %v3577_v54 = vld [vmem:[%s3651_s8 + $0xd0] sm:$0xff] }
 0x46a   : > { %v3136_v23 = vpop.f32.mrf.mxu2 }
 0x46b   : > { %v3137_v14 = vadd.f32 %v5260_v31, %v3136_v23 }
 0x46d   : > { %v3195_v57 = vadd.f32 %v3565_v3, %v3137_v14 }
 0x46f   : > { %v3227_v24 = vmax.f32 %v3195_v57, 0.0 }
 0x471   : > { %3259 = vst.msk [vmem:[%s5273_s20 + $0x70] sm:$0xff] %vm340_vm0, %v3227_v24  ;;  %v3578_v24 = vld [vmem:[%s3651_s8 + $0xd8] sm:$0xff] }
 0x472   : > { %v3138_v19 = vpop.f32.mrf.mxu2 }
 0x473   : > { %v3139_v43 = vadd.f32 %v5260_v31, %v3138_v19 }
 0x475   : > { %v3196_v28 = vadd.f32 %v3566_v53, %v3139_v43 }
 0x477   : > { %v3228_v4 = vmax.f32 %v3196_v28, 0.0 }
 0x479   : > { %3260 = vst.msk [vmem:[%s5273_s20 + $0x78] sm:$0xff] %vm340_vm0, %v3228_v4  ;;  %v3579_v4 = vld [vmem:[%s3651_s8 + $0xe0] sm:$0xff] }
 0x47a   : > { %v3141_v32 = vpop.f32.mrf.mxu2 }
 0x47b   : > { %v3142_v41 = vadd.f32 %v5260_v31, %v3141_v32 }
 0x47d   : > { %v3197_v35 = vadd.f32 %v3567_v0, %v3142_v41 }
 0x47f   : > { %v3229_v36 = vmax.f32 %v3197_v35, 0.0 }
 0x481   : > { %3261 = vst.msk [vmem:[%s5273_s20 + $0x80] sm:$0xff] %vm340_vm0, %v3229_v36  ;;  %v3580_v36 = vld [vmem:[%s3651_s8 + $0xe8] sm:$0xff] }
 0x482   : > { %v3143_v34 = vpop.f32.mrf.mxu2 }
 0x483   : > { %v3144_v40 = vadd.f32 %v5260_v31, %v3143_v34 }
 0x485   : > { %v3198_v15 = vadd.f32 %v3568_v61, %v3144_v40 }
 0x487   : > { %v3230_v44 = vmax.f32 %v3198_v15, 0.0 }
 0x489   : > { %3262 = vst.msk [vmem:[%s5273_s20 + $0x88] sm:$0xff] %vm340_vm0, %v3230_v44  ;;  %v3581_v44 = vld [vmem:[%s3651_s8 + $0xf0] sm:$0xff] }
 0x48a   : > { %v3146_v47 = vpop.f32.mrf.mxu2 }
 0x48b   : > { %v3147_v56 = vadd.f32 %v5260_v31, %v3146_v47 }
 0x48d   : > { %v3199_v63 = vadd.f32 %v3569_v16, %v3147_v56 }
 0x48f   : > { %v3231_v33 = vmax.f32 %v3199_v63, 0.0 }
 0x491   : > { %3263 = vst.msk [vmem:[%s5273_s20 + $0x90] sm:$0xff] %vm340_vm0, %v3231_v33  ;;  %v3582_v33 = vld [vmem:[%s3651_s8 + $0xf8] sm:$0xff] }
 0x492   : > { %v3148_v7 = vpop.f32.mrf.mxu2 }
 0x493   : > { %v3149_v51 = vadd.f32 %v5260_v31, %v3148_v7 }
 0x495   : > { %v3200_v59 = vadd.f32 %v3570_v1, %v3149_v51 }
 0x497   : > { %v3232_v50 = vmax.f32 %v3200_v59, 0.0 }
 0x499   : > { %3264 = vst.msk [vmem:[%s5273_s20 + $0x98] sm:$0xff] %vm340_vm0, %v3232_v50 }
 0x49a   : > { %v3151_v37 = vpop.f32.mrf.mxu2 }
 0x49b   : > { %v3152_v26 = vadd.f32 %v5260_v31, %v3151_v37 }
 0x49d   : > { %v3201_v18 = vadd.f32 %v3571_v20, %v3152_v26 }
 0x49f   : > { %v3233_v11 = vmax.f32 %v3201_v18, 0.0 }
 0x4a1   : > { %3265 = vst.msk [vmem:[%s5273_s20 + $0xa0] sm:$0xff] %vm340_vm0, %v3233_v11 }
 0x4a2   : > { %v3153_v2 = vpop.f32.mrf.mxu2 }
 0x4a3   : > { %v3154_v21 = vadd.f32 %v5260_v31, %v3153_v2 }
 0x4a5   : > { %v3202_v42 = vadd.f32 %v3572_v29, %v3154_v21 }
 0x4a7   : > { %v3234_v17 = vmax.f32 %v3202_v42, 0.0 }
 0x4a9   : > { %3266 = vst.msk [vmem:[%s5273_s20 + $0xa8] sm:$0xff] %vm340_vm0, %v3234_v17 }
 0x4aa   : > { %v3156_v62 = vpop.f32.mrf.mxu2 }
 0x4ab   : > { %v3157_v49 = vadd.f32 %v5260_v31, %v3156_v62 }
 0x4ad   : > { %v3203_v30 = vadd.f32 %v3573_v9, %v3157_v49 }
 0x4af   : > { %v3235_v52 = vmax.f32 %v3203_v30, 0.0 }
 0x4b1   : > { %3267 = vst.msk [vmem:[%s5273_s20 + $0xb0] sm:$0xff] %vm340_vm0, %v3235_v52 }
 0x4b2   : > { %v3158_v55 = vpop.f32.mrf.mxu2 }
 0x4b3   : > { %v3159_v46 = vadd.f32 %v5260_v31, %v3158_v55 }
 0x4b5   : > { %v3204_v8 = vadd.f32 %v3574_v48, %v3159_v46 }
 0x4b7   : > { %v3236_v12 = vmax.f32 %v3204_v8, 0.0 }
 0x4b9   : > { %3268 = vst.msk [vmem:[%s5273_s20 + $0xb8] sm:$0xff] %vm340_vm0, %v3236_v12 }
 0x4ba   : > { %v3161_v5 = vpop.f32.mrf.mxu2 }
 0x4bb   : > { %v3162_v13 = vadd.f32 %v5260_v31, %v3161_v5 }
 0x4bd   : > { %v3205_v6 = vadd.f32 %v3575_v45, %v3162_v13 }
 0x4bf   : > { %v3237_v10 = vmax.f32 %v3205_v6, 0.0 }
 0x4c1   : > { %3269 = vst.msk [vmem:[%s5273_s20 + $0xc0] sm:$0xff] %vm340_vm0, %v3237_v10 }
 0x4c2   : > { %v3163_v22 = vpop.f32.mrf.mxu2 }
 0x4c3   : > { %v3164_v60 = vadd.f32 %v5260_v31, %v3163_v22 }
 0x4c5   : > { %v3206_v39 = vadd.f32 %v3576_v25, %v3164_v60 }
 0x4c7   : > { %v3238_v58 = vmax.f32 %v3206_v39, 0.0 }
 0x4c9   : > { %3270 = vst.msk [vmem:[%s5273_s20 + $0xc8] sm:$0xff] %vm340_vm0, %v3238_v58 }
 0x4ca   : > { %v3166_v38 = vpop.f32.mrf.mxu2 }
 0x4cb   : > { %v3167_v27 = vadd.f32 %v5260_v31, %v3166_v38 }
 0x4cd   : > { %v3207_v23 = vadd.f32 %v3577_v54, %v3167_v27 }
 0x4cf   : > { %v3239_v14 = vmax.f32 %v3207_v23, 0.0 }
 0x4d1   : > { %3271 = vst.msk [vmem:[%s5273_s20 + $0xd0] sm:$0xff] %vm340_vm0, %v3239_v14 }
 0x4d2   : > { %v3168_v3 = vpop.f32.mrf.mxu2 }
 0x4d3   : > { %v3169_v57 = vadd.f32 %v5260_v31, %v3168_v3 }
 0x4d5   : > { %v3208_v19 = vadd.f32 %v3578_v24, %v3169_v57 }
 0x4d7   : > { %v3240_v43 = vmax.f32 %v3208_v19, 0.0 }
 0x4d9   : > { %3272 = vst.msk [vmem:[%s5273_s20 + $0xd8] sm:$0xff] %vm340_vm0, %v3240_v43 }
 0x4da   : > { %v3171_v53 = vpop.f32.mrf.mxu2 }
 0x4db   : > { %v3172_v28 = vadd.f32 %v5260_v31, %v3171_v53 }
 0x4dd   : > { %v3209_v32 = vadd.f32 %v3579_v4, %v3172_v28 }
 0x4df   : > { %v3241_v41 = vmax.f32 %v3209_v32, 0.0 }
 0x4e1   : > { %3273 = vst.msk [vmem:[%s5273_s20 + $0xe0] sm:$0xff] %vm340_vm0, %v3241_v41 }
 0x4e2   : > { %v3173_v0 = vpop.f32.mrf.mxu2 }
 0x4e3   : > { %v3174_v35 = vadd.f32 %v5260_v31, %v3173_v0 }
 0x4e5   : > { %v3210_v34 = vadd.f32 %v3580_v36, %v3174_v35 }
 0x4e7   : > { %v3242_v40 = vmax.f32 %v3210_v34, 0.0 }
 0x4e9   : > { %3274 = vst.msk [vmem:[%s5273_s20 + $0xe8] sm:$0xff] %vm340_vm0, %v3242_v40 }
 0x4ea   : > { %v3176_v61 = vpop.f32.mrf.mxu2 }
 0x4eb   : > { %v3177_v15 = vadd.f32 %v5260_v31, %v3176_v61 }
 0x4ed   : > { %v3211_v47 = vadd.f32 %v3581_v44, %v3177_v15 }
 0x4ef   : > { %v3243_v56 = vmax.f32 %v3211_v47, 0.0 }
 0x4f1   : > { %3275 = vst.msk [vmem:[%s5273_s20 + $0xf0] sm:$0xff] %vm340_vm0, %v3243_v56 }
 0x4f2   : > { %v3178_v16 = vpop.f32.mrf.mxu2 }
 0x4f3   : > { %v3179_v63 = vadd.f32 %v5260_v31, %v3178_v16 }
 0x4f5   : > { %v3212_v7 = vadd.f32 %v3582_v33, %v3179_v63 }
 0x4f7   : > { %v3244_v51 = vmax.f32 %v3212_v7, 0.0 }
 0x4f9   : > { %3276 = vst.msk [vmem:[%s5273_s20 + $0xf8] sm:$0xff] %vm340_vm0, %v3244_v51 }
 0x4fa PF: > { %s17_s24 = sadd.s32 1, %s3589_s24  }
 0x4fb   : > { %p14_p4 = scmp.ge.s32.totalorder %s17_s24, 4  }
 0x4fd   :  { %16 = sbr.rel (!%p14_p4) target bundleno = 1 (0x1), region = 86 }

</bundles_post_ra>
